<compile_context>
chip_gen: v7x
topology: tpu7x:2x2x1
jax: 0.10.0
libtpu: 0.0.40
codegen_flags: <defaults>
</compile_context>

<pallas_src>
import functools

import jax
import jax.numpy as jnp
from jax.experimental import pallas as pl
from jax.experimental.pallas import tpu as pltpu


_NEG_INF = jnp.float32(-1e30)

# Order in which the packed (W, b) pairs are passed to the kernel.
_LAYERS = ("conv1", "conv2", "conv3", "conv4",
           "imgconv1", "imgconv2", "imgconv3", "imgconv4",
           "neck", "neck2", "c3", "c4")


def _elu(x):
    # ELU(alpha=1).
    # TODO(synk): switch to jnp.expm1 for better relative accuracy near 0 once
    #             confirmed in the Mosaic elementwise lowering set; exp()-1 is
    #             the safe, known-lowering form (abs error ~1e-7 in f32).
    return jnp.where(x > 0, x, jnp.exp(jnp.minimum(x, 0.0)) - 1.0)


# ---------------------------------------------------------------------------
# Fused Pallas kernel: whole TransImg forward in one launch
# ---------------------------------------------------------------------------
def fused_trans_img_kernel(*refs, pack_pad):
    """12 TransformerConv(heads=1) layers + gap; everything stays in VMEM."""
    feat_ref, img_ref, bias_ref, rowv_ref, onehot_ref, invcnt_ref = refs[:6]
    wb_refs = refs[6:6 + 2 * len(_LAYERS)]
    node_out_ref, hidden_out_ref = refs[6 + 2 * len(_LAYERS):]

    bias = bias_ref[...]          # (N, N) additive mask: 0 on edges, -1e30 off
    row_valid = rowv_ref[...]     # (N, 1) 1.0 iff node i has >= 1 incoming edge

    def conv(x, idx, apply_elu=False):
        """One PyG TransformerConv (heads=1, concat=True, root_weight=True)."""
        w = wb_refs[2 * idx][...]        # (din, 4*dout) bf16, q cols pre-scaled
        b = wb_refs[2 * idx + 1][...]    # (1, 4*dout)   f32, q cols pre-scaled
        dout = b.shape[1] // 4

        # single packed lane-dense projection matmul: [q | k | v | skip]
        proj = jnp.dot(x.astype(jnp.bfloat16), w,
                       preferred_element_type=jnp.float32) + b
        q = proj[:, 0 * dout:1 * dout]
        k = proj[:, 1 * dout:2 * dout]
        v = proj[:, 2 * dout:3 * dout]
        skip = proj[:, 3 * dout:4 * dout]

        # scores[i, j] = <q_i, k_j>   (1/sqrt(d) already folded into q)
        scores = jax.lax.dot_general(
            q.astype(jnp.bfloat16), k.astype(jnp.bfloat16),
            dimension_numbers=(((1,), (1,)), ((), ())),
            preferred_element_type=jnp.float32)

        masked = scores + bias                        # f32 mask math
        m = jnp.max(masked, axis=-1, keepdims=True)
        e = jnp.exp(masked - m)                       # non-edges underflow to 0
        denom = jnp.sum(e, axis=-1, keepdims=True)    # >= 1 (max term is 1)
        alpha = e * pl.reciprocal(denom, approx=True)

        agg = jnp.dot(alpha.astype(jnp.bfloat16), v.astype(jnp.bfloat16),
                      preferred_element_type=jnp.float32)
        out = row_valid * agg + skip                  # no-edge rows -> skip only
        if apply_elu:
            out = _elu(out)
        return out

    li = {name: i for i, name in enumerate(_LAYERS)}
    x = feat_ref[...].astype(jnp.float32)
    xi = img_ref[...].astype(jnp.float32)

    # expression branch
    h1a = conv(x, li["conv1"], apply_elu=True)        # == elu(conv1(features))
    h2 = conv(h1a, li["conv2"])
    h3 = conv(h2, li["conv3"], apply_elu=True)
    h4 = conv(h3, li["conv4"])

    # image branch
    img1 = conv(xi, li["imgconv1"], apply_elu=True)
    img2 = conv(img1, li["imgconv2"])
    img3 = conv(img2, li["imgconv3"], apply_elu=True)
    img4 = conv(img3, li["imgconv4"])

    # combined branch
    concat = jnp.concatenate([h2, img2], axis=1)
    combine = conv(concat, li["neck"], apply_elu=True)
    c2 = conv(combine, li["neck2"])
    c3 = conv(c2, li["c3"], apply_elu=True)
    c4 = conv(c3, li["c4"])

    # fused global-mean-pool (gap) epilogue on c2
    hidden = jnp.dot(onehot_ref[...], c2,
                     preferred_element_type=jnp.float32) * invcnt_ref[...]
    hidden_out_ref[...] = hidden.astype(hidden_out_ref.dtype)

    # single lane-dense packed node-output store; wrapper slices it apart
    n = x.shape[0]
    pieces = [h2, img2, c2, h4, img4, c4]
    if pack_pad > 0:
        pieces.append(jnp.zeros((n, pack_pad), jnp.float32))
    node_out_ref[...] = jnp.concatenate(pieces, axis=1).astype(node_out_ref.dtype)


# ---------------------------------------------------------------------------
# Wrapper: trace-time packing / masking + one pallas_call
# ---------------------------------------------------------------------------
def _pack_conv_params(p):
    """Pack [wq|wk|wv|ws]; fold the 1/sqrt(d) attention scale into q cols."""
    dout = p["wq"].shape[1]
    scale = jnp.float32(1.0) / jnp.sqrt(jnp.float32(dout))
    w = jnp.concatenate([p["wq"] * scale, p["wk"], p["wv"], p["ws"]], axis=1)
    b = jnp.concatenate([p["bq"] * scale, p["bk"], p["bv"], p["bs"]], axis=1)
    return w.astype(jnp.bfloat16), b.astype(jnp.float32)


def trans_img_forward(params, features, img_feat, adj, batch_index, *, num_graphs):
    """Returns (h2, img2, c2, h4, img4, c4, hidden) like TransImg.forward."""
    n, in_dim = features.shape
    out_dim = params["neck2"]["wq"].shape[1]

    # trace-time graph preprocessing (replaces per-layer in-kernel mask work)
    bias = jnp.where(adj > 0, 0.0, _NEG_INF).astype(jnp.float32)        # (N, N)
    row_valid = (jnp.sum(adj, axis=1, keepdims=True) > 0).astype(jnp.float32)
    onehot = (batch_index[None, :] ==
              jnp.arange(num_graphs)[:, None]).astype(jnp.float32)      # (B, N)
    inv_cnt = 1.0 / jnp.maximum(jnp.sum(onehot, axis=1, keepdims=True), 1.0)

    packed = []
    for name in _LAYERS:
        w, b = _pack_conv_params(params[name])
        packed += [w, b]

    node_cols = 3 * out_dim + 3 * in_dim
    pack = max(128, ((node_cols + 127) // 128) * 128)   # lane-dense output slab
    pack_pad = pack - node_cols

    vmem = pl.BlockSpec(memory_space=pltpu.MemorySpace.VMEM)
    node_slab, hidden = pl.pallas_call(
        functools.partial(fused_trans_img_kernel, pack_pad=pack_pad),
        out_shape=(jax.ShapeDtypeStruct((n, pack), jnp.float32),
                   jax.ShapeDtypeStruct((num_graphs, out_dim), jnp.float32)),
        in_specs=[vmem] * (6 + len(packed)),
        out_specs=(vmem, vmem),
    )(features, img_feat, bias, row_valid, onehot, inv_cnt, *packed)

    o, i = out_dim, in_dim
    h2 = node_slab[:, 0 * o:1 * o]
    img2 = node_slab[:, 1 * o:2 * o]
    c2 = node_slab[:, 2 * o:3 * o]
    h4 = node_slab[:, 3 * o:3 * o + i]
    img4 = node_slab[:, 3 * o + i:3 * o + 2 * i]
    c4 = node_slab[:, 3 * o + 2 * i:3 * o + 3 * i]
    return h2, img2, c2, h4, img4, c4, hidden


# ---------------------------------------------------------------------------
# Parameter construction (deterministic, synthetic)
# ---------------------------------------------------------------------------
def make_conv_params(key, in_dim, out_dim):
    ks = jax.random.split(key, 8)

    def lin(kw, kb):
        w = 0.1 * jax.random.normal(kw, (in_dim, out_dim), jnp.float32)
        b = 0.1 * jax.random.normal(kb, (1, out_dim), jnp.float32)
        return w, b

    wq, bq = lin(ks[0], ks[1])
    wk, bk = lin(ks[2], ks[3])
    wv, bv = lin(ks[4], ks[5])
    ws, bs = lin(ks[6], ks[7])
    return dict(wq=wq, bq=bq, wk=wk, bk=bk, wv=wv, bv=bv, ws=ws, bs=bs)


def make_trans_img_params(key, hidden_dims):
    in_dim, img_dim, num_hidden, out_dim = hidden_dims
    dims = {
        "conv1": (in_dim, num_hidden), "conv2": (num_hidden, out_dim),
        "conv3": (out_dim, num_hidden), "conv4": (num_hidden, in_dim),
        "imgconv1": (img_dim, num_hidden), "imgconv2": (num_hidden, out_dim),
        "imgconv3": (out_dim, num_hidden), "imgconv4": (num_hidden, in_dim),
        "neck": (out_dim * 2, out_dim), "neck2": (out_dim, out_dim),
        "c3": (out_dim, num_hidden), "c4": (num_hidden, in_dim),
    }
    keys = jax.random.split(key, len(dims))
    return {name: make_conv_params(k, d_in, d_out)
            for k, (name, (d_in, d_out)) in zip(keys, dims.items())}


# ---------------------------------------------------------------------------
# Demo
# ---------------------------------------------------------------------------
if __name__ == "__main__":
    key = jax.random.PRNGKey(0)
    k_feat, k_img, k_edge, k_param = jax.random.split(key, 4)

    # small shapes consistent with the module
    N = 32                     # number of nodes (spots)
    B = 2                      # number of graphs in the batch
    in_dim, img_dim, num_hidden, out_dim = 16, 8, 32, 16
    hidden_dims = [in_dim, img_dim, num_hidden, out_dim]

    features = jax.random.normal(k_feat, (N, in_dim), jnp.float32)
    img_feat = jax.random.normal(k_img, (N, img_dim), jnp.float32)

    # random edge_index (src, dst) plus self-loops so every node has neighbors
    E = 64
    src = jax.random.randint(jax.random.fold_in(k_edge, 0), (E,), 0, N)
    dst = jax.random.randint(jax.random.fold_in(k_edge, 1), (E,), 0, N)
    loops = jnp.arange(N)
    src = jnp.concatenate([src, loops])
    dst = jnp.concatenate([dst, loops])

    # densify: adj[i, j] = 1 iff edge j -> i
    adj = jnp.zeros((N, N), jnp.float32).at[dst, src].set(1.0)

    # batch index: first half of nodes -> graph 0, second half -> graph 1
    batch_index = jnp.concatenate([jnp.zeros(N // 2, jnp.int32),
                                   jnp.ones(N - N // 2, jnp.int32)])

    params = make_trans_img_params(k_param, hidden_dims)

    fwd = jax.jit(functools.partial(trans_img_forward, num_graphs=B))
    outs = jax.block_until_ready(fwd(params, features, img_feat, adj, batch_index))

    h2, img2, c2, h4, img4, c4, hidden = outs
    assert h2.shape == (N, out_dim)
    assert img2.shape == (N, out_dim)
    assert c2.shape == (N, out_dim)
    assert h4.shape == (N, in_dim)
    assert img4.shape == (N, in_dim)
    assert c4.shape == (N, in_dim)
    assert hidden.shape == (B, out_dim)
    assert all(bool(jnp.all(jnp.isfinite(o))) for o in outs)

    print("KERNEL_OK")
</pallas_src>

<mosaic_0001>
module attributes {stable_mosaic.version = 11 : i64} {
  func.func @fused_trans_img_kernel(%arg0: memref<32x16xf32, #tpu.memory_space<vmem>>, %arg1: memref<32x8xf32, #tpu.memory_space<vmem>>, %arg2: memref<32x32xf32, #tpu.memory_space<vmem>>, %arg3: memref<32x1xf32, #tpu.memory_space<vmem>>, %arg4: memref<2x32xf32, #tpu.memory_space<vmem>>, %arg5: memref<2x1xf32, #tpu.memory_space<vmem>>, %arg6: memref<16x128xbf16, #tpu.memory_space<vmem>>, %arg7: memref<1x128xf32, #tpu.memory_space<vmem>>, %arg8: memref<32x64xbf16, #tpu.memory_space<vmem>>, %arg9: memref<1x64xf32, #tpu.memory_space<vmem>>, %arg10: memref<16x128xbf16, #tpu.memory_space<vmem>>, %arg11: memref<1x128xf32, #tpu.memory_space<vmem>>, %arg12: memref<32x64xbf16, #tpu.memory_space<vmem>>, %arg13: memref<1x64xf32, #tpu.memory_space<vmem>>, %arg14: memref<8x128xbf16, #tpu.memory_space<vmem>>, %arg15: memref<1x128xf32, #tpu.memory_space<vmem>>, %arg16: memref<32x64xbf16, #tpu.memory_space<vmem>>, %arg17: memref<1x64xf32, #tpu.memory_space<vmem>>, %arg18: memref<16x128xbf16, #tpu.memory_space<vmem>>, %arg19: memref<1x128xf32, #tpu.memory_space<vmem>>, %arg20: memref<32x64xbf16, #tpu.memory_space<vmem>>, %arg21: memref<1x64xf32, #tpu.memory_space<vmem>>, %arg22: memref<32x64xbf16, #tpu.memory_space<vmem>>, %arg23: memref<1x64xf32, #tpu.memory_space<vmem>>, %arg24: memref<16x64xbf16, #tpu.memory_space<vmem>>, %arg25: memref<1x64xf32, #tpu.memory_space<vmem>>, %arg26: memref<16x128xbf16, #tpu.memory_space<vmem>>, %arg27: memref<1x128xf32, #tpu.memory_space<vmem>>, %arg28: memref<32x64xbf16, #tpu.memory_space<vmem>>, %arg29: memref<1x64xf32, #tpu.memory_space<vmem>>, %arg30: memref<32x128xf32, #tpu.memory_space<vmem>>, %arg31: memref<2x16xf32, #tpu.memory_space<vmem>>) attributes {dimension_semantics = [], scalar_prefetch = 0 : i64, scratch_operands = 0 : i64, tpu.core_type = #tpu.core_type<tc>} {
    %c0 = arith.constant 0 : index
    %c0_0 = arith.constant 0 : index
    %0 = vector.load %arg2[%c0, %c0_0] : memref<32x32xf32, #tpu.memory_space<vmem>>, vector<32x32xf32>
    %c0_1 = arith.constant 0 : index
    %c0_2 = arith.constant 0 : index
    %1 = vector.load %arg3[%c0_1, %c0_2] : memref<32x1xf32, #tpu.memory_space<vmem>>, vector<32x1xf32>
    %c0_3 = arith.constant 0 : index
    %c0_4 = arith.constant 0 : index
    %2 = vector.load %arg0[%c0_3, %c0_4] : memref<32x16xf32, #tpu.memory_space<vmem>>, vector<32x16xf32>
    %c0_5 = arith.constant 0 : index
    %c0_6 = arith.constant 0 : index
    %3 = vector.load %arg1[%c0_5, %c0_6] : memref<32x8xf32, #tpu.memory_space<vmem>>, vector<32x8xf32>
    %c0_7 = arith.constant 0 : index
    %c0_8 = arith.constant 0 : index
    %4 = vector.load %arg6[%c0_7, %c0_8] : memref<16x128xbf16, #tpu.memory_space<vmem>>, vector<16x128xbf16>
    %c0_9 = arith.constant 0 : index
    %c0_10 = arith.constant 0 : index
    %5 = vector.load %arg7[%c0_9, %c0_10] : memref<1x128xf32, #tpu.memory_space<vmem>>, vector<1x128xf32>
    %6 = arith.truncf %2 : vector<32x16xf32> to vector<32x16xbf16>
    %cst = arith.constant dense<0.000000e+00> : vector<32x128xf32>
    %7 = tpu.matmul %6, %4, %cst {dimension_numbers = #tpu.dot_dimension_numbers<[1], [0], [0], [1], [0, 0, 1, 1], [], []>} : vector<32x16xbf16>, vector<16x128xbf16>, vector<32x128xf32> -> vector<32x128xf32>
    %8 = vector.broadcast %5 : vector<1x128xf32> to vector<32x128xf32>
    %9 = arith.addf %7, %8 : vector<32x128xf32>
    %10 = vector.extract_strided_slice %9 {offsets = [0, 0], sizes = [32, 32], strides = [1, 1]} : vector<32x128xf32> to vector<32x32xf32>
    %11 = vector.extract_strided_slice %9 {offsets = [0, 32], sizes = [32, 32], strides = [1, 1]} : vector<32x128xf32> to vector<32x32xf32>
    %12 = vector.extract_strided_slice %9 {offsets = [0, 64], sizes = [32, 32], strides = [1, 1]} : vector<32x128xf32> to vector<32x32xf32>
    %13 = vector.extract_strided_slice %9 {offsets = [0, 96], sizes = [32, 32], strides = [1, 1]} : vector<32x128xf32> to vector<32x32xf32>
    %14 = arith.truncf %10 : vector<32x32xf32> to vector<32x32xbf16>
    %15 = arith.truncf %11 : vector<32x32xf32> to vector<32x32xbf16>
    %cst_11 = arith.constant dense<0.000000e+00> : vector<32x32xf32>
    %16 = tpu.matmul %14, %15, %cst_11 {dimension_numbers = #tpu.dot_dimension_numbers<[1], [1], [0], [0], [0, 0, 1, 0], [], []>} : vector<32x32xbf16>, vector<32x32xbf16>, vector<32x32xf32> -> vector<32x32xf32>
    %17 = arith.addf %16, %0 : vector<32x32xf32>
    %cst_12 = arith.constant dense<0xFF800000> : vector<32xf32>
    %18 = vector.multi_reduction <maximumf>, %17, %cst_12 [1] : vector<32x32xf32> to vector<32xf32>
    %19 = vector.shape_cast %18 : vector<32xf32> to vector<32x1xf32>
    %20 = vector.broadcast %19 : vector<32x1xf32> to vector<32x32xf32>
    %21 = arith.subf %17, %20 : vector<32x32xf32>
    %22 = math.exp %21 : vector<32x32xf32>
    %cst_13 = arith.constant dense<0.000000e+00> : vector<32xf32>
    %23 = vector.multi_reduction <add>, %22, %cst_13 [1] : vector<32x32xf32> to vector<32xf32>
    %24 = vector.shape_cast %23 : vector<32xf32> to vector<32x1xf32>
    %25 = tpu.reciprocal %24 {approx = true} : vector<32x1xf32> -> vector<32x1xf32>
    %26 = vector.broadcast %25 : vector<32x1xf32> to vector<32x32xf32>
    %27 = arith.mulf %22, %26 : vector<32x32xf32>
    %28 = arith.truncf %27 : vector<32x32xf32> to vector<32x32xbf16>
    %29 = arith.truncf %12 : vector<32x32xf32> to vector<32x32xbf16>
    %cst_14 = arith.constant dense<0.000000e+00> : vector<32x32xf32>
    %30 = tpu.matmul %28, %29, %cst_14 {dimension_numbers = #tpu.dot_dimension_numbers<[1], [0], [0], [1], [0, 0, 1, 1], [], []>} : vector<32x32xbf16>, vector<32x32xbf16>, vector<32x32xf32> -> vector<32x32xf32>
    %31 = vector.broadcast %1 : vector<32x1xf32> to vector<32x32xf32>
    %32 = arith.mulf %31, %30 : vector<32x32xf32>
    %33 = arith.addf %32, %13 : vector<32x32xf32>
    %cst_15 = arith.constant 0.000000e+00 : f32
    %34 = vector.broadcast %cst_15 : f32 to vector<32x32xf32>
    %35 = arith.cmpf ogt, %33, %34 : vector<32x32xf32>
    %cst_16 = arith.constant 0.000000e+00 : f32
    %36 = vector.broadcast %cst_16 : f32 to vector<32x32xf32>
    %37 = arith.minimumf %33, %36 : vector<32x32xf32>
    %38 = math.exp %37 : vector<32x32xf32>
    %cst_17 = arith.constant 1.000000e+00 : f32
    %39 = vector.broadcast %cst_17 : f32 to vector<32x32xf32>
    %40 = arith.subf %38, %39 : vector<32x32xf32>
    %41 = arith.select %35, %33, %40 : vector<32x32xi1>, vector<32x32xf32>
    %c0_18 = arith.constant 0 : index
    %c0_19 = arith.constant 0 : index
    %42 = vector.load %arg8[%c0_18, %c0_19] : memref<32x64xbf16, #tpu.memory_space<vmem>>, vector<32x64xbf16>
    %c0_20 = arith.constant 0 : index
    %c0_21 = arith.constant 0 : index
    %43 = vector.load %arg9[%c0_20, %c0_21] : memref<1x64xf32, #tpu.memory_space<vmem>>, vector<1x64xf32>
    %44 = arith.truncf %41 : vector<32x32xf32> to vector<32x32xbf16>
    %cst_22 = arith.constant dense<0.000000e+00> : vector<32x64xf32>
    %45 = tpu.matmul %44, %42, %cst_22 {dimension_numbers = #tpu.dot_dimension_numbers<[1], [0], [0], [1], [0, 0, 1, 1], [], []>} : vector<32x32xbf16>, vector<32x64xbf16>, vector<32x64xf32> -> vector<32x64xf32>
    %46 = vector.broadcast %43 : vector<1x64xf32> to vector<32x64xf32>
    %47 = arith.addf %45, %46 : vector<32x64xf32>
    %48 = vector.extract_strided_slice %47 {offsets = [0, 0], sizes = [32, 16], strides = [1, 1]} : vector<32x64xf32> to vector<32x16xf32>
    %49 = vector.extract_strided_slice %47 {offsets = [0, 16], sizes = [32, 16], strides = [1, 1]} : vector<32x64xf32> to vector<32x16xf32>
    %50 = vector.extract_strided_slice %47 {offsets = [0, 32], sizes = [32, 16], strides = [1, 1]} : vector<32x64xf32> to vector<32x16xf32>
    %51 = vector.extract_strided_slice %47 {offsets = [0, 48], sizes = [32, 16], strides = [1, 1]} : vector<32x64xf32> to vector<32x16xf32>
    %52 = arith.truncf %48 : vector<32x16xf32> to vector<32x16xbf16>
    %53 = arith.truncf %49 : vector<32x16xf32> to vector<32x16xbf16>
    %cst_23 = arith.constant dense<0.000000e+00> : vector<32x32xf32>
    %54 = tpu.matmul %52, %53, %cst_23 {dimension_numbers = #tpu.dot_dimension_numbers<[1], [1], [0], [0], [0, 0, 1, 0], [], []>} : vector<32x16xbf16>, vector<32x16xbf16>, vector<32x32xf32> -> vector<32x32xf32>
    %55 = arith.addf %54, %0 : vector<32x32xf32>
    %cst_24 = arith.constant dense<0xFF800000> : vector<32xf32>
    %56 = vector.multi_reduction <maximumf>, %55, %cst_24 [1] : vector<32x32xf32> to vector<32xf32>
    %57 = vector.shape_cast %56 : vector<32xf32> to vector<32x1xf32>
    %58 = vector.broadcast %57 : vector<32x1xf32> to vector<32x32xf32>
    %59 = arith.subf %55, %58 : vector<32x32xf32>
    %60 = math.exp %59 : vector<32x32xf32>
    %cst_25 = arith.constant dense<0.000000e+00> : vector<32xf32>
    %61 = vector.multi_reduction <add>, %60, %cst_25 [1] : vector<32x32xf32> to vector<32xf32>
    %62 = vector.shape_cast %61 : vector<32xf32> to vector<32x1xf32>
    %63 = tpu.reciprocal %62 {approx = true} : vector<32x1xf32> -> vector<32x1xf32>
    %64 = vector.broadcast %63 : vector<32x1xf32> to vector<32x32xf32>
    %65 = arith.mulf %60, %64 : vector<32x32xf32>
    %66 = arith.truncf %65 : vector<32x32xf32> to vector<32x32xbf16>
    %67 = arith.truncf %50 : vector<32x16xf32> to vector<32x16xbf16>
    %cst_26 = arith.constant dense<0.000000e+00> : vector<32x16xf32>
    %68 = tpu.matmul %66, %67, %cst_26 {dimension_numbers = #tpu.dot_dimension_numbers<[1], [0], [0], [1], [0, 0, 1, 1], [], []>} : vector<32x32xbf16>, vector<32x16xbf16>, vector<32x16xf32> -> vector<32x16xf32>
    %69 = vector.broadcast %1 : vector<32x1xf32> to vector<32x16xf32>
    %70 = arith.mulf %69, %68 : vector<32x16xf32>
    %71 = arith.addf %70, %51 : vector<32x16xf32>
    %c0_27 = arith.constant 0 : index
    %c0_28 = arith.constant 0 : index
    %72 = vector.load %arg10[%c0_27, %c0_28] : memref<16x128xbf16, #tpu.memory_space<vmem>>, vector<16x128xbf16>
    %c0_29 = arith.constant 0 : index
    %c0_30 = arith.constant 0 : index
    %73 = vector.load %arg11[%c0_29, %c0_30] : memref<1x128xf32, #tpu.memory_space<vmem>>, vector<1x128xf32>
    %74 = arith.truncf %71 : vector<32x16xf32> to vector<32x16xbf16>
    %cst_31 = arith.constant dense<0.000000e+00> : vector<32x128xf32>
    %75 = tpu.matmul %74, %72, %cst_31 {dimension_numbers = #tpu.dot_dimension_numbers<[1], [0], [0], [1], [0, 0, 1, 1], [], []>} : vector<32x16xbf16>, vector<16x128xbf16>, vector<32x128xf32> -> vector<32x128xf32>
    %76 = vector.broadcast %73 : vector<1x128xf32> to vector<32x128xf32>
    %77 = arith.addf %75, %76 : vector<32x128xf32>
    %78 = vector.extract_strided_slice %77 {offsets = [0, 0], sizes = [32, 32], strides = [1, 1]} : vector<32x128xf32> to vector<32x32xf32>
    %79 = vector.extract_strided_slice %77 {offsets = [0, 32], sizes = [32, 32], strides = [1, 1]} : vector<32x128xf32> to vector<32x32xf32>
    %80 = vector.extract_strided_slice %77 {offsets = [0, 64], sizes = [32, 32], strides = [1, 1]} : vector<32x128xf32> to vector<32x32xf32>
    %81 = vector.extract_strided_slice %77 {offsets = [0, 96], sizes = [32, 32], strides = [1, 1]} : vector<32x128xf32> to vector<32x32xf32>
    %82 = arith.truncf %78 : vector<32x32xf32> to vector<32x32xbf16>
    %83 = arith.truncf %79 : vector<32x32xf32> to vector<32x32xbf16>
    %cst_32 = arith.constant dense<0.000000e+00> : vector<32x32xf32>
    %84 = tpu.matmul %82, %83, %cst_32 {dimension_numbers = #tpu.dot_dimension_numbers<[1], [1], [0], [0], [0, 0, 1, 0], [], []>} : vector<32x32xbf16>, vector<32x32xbf16>, vector<32x32xf32> -> vector<32x32xf32>
    %85 = arith.addf %84, %0 : vector<32x32xf32>
    %cst_33 = arith.constant dense<0xFF800000> : vector<32xf32>
    %86 = vector.multi_reduction <maximumf>, %85, %cst_33 [1] : vector<32x32xf32> to vector<32xf32>
    %87 = vector.shape_cast %86 : vector<32xf32> to vector<32x1xf32>
    %88 = vector.broadcast %87 : vector<32x1xf32> to vector<32x32xf32>
    %89 = arith.subf %85, %88 : vector<32x32xf32>
    %90 = math.exp %89 : vector<32x32xf32>
    %cst_34 = arith.constant dense<0.000000e+00> : vector<32xf32>
    %91 = vector.multi_reduction <add>, %90, %cst_34 [1] : vector<32x32xf32> to vector<32xf32>
    %92 = vector.shape_cast %91 : vector<32xf32> to vector<32x1xf32>
    %93 = tpu.reciprocal %92 {approx = true} : vector<32x1xf32> -> vector<32x1xf32>
    %94 = vector.broadcast %93 : vector<32x1xf32> to vector<32x32xf32>
    %95 = arith.mulf %90, %94 : vector<32x32xf32>
    %96 = arith.truncf %95 : vector<32x32xf32> to vector<32x32xbf16>
    %97 = arith.truncf %80 : vector<32x32xf32> to vector<32x32xbf16>
    %cst_35 = arith.constant dense<0.000000e+00> : vector<32x32xf32>
    %98 = tpu.matmul %96, %97, %cst_35 {dimension_numbers = #tpu.dot_dimension_numbers<[1], [0], [0], [1], [0, 0, 1, 1], [], []>} : vector<32x32xbf16>, vector<32x32xbf16>, vector<32x32xf32> -> vector<32x32xf32>
    %99 = vector.broadcast %1 : vector<32x1xf32> to vector<32x32xf32>
    %100 = arith.mulf %99, %98 : vector<32x32xf32>
    %101 = arith.addf %100, %81 : vector<32x32xf32>
    %cst_36 = arith.constant 0.000000e+00 : f32
    %102 = vector.broadcast %cst_36 : f32 to vector<32x32xf32>
    %103 = arith.cmpf ogt, %101, %102 : vector<32x32xf32>
    %cst_37 = arith.constant 0.000000e+00 : f32
    %104 = vector.broadcast %cst_37 : f32 to vector<32x32xf32>
    %105 = arith.minimumf %101, %104 : vector<32x32xf32>
    %106 = math.exp %105 : vector<32x32xf32>
    %cst_38 = arith.constant 1.000000e+00 : f32
    %107 = vector.broadcast %cst_38 : f32 to vector<32x32xf32>
    %108 = arith.subf %106, %107 : vector<32x32xf32>
    %109 = arith.select %103, %101, %108 : vector<32x32xi1>, vector<32x32xf32>
    %c0_39 = arith.constant 0 : index
    %c0_40 = arith.constant 0 : index
    %110 = vector.load %arg12[%c0_39, %c0_40] : memref<32x64xbf16, #tpu.memory_space<vmem>>, vector<32x64xbf16>
    %c0_41 = arith.constant 0 : index
    %c0_42 = arith.constant 0 : index
    %111 = vector.load %arg13[%c0_41, %c0_42] : memref<1x64xf32, #tpu.memory_space<vmem>>, vector<1x64xf32>
    %112 = arith.truncf %109 : vector<32x32xf32> to vector<32x32xbf16>
    %cst_43 = arith.constant dense<0.000000e+00> : vector<32x64xf32>
    %113 = tpu.matmul %112, %110, %cst_43 {dimension_numbers = #tpu.dot_dimension_numbers<[1], [0], [0], [1], [0, 0, 1, 1], [], []>} : vector<32x32xbf16>, vector<32x64xbf16>, vector<32x64xf32> -> vector<32x64xf32>
    %114 = vector.broadcast %111 : vector<1x64xf32> to vector<32x64xf32>
    %115 = arith.addf %113, %114 : vector<32x64xf32>
    %116 = vector.extract_strided_slice %115 {offsets = [0, 0], sizes = [32, 16], strides = [1, 1]} : vector<32x64xf32> to vector<32x16xf32>
    %117 = vector.extract_strided_slice %115 {offsets = [0, 16], sizes = [32, 16], strides = [1, 1]} : vector<32x64xf32> to vector<32x16xf32>
    %118 = vector.extract_strided_slice %115 {offsets = [0, 32], sizes = [32, 16], strides = [1, 1]} : vector<32x64xf32> to vector<32x16xf32>
    %119 = vector.extract_strided_slice %115 {offsets = [0, 48], sizes = [32, 16], strides = [1, 1]} : vector<32x64xf32> to vector<32x16xf32>
    %120 = arith.truncf %116 : vector<32x16xf32> to vector<32x16xbf16>
    %121 = arith.truncf %117 : vector<32x16xf32> to vector<32x16xbf16>
    %cst_44 = arith.constant dense<0.000000e+00> : vector<32x32xf32>
    %122 = tpu.matmul %120, %121, %cst_44 {dimension_numbers = #tpu.dot_dimension_numbers<[1], [1], [0], [0], [0, 0, 1, 0], [], []>} : vector<32x16xbf16>, vector<32x16xbf16>, vector<32x32xf32> -> vector<32x32xf32>
    %123 = arith.addf %122, %0 : vector<32x32xf32>
    %cst_45 = arith.constant dense<0xFF800000> : vector<32xf32>
    %124 = vector.multi_reduction <maximumf>, %123, %cst_45 [1] : vector<32x32xf32> to vector<32xf32>
    %125 = vector.shape_cast %124 : vector<32xf32> to vector<32x1xf32>
    %126 = vector.broadcast %125 : vector<32x1xf32> to vector<32x32xf32>
    %127 = arith.subf %123, %126 : vector<32x32xf32>
    %128 = math.exp %127 : vector<32x32xf32>
    %cst_46 = arith.constant dense<0.000000e+00> : vector<32xf32>
    %129 = vector.multi_reduction <add>, %128, %cst_46 [1] : vector<32x32xf32> to vector<32xf32>
    %130 = vector.shape_cast %129 : vector<32xf32> to vector<32x1xf32>
    %131 = tpu.reciprocal %130 {approx = true} : vector<32x1xf32> -> vector<32x1xf32>
    %132 = vector.broadcast %131 : vector<32x1xf32> to vector<32x32xf32>
    %133 = arith.mulf %128, %132 : vector<32x32xf32>
    %134 = arith.truncf %133 : vector<32x32xf32> to vector<32x32xbf16>
    %135 = arith.truncf %118 : vector<32x16xf32> to vector<32x16xbf16>
    %cst_47 = arith.constant dense<0.000000e+00> : vector<32x16xf32>
    %136 = tpu.matmul %134, %135, %cst_47 {dimension_numbers = #tpu.dot_dimension_numbers<[1], [0], [0], [1], [0, 0, 1, 1], [], []>} : vector<32x32xbf16>, vector<32x16xbf16>, vector<32x16xf32> -> vector<32x16xf32>
    %137 = vector.broadcast %1 : vector<32x1xf32> to vector<32x16xf32>
    %138 = arith.mulf %137, %136 : vector<32x16xf32>
    %139 = arith.addf %138, %119 : vector<32x16xf32>
    %c0_48 = arith.constant 0 : index
    %c0_49 = arith.constant 0 : index
    %140 = vector.load %arg14[%c0_48, %c0_49] : memref<8x128xbf16, #tpu.memory_space<vmem>>, vector<8x128xbf16>
    %c0_50 = arith.constant 0 : index
    %c0_51 = arith.constant 0 : index
    %141 = vector.load %arg15[%c0_50, %c0_51] : memref<1x128xf32, #tpu.memory_space<vmem>>, vector<1x128xf32>
    %142 = arith.truncf %3 : vector<32x8xf32> to vector<32x8xbf16>
    %cst_52 = arith.constant dense<0.000000e+00> : vector<32x128xf32>
    %143 = tpu.matmul %142, %140, %cst_52 {dimension_numbers = #tpu.dot_dimension_numbers<[1], [0], [0], [1], [0, 0, 1, 1], [], []>} : vector<32x8xbf16>, vector<8x128xbf16>, vector<32x128xf32> -> vector<32x128xf32>
    %144 = vector.broadcast %141 : vector<1x128xf32> to vector<32x128xf32>
    %145 = arith.addf %143, %144 : vector<32x128xf32>
    %146 = vector.extract_strided_slice %145 {offsets = [0, 0], sizes = [32, 32], strides = [1, 1]} : vector<32x128xf32> to vector<32x32xf32>
    %147 = vector.extract_strided_slice %145 {offsets = [0, 32], sizes = [32, 32], strides = [1, 1]} : vector<32x128xf32> to vector<32x32xf32>
    %148 = vector.extract_strided_slice %145 {offsets = [0, 64], sizes = [32, 32], strides = [1, 1]} : vector<32x128xf32> to vector<32x32xf32>
    %149 = vector.extract_strided_slice %145 {offsets = [0, 96], sizes = [32, 32], strides = [1, 1]} : vector<32x128xf32> to vector<32x32xf32>
    %150 = arith.truncf %146 : vector<32x32xf32> to vector<32x32xbf16>
    %151 = arith.truncf %147 : vector<32x32xf32> to vector<32x32xbf16>
    %cst_53 = arith.constant dense<0.000000e+00> : vector<32x32xf32>
    %152 = tpu.matmul %150, %151, %cst_53 {dimension_numbers = #tpu.dot_dimension_numbers<[1], [1], [0], [0], [0, 0, 1, 0], [], []>} : vector<32x32xbf16>, vector<32x32xbf16>, vector<32x32xf32> -> vector<32x32xf32>
    %153 = arith.addf %152, %0 : vector<32x32xf32>
    %cst_54 = arith.constant dense<0xFF800000> : vector<32xf32>
    %154 = vector.multi_reduction <maximumf>, %153, %cst_54 [1] : vector<32x32xf32> to vector<32xf32>
    %155 = vector.shape_cast %154 : vector<32xf32> to vector<32x1xf32>
    %156 = vector.broadcast %155 : vector<32x1xf32> to vector<32x32xf32>
    %157 = arith.subf %153, %156 : vector<32x32xf32>
    %158 = math.exp %157 : vector<32x32xf32>
    %cst_55 = arith.constant dense<0.000000e+00> : vector<32xf32>
    %159 = vector.multi_reduction <add>, %158, %cst_55 [1] : vector<32x32xf32> to vector<32xf32>
    %160 = vector.shape_cast %159 : vector<32xf32> to vector<32x1xf32>
    %161 = tpu.reciprocal %160 {approx = true} : vector<32x1xf32> -> vector<32x1xf32>
    %162 = vector.broadcast %161 : vector<32x1xf32> to vector<32x32xf32>
    %163 = arith.mulf %158, %162 : vector<32x32xf32>
    %164 = arith.truncf %163 : vector<32x32xf32> to vector<32x32xbf16>
    %165 = arith.truncf %148 : vector<32x32xf32> to vector<32x32xbf16>
    %cst_56 = arith.constant dense<0.000000e+00> : vector<32x32xf32>
    %166 = tpu.matmul %164, %165, %cst_56 {dimension_numbers = #tpu.dot_dimension_numbers<[1], [0], [0], [1], [0, 0, 1, 1], [], []>} : vector<32x32xbf16>, vector<32x32xbf16>, vector<32x32xf32> -> vector<32x32xf32>
    %167 = vector.broadcast %1 : vector<32x1xf32> to vector<32x32xf32>
    %168 = arith.mulf %167, %166 : vector<32x32xf32>
    %169 = arith.addf %168, %149 : vector<32x32xf32>
    %cst_57 = arith.constant 0.000000e+00 : f32
    %170 = vector.broadcast %cst_57 : f32 to vector<32x32xf32>
    %171 = arith.cmpf ogt, %169, %170 : vector<32x32xf32>
    %cst_58 = arith.constant 0.000000e+00 : f32
    %172 = vector.broadcast %cst_58 : f32 to vector<32x32xf32>
    %173 = arith.minimumf %169, %172 : vector<32x32xf32>
    %174 = math.exp %173 : vector<32x32xf32>
    %cst_59 = arith.constant 1.000000e+00 : f32
    %175 = vector.broadcast %cst_59 : f32 to vector<32x32xf32>
    %176 = arith.subf %174, %175 : vector<32x32xf32>
    %177 = arith.select %171, %169, %176 : vector<32x32xi1>, vector<32x32xf32>
    %c0_60 = arith.constant 0 : index
    %c0_61 = arith.constant 0 : index
    %178 = vector.load %arg16[%c0_60, %c0_61] : memref<32x64xbf16, #tpu.memory_space<vmem>>, vector<32x64xbf16>
    %c0_62 = arith.constant 0 : index
    %c0_63 = arith.constant 0 : index
    %179 = vector.load %arg17[%c0_62, %c0_63] : memref<1x64xf32, #tpu.memory_space<vmem>>, vector<1x64xf32>
    %180 = arith.truncf %177 : vector<32x32xf32> to vector<32x32xbf16>
    %cst_64 = arith.constant dense<0.000000e+00> : vector<32x64xf32>
    %181 = tpu.matmul %180, %178, %cst_64 {dimension_numbers = #tpu.dot_dimension_numbers<[1], [0], [0], [1], [0, 0, 1, 1], [], []>} : vector<32x32xbf16>, vector<32x64xbf16>, vector<32x64xf32> -> vector<32x64xf32>
    %182 = vector.broadcast %179 : vector<1x64xf32> to vector<32x64xf32>
    %183 = arith.addf %181, %182 : vector<32x64xf32>
    %184 = vector.extract_strided_slice %183 {offsets = [0, 0], sizes = [32, 16], strides = [1, 1]} : vector<32x64xf32> to vector<32x16xf32>
    %185 = vector.extract_strided_slice %183 {offsets = [0, 16], sizes = [32, 16], strides = [1, 1]} : vector<32x64xf32> to vector<32x16xf32>
    %186 = vector.extract_strided_slice %183 {offsets = [0, 32], sizes = [32, 16], strides = [1, 1]} : vector<32x64xf32> to vector<32x16xf32>
    %187 = vector.extract_strided_slice %183 {offsets = [0, 48], sizes = [32, 16], strides = [1, 1]} : vector<32x64xf32> to vector<32x16xf32>
    %188 = arith.truncf %184 : vector<32x16xf32> to vector<32x16xbf16>
    %189 = arith.truncf %185 : vector<32x16xf32> to vector<32x16xbf16>
    %cst_65 = arith.constant dense<0.000000e+00> : vector<32x32xf32>
    %190 = tpu.matmul %188, %189, %cst_65 {dimension_numbers = #tpu.dot_dimension_numbers<[1], [1], [0], [0], [0, 0, 1, 0], [], []>} : vector<32x16xbf16>, vector<32x16xbf16>, vector<32x32xf32> -> vector<32x32xf32>
    %191 = arith.addf %190, %0 : vector<32x32xf32>
    %cst_66 = arith.constant dense<0xFF800000> : vector<32xf32>
    %192 = vector.multi_reduction <maximumf>, %191, %cst_66 [1] : vector<32x32xf32> to vector<32xf32>
    %193 = vector.shape_cast %192 : vector<32xf32> to vector<32x1xf32>
    %194 = vector.broadcast %193 : vector<32x1xf32> to vector<32x32xf32>
    %195 = arith.subf %191, %194 : vector<32x32xf32>
    %196 = math.exp %195 : vector<32x32xf32>
    %cst_67 = arith.constant dense<0.000000e+00> : vector<32xf32>
    %197 = vector.multi_reduction <add>, %196, %cst_67 [1] : vector<32x32xf32> to vector<32xf32>
    %198 = vector.shape_cast %197 : vector<32xf32> to vector<32x1xf32>
    %199 = tpu.reciprocal %198 {approx = true} : vector<32x1xf32> -> vector<32x1xf32>
    %200 = vector.broadcast %199 : vector<32x1xf32> to vector<32x32xf32>
    %201 = arith.mulf %196, %200 : vector<32x32xf32>
    %202 = arith.truncf %201 : vector<32x32xf32> to vector<32x32xbf16>
    %203 = arith.truncf %186 : vector<32x16xf32> to vector<32x16xbf16>
    %cst_68 = arith.constant dense<0.000000e+00> : vector<32x16xf32>
    %204 = tpu.matmul %202, %203, %cst_68 {dimension_numbers = #tpu.dot_dimension_numbers<[1], [0], [0], [1], [0, 0, 1, 1], [], []>} : vector<32x32xbf16>, vector<32x16xbf16>, vector<32x16xf32> -> vector<32x16xf32>
    %205 = vector.broadcast %1 : vector<32x1xf32> to vector<32x16xf32>
    %206 = arith.mulf %205, %204 : vector<32x16xf32>
    %207 = arith.addf %206, %187 : vector<32x16xf32>
    %c0_69 = arith.constant 0 : index
    %c0_70 = arith.constant 0 : index
    %208 = vector.load %arg18[%c0_69, %c0_70] : memref<16x128xbf16, #tpu.memory_space<vmem>>, vector<16x128xbf16>
    %c0_71 = arith.constant 0 : index
    %c0_72 = arith.constant 0 : index
    %209 = vector.load %arg19[%c0_71, %c0_72] : memref<1x128xf32, #tpu.memory_space<vmem>>, vector<1x128xf32>
    %210 = arith.truncf %207 : vector<32x16xf32> to vector<32x16xbf16>
    %cst_73 = arith.constant dense<0.000000e+00> : vector<32x128xf32>
    %211 = tpu.matmul %210, %208, %cst_73 {dimension_numbers = #tpu.dot_dimension_numbers<[1], [0], [0], [1], [0, 0, 1, 1], [], []>} : vector<32x16xbf16>, vector<16x128xbf16>, vector<32x128xf32> -> vector<32x128xf32>
    %212 = vector.broadcast %209 : vector<1x128xf32> to vector<32x128xf32>
    %213 = arith.addf %211, %212 : vector<32x128xf32>
    %214 = vector.extract_strided_slice %213 {offsets = [0, 0], sizes = [32, 32], strides = [1, 1]} : vector<32x128xf32> to vector<32x32xf32>
    %215 = vector.extract_strided_slice %213 {offsets = [0, 32], sizes = [32, 32], strides = [1, 1]} : vector<32x128xf32> to vector<32x32xf32>
    %216 = vector.extract_strided_slice %213 {offsets = [0, 64], sizes = [32, 32], strides = [1, 1]} : vector<32x128xf32> to vector<32x32xf32>
    %217 = vector.extract_strided_slice %213 {offsets = [0, 96], sizes = [32, 32], strides = [1, 1]} : vector<32x128xf32> to vector<32x32xf32>
    %218 = arith.truncf %214 : vector<32x32xf32> to vector<32x32xbf16>
    %219 = arith.truncf %215 : vector<32x32xf32> to vector<32x32xbf16>
    %cst_74 = arith.constant dense<0.000000e+00> : vector<32x32xf32>
    %220 = tpu.matmul %218, %219, %cst_74 {dimension_numbers = #tpu.dot_dimension_numbers<[1], [1], [0], [0], [0, 0, 1, 0], [], []>} : vector<32x32xbf16>, vector<32x32xbf16>, vector<32x32xf32> -> vector<32x32xf32>
    %221 = arith.addf %220, %0 : vector<32x32xf32>
    %cst_75 = arith.constant dense<0xFF800000> : vector<32xf32>
    %222 = vector.multi_reduction <maximumf>, %221, %cst_75 [1] : vector<32x32xf32> to vector<32xf32>
    %223 = vector.shape_cast %222 : vector<32xf32> to vector<32x1xf32>
    %224 = vector.broadcast %223 : vector<32x1xf32> to vector<32x32xf32>
    %225 = arith.subf %221, %224 : vector<32x32xf32>
    %226 = math.exp %225 : vector<32x32xf32>
    %cst_76 = arith.constant dense<0.000000e+00> : vector<32xf32>
    %227 = vector.multi_reduction <add>, %226, %cst_76 [1] : vector<32x32xf32> to vector<32xf32>
    %228 = vector.shape_cast %227 : vector<32xf32> to vector<32x1xf32>
    %229 = tpu.reciprocal %228 {approx = true} : vector<32x1xf32> -> vector<32x1xf32>
    %230 = vector.broadcast %229 : vector<32x1xf32> to vector<32x32xf32>
    %231 = arith.mulf %226, %230 : vector<32x32xf32>
    %232 = arith.truncf %231 : vector<32x32xf32> to vector<32x32xbf16>
    %233 = arith.truncf %216 : vector<32x32xf32> to vector<32x32xbf16>
    %cst_77 = arith.constant dense<0.000000e+00> : vector<32x32xf32>
    %234 = tpu.matmul %232, %233, %cst_77 {dimension_numbers = #tpu.dot_dimension_numbers<[1], [0], [0], [1], [0, 0, 1, 1], [], []>} : vector<32x32xbf16>, vector<32x32xbf16>, vector<32x32xf32> -> vector<32x32xf32>
    %235 = vector.broadcast %1 : vector<32x1xf32> to vector<32x32xf32>
    %236 = arith.mulf %235, %234 : vector<32x32xf32>
    %237 = arith.addf %236, %217 : vector<32x32xf32>
    %cst_78 = arith.constant 0.000000e+00 : f32
    %238 = vector.broadcast %cst_78 : f32 to vector<32x32xf32>
    %239 = arith.cmpf ogt, %237, %238 : vector<32x32xf32>
    %cst_79 = arith.constant 0.000000e+00 : f32
    %240 = vector.broadcast %cst_79 : f32 to vector<32x32xf32>
    %241 = arith.minimumf %237, %240 : vector<32x32xf32>
    %242 = math.exp %241 : vector<32x32xf32>
    %cst_80 = arith.constant 1.000000e+00 : f32
    %243 = vector.broadcast %cst_80 : f32 to vector<32x32xf32>
    %244 = arith.subf %242, %243 : vector<32x32xf32>
    %245 = arith.select %239, %237, %244 : vector<32x32xi1>, vector<32x32xf32>
    %c0_81 = arith.constant 0 : index
    %c0_82 = arith.constant 0 : index
    %246 = vector.load %arg20[%c0_81, %c0_82] : memref<32x64xbf16, #tpu.memory_space<vmem>>, vector<32x64xbf16>
    %c0_83 = arith.constant 0 : index
    %c0_84 = arith.constant 0 : index
    %247 = vector.load %arg21[%c0_83, %c0_84] : memref<1x64xf32, #tpu.memory_space<vmem>>, vector<1x64xf32>
    %248 = arith.truncf %245 : vector<32x32xf32> to vector<32x32xbf16>
    %cst_85 = arith.constant dense<0.000000e+00> : vector<32x64xf32>
    %249 = tpu.matmul %248, %246, %cst_85 {dimension_numbers = #tpu.dot_dimension_numbers<[1], [0], [0], [1], [0, 0, 1, 1], [], []>} : vector<32x32xbf16>, vector<32x64xbf16>, vector<32x64xf32> -> vector<32x64xf32>
    %250 = vector.broadcast %247 : vector<1x64xf32> to vector<32x64xf32>
    %251 = arith.addf %249, %250 : vector<32x64xf32>
    %252 = vector.extract_strided_slice %251 {offsets = [0, 0], sizes = [32, 16], strides = [1, 1]} : vector<32x64xf32> to vector<32x16xf32>
    %253 = vector.extract_strided_slice %251 {offsets = [0, 16], sizes = [32, 16], strides = [1, 1]} : vector<32x64xf32> to vector<32x16xf32>
    %254 = vector.extract_strided_slice %251 {offsets = [0, 32], sizes = [32, 16], strides = [1, 1]} : vector<32x64xf32> to vector<32x16xf32>
    %255 = vector.extract_strided_slice %251 {offsets = [0, 48], sizes = [32, 16], strides = [1, 1]} : vector<32x64xf32> to vector<32x16xf32>
    %256 = arith.truncf %252 : vector<32x16xf32> to vector<32x16xbf16>
    %257 = arith.truncf %253 : vector<32x16xf32> to vector<32x16xbf16>
    %cst_86 = arith.constant dense<0.000000e+00> : vector<32x32xf32>
    %258 = tpu.matmul %256, %257, %cst_86 {dimension_numbers = #tpu.dot_dimension_numbers<[1], [1], [0], [0], [0, 0, 1, 0], [], []>} : vector<32x16xbf16>, vector<32x16xbf16>, vector<32x32xf32> -> vector<32x32xf32>
    %259 = arith.addf %258, %0 : vector<32x32xf32>
    %cst_87 = arith.constant dense<0xFF800000> : vector<32xf32>
    %260 = vector.multi_reduction <maximumf>, %259, %cst_87 [1] : vector<32x32xf32> to vector<32xf32>
    %261 = vector.shape_cast %260 : vector<32xf32> to vector<32x1xf32>
    %262 = vector.broadcast %261 : vector<32x1xf32> to vector<32x32xf32>
    %263 = arith.subf %259, %262 : vector<32x32xf32>
    %264 = math.exp %263 : vector<32x32xf32>
    %cst_88 = arith.constant dense<0.000000e+00> : vector<32xf32>
    %265 = vector.multi_reduction <add>, %264, %cst_88 [1] : vector<32x32xf32> to vector<32xf32>
    %266 = vector.shape_cast %265 : vector<32xf32> to vector<32x1xf32>
    %267 = tpu.reciprocal %266 {approx = true} : vector<32x1xf32> -> vector<32x1xf32>
    %268 = vector.broadcast %267 : vector<32x1xf32> to vector<32x32xf32>
    %269 = arith.mulf %264, %268 : vector<32x32xf32>
    %270 = arith.truncf %269 : vector<32x32xf32> to vector<32x32xbf16>
    %271 = arith.truncf %254 : vector<32x16xf32> to vector<32x16xbf16>
    %cst_89 = arith.constant dense<0.000000e+00> : vector<32x16xf32>
    %272 = tpu.matmul %270, %271, %cst_89 {dimension_numbers = #tpu.dot_dimension_numbers<[1], [0], [0], [1], [0, 0, 1, 1], [], []>} : vector<32x32xbf16>, vector<32x16xbf16>, vector<32x16xf32> -> vector<32x16xf32>
    %273 = vector.broadcast %1 : vector<32x1xf32> to vector<32x16xf32>
    %274 = arith.mulf %273, %272 : vector<32x16xf32>
    %275 = arith.addf %274, %255 : vector<32x16xf32>
    %276 = tpu.concatenate %71, %207 in 1 : vector<32x16xf32>, vector<32x16xf32> -> vector<32x32xf32>
    %c0_90 = arith.constant 0 : index
    %c0_91 = arith.constant 0 : index
    %277 = vector.load %arg22[%c0_90, %c0_91] : memref<32x64xbf16, #tpu.memory_space<vmem>>, vector<32x64xbf16>
    %c0_92 = arith.constant 0 : index
    %c0_93 = arith.constant 0 : index
    %278 = vector.load %arg23[%c0_92, %c0_93] : memref<1x64xf32, #tpu.memory_space<vmem>>, vector<1x64xf32>
    %279 = arith.truncf %276 : vector<32x32xf32> to vector<32x32xbf16>
    %cst_94 = arith.constant dense<0.000000e+00> : vector<32x64xf32>
    %280 = tpu.matmul %279, %277, %cst_94 {dimension_numbers = #tpu.dot_dimension_numbers<[1], [0], [0], [1], [0, 0, 1, 1], [], []>} : vector<32x32xbf16>, vector<32x64xbf16>, vector<32x64xf32> -> vector<32x64xf32>
    %281 = vector.broadcast %278 : vector<1x64xf32> to vector<32x64xf32>
    %282 = arith.addf %280, %281 : vector<32x64xf32>
    %283 = vector.extract_strided_slice %282 {offsets = [0, 0], sizes = [32, 16], strides = [1, 1]} : vector<32x64xf32> to vector<32x16xf32>
    %284 = vector.extract_strided_slice %282 {offsets = [0, 16], sizes = [32, 16], strides = [1, 1]} : vector<32x64xf32> to vector<32x16xf32>
    %285 = vector.extract_strided_slice %282 {offsets = [0, 32], sizes = [32, 16], strides = [1, 1]} : vector<32x64xf32> to vector<32x16xf32>
    %286 = vector.extract_strided_slice %282 {offsets = [0, 48], sizes = [32, 16], strides = [1, 1]} : vector<32x64xf32> to vector<32x16xf32>
    %287 = arith.truncf %283 : vector<32x16xf32> to vector<32x16xbf16>
    %288 = arith.truncf %284 : vector<32x16xf32> to vector<32x16xbf16>
    %cst_95 = arith.constant dense<0.000000e+00> : vector<32x32xf32>
    %289 = tpu.matmul %287, %288, %cst_95 {dimension_numbers = #tpu.dot_dimension_numbers<[1], [1], [0], [0], [0, 0, 1, 0], [], []>} : vector<32x16xbf16>, vector<32x16xbf16>, vector<32x32xf32> -> vector<32x32xf32>
    %290 = arith.addf %289, %0 : vector<32x32xf32>
    %cst_96 = arith.constant dense<0xFF800000> : vector<32xf32>
    %291 = vector.multi_reduction <maximumf>, %290, %cst_96 [1] : vector<32x32xf32> to vector<32xf32>
    %292 = vector.shape_cast %291 : vector<32xf32> to vector<32x1xf32>
    %293 = vector.broadcast %292 : vector<32x1xf32> to vector<32x32xf32>
    %294 = arith.subf %290, %293 : vector<32x32xf32>
    %295 = math.exp %294 : vector<32x32xf32>
    %cst_97 = arith.constant dense<0.000000e+00> : vector<32xf32>
    %296 = vector.multi_reduction <add>, %295, %cst_97 [1] : vector<32x32xf32> to vector<32xf32>
    %297 = vector.shape_cast %296 : vector<32xf32> to vector<32x1xf32>
    %298 = tpu.reciprocal %297 {approx = true} : vector<32x1xf32> -> vector<32x1xf32>
    %299 = vector.broadcast %298 : vector<32x1xf32> to vector<32x32xf32>
    %300 = arith.mulf %295, %299 : vector<32x32xf32>
    %301 = arith.truncf %300 : vector<32x32xf32> to vector<32x32xbf16>
    %302 = arith.truncf %285 : vector<32x16xf32> to vector<32x16xbf16>
    %cst_98 = arith.constant dense<0.000000e+00> : vector<32x16xf32>
    %303 = tpu.matmul %301, %302, %cst_98 {dimension_numbers = #tpu.dot_dimension_numbers<[1], [0], [0], [1], [0, 0, 1, 1], [], []>} : vector<32x32xbf16>, vector<32x16xbf16>, vector<32x16xf32> -> vector<32x16xf32>
    %304 = vector.broadcast %1 : vector<32x1xf32> to vector<32x16xf32>
    %305 = arith.mulf %304, %303 : vector<32x16xf32>
    %306 = arith.addf %305, %286 : vector<32x16xf32>
    %cst_99 = arith.constant 0.000000e+00 : f32
    %307 = vector.broadcast %cst_99 : f32 to vector<32x16xf32>
    %308 = arith.cmpf ogt, %306, %307 : vector<32x16xf32>
    %cst_100 = arith.constant 0.000000e+00 : f32
    %309 = vector.broadcast %cst_100 : f32 to vector<32x16xf32>
    %310 = arith.minimumf %306, %309 : vector<32x16xf32>
    %311 = math.exp %310 : vector<32x16xf32>
    %cst_101 = arith.constant 1.000000e+00 : f32
    %312 = vector.broadcast %cst_101 : f32 to vector<32x16xf32>
    %313 = arith.subf %311, %312 : vector<32x16xf32>
    %314 = arith.select %308, %306, %313 : vector<32x16xi1>, vector<32x16xf32>
    %c0_102 = arith.constant 0 : index
    %c0_103 = arith.constant 0 : index
    %315 = vector.load %arg24[%c0_102, %c0_103] : memref<16x64xbf16, #tpu.memory_space<vmem>>, vector<16x64xbf16>
    %c0_104 = arith.constant 0 : index
    %c0_105 = arith.constant 0 : index
    %316 = vector.load %arg25[%c0_104, %c0_105] : memref<1x64xf32, #tpu.memory_space<vmem>>, vector<1x64xf32>
    %317 = arith.truncf %314 : vector<32x16xf32> to vector<32x16xbf16>
    %cst_106 = arith.constant dense<0.000000e+00> : vector<32x64xf32>
    %318 = tpu.matmul %317, %315, %cst_106 {dimension_numbers = #tpu.dot_dimension_numbers<[1], [0], [0], [1], [0, 0, 1, 1], [], []>} : vector<32x16xbf16>, vector<16x64xbf16>, vector<32x64xf32> -> vector<32x64xf32>
    %319 = vector.broadcast %316 : vector<1x64xf32> to vector<32x64xf32>
    %320 = arith.addf %318, %319 : vector<32x64xf32>
    %321 = vector.extract_strided_slice %320 {offsets = [0, 0], sizes = [32, 16], strides = [1, 1]} : vector<32x64xf32> to vector<32x16xf32>
    %322 = vector.extract_strided_slice %320 {offsets = [0, 16], sizes = [32, 16], strides = [1, 1]} : vector<32x64xf32> to vector<32x16xf32>
    %323 = vector.extract_strided_slice %320 {offsets = [0, 32], sizes = [32, 16], strides = [1, 1]} : vector<32x64xf32> to vector<32x16xf32>
    %324 = vector.extract_strided_slice %320 {offsets = [0, 48], sizes = [32, 16], strides = [1, 1]} : vector<32x64xf32> to vector<32x16xf32>
    %325 = arith.truncf %321 : vector<32x16xf32> to vector<32x16xbf16>
    %326 = arith.truncf %322 : vector<32x16xf32> to vector<32x16xbf16>
    %cst_107 = arith.constant dense<0.000000e+00> : vector<32x32xf32>
    %327 = tpu.matmul %325, %326, %cst_107 {dimension_numbers = #tpu.dot_dimension_numbers<[1], [1], [0], [0], [0, 0, 1, 0], [], []>} : vector<32x16xbf16>, vector<32x16xbf16>, vector<32x32xf32> -> vector<32x32xf32>
    %328 = arith.addf %327, %0 : vector<32x32xf32>
    %cst_108 = arith.constant dense<0xFF800000> : vector<32xf32>
    %329 = vector.multi_reduction <maximumf>, %328, %cst_108 [1] : vector<32x32xf32> to vector<32xf32>
    %330 = vector.shape_cast %329 : vector<32xf32> to vector<32x1xf32>
    %331 = vector.broadcast %330 : vector<32x1xf32> to vector<32x32xf32>
    %332 = arith.subf %328, %331 : vector<32x32xf32>
    %333 = math.exp %332 : vector<32x32xf32>
    %cst_109 = arith.constant dense<0.000000e+00> : vector<32xf32>
    %334 = vector.multi_reduction <add>, %333, %cst_109 [1] : vector<32x32xf32> to vector<32xf32>
    %335 = vector.shape_cast %334 : vector<32xf32> to vector<32x1xf32>
    %336 = tpu.reciprocal %335 {approx = true} : vector<32x1xf32> -> vector<32x1xf32>
    %337 = vector.broadcast %336 : vector<32x1xf32> to vector<32x32xf32>
    %338 = arith.mulf %333, %337 : vector<32x32xf32>
    %339 = arith.truncf %338 : vector<32x32xf32> to vector<32x32xbf16>
    %340 = arith.truncf %323 : vector<32x16xf32> to vector<32x16xbf16>
    %cst_110 = arith.constant dense<0.000000e+00> : vector<32x16xf32>
    %341 = tpu.matmul %339, %340, %cst_110 {dimension_numbers = #tpu.dot_dimension_numbers<[1], [0], [0], [1], [0, 0, 1, 1], [], []>} : vector<32x32xbf16>, vector<32x16xbf16>, vector<32x16xf32> -> vector<32x16xf32>
    %342 = vector.broadcast %1 : vector<32x1xf32> to vector<32x16xf32>
    %343 = arith.mulf %342, %341 : vector<32x16xf32>
    %344 = arith.addf %343, %324 : vector<32x16xf32>
    %c0_111 = arith.constant 0 : index
    %c0_112 = arith.constant 0 : index
    %345 = vector.load %arg26[%c0_111, %c0_112] : memref<16x128xbf16, #tpu.memory_space<vmem>>, vector<16x128xbf16>
    %c0_113 = arith.constant 0 : index
    %c0_114 = arith.constant 0 : index
    %346 = vector.load %arg27[%c0_113, %c0_114] : memref<1x128xf32, #tpu.memory_space<vmem>>, vector<1x128xf32>
    %347 = arith.truncf %344 : vector<32x16xf32> to vector<32x16xbf16>
    %cst_115 = arith.constant dense<0.000000e+00> : vector<32x128xf32>
    %348 = tpu.matmul %347, %345, %cst_115 {dimension_numbers = #tpu.dot_dimension_numbers<[1], [0], [0], [1], [0, 0, 1, 1], [], []>} : vector<32x16xbf16>, vector<16x128xbf16>, vector<32x128xf32> -> vector<32x128xf32>
    %349 = vector.broadcast %346 : vector<1x128xf32> to vector<32x128xf32>
    %350 = arith.addf %348, %349 : vector<32x128xf32>
    %351 = vector.extract_strided_slice %350 {offsets = [0, 0], sizes = [32, 32], strides = [1, 1]} : vector<32x128xf32> to vector<32x32xf32>
    %352 = vector.extract_strided_slice %350 {offsets = [0, 32], sizes = [32, 32], strides = [1, 1]} : vector<32x128xf32> to vector<32x32xf32>
    %353 = vector.extract_strided_slice %350 {offsets = [0, 64], sizes = [32, 32], strides = [1, 1]} : vector<32x128xf32> to vector<32x32xf32>
    %354 = vector.extract_strided_slice %350 {offsets = [0, 96], sizes = [32, 32], strides = [1, 1]} : vector<32x128xf32> to vector<32x32xf32>
    %355 = arith.truncf %351 : vector<32x32xf32> to vector<32x32xbf16>
    %356 = arith.truncf %352 : vector<32x32xf32> to vector<32x32xbf16>
    %cst_116 = arith.constant dense<0.000000e+00> : vector<32x32xf32>
    %357 = tpu.matmul %355, %356, %cst_116 {dimension_numbers = #tpu.dot_dimension_numbers<[1], [1], [0], [0], [0, 0, 1, 0], [], []>} : vector<32x32xbf16>, vector<32x32xbf16>, vector<32x32xf32> -> vector<32x32xf32>
    %358 = arith.addf %357, %0 : vector<32x32xf32>
    %cst_117 = arith.constant dense<0xFF800000> : vector<32xf32>
    %359 = vector.multi_reduction <maximumf>, %358, %cst_117 [1] : vector<32x32xf32> to vector<32xf32>
    %360 = vector.shape_cast %359 : vector<32xf32> to vector<32x1xf32>
    %361 = vector.broadcast %360 : vector<32x1xf32> to vector<32x32xf32>
    %362 = arith.subf %358, %361 : vector<32x32xf32>
    %363 = math.exp %362 : vector<32x32xf32>
    %cst_118 = arith.constant dense<0.000000e+00> : vector<32xf32>
    %364 = vector.multi_reduction <add>, %363, %cst_118 [1] : vector<32x32xf32> to vector<32xf32>
    %365 = vector.shape_cast %364 : vector<32xf32> to vector<32x1xf32>
    %366 = tpu.reciprocal %365 {approx = true} : vector<32x1xf32> -> vector<32x1xf32>
    %367 = vector.broadcast %366 : vector<32x1xf32> to vector<32x32xf32>
    %368 = arith.mulf %363, %367 : vector<32x32xf32>
    %369 = arith.truncf %368 : vector<32x32xf32> to vector<32x32xbf16>
    %370 = arith.truncf %353 : vector<32x32xf32> to vector<32x32xbf16>
    %cst_119 = arith.constant dense<0.000000e+00> : vector<32x32xf32>
    %371 = tpu.matmul %369, %370, %cst_119 {dimension_numbers = #tpu.dot_dimension_numbers<[1], [0], [0], [1], [0, 0, 1, 1], [], []>} : vector<32x32xbf16>, vector<32x32xbf16>, vector<32x32xf32> -> vector<32x32xf32>
    %372 = vector.broadcast %1 : vector<32x1xf32> to vector<32x32xf32>
    %373 = arith.mulf %372, %371 : vector<32x32xf32>
    %374 = arith.addf %373, %354 : vector<32x32xf32>
    %cst_120 = arith.constant 0.000000e+00 : f32
    %375 = vector.broadcast %cst_120 : f32 to vector<32x32xf32>
    %376 = arith.cmpf ogt, %374, %375 : vector<32x32xf32>
    %cst_121 = arith.constant 0.000000e+00 : f32
    %377 = vector.broadcast %cst_121 : f32 to vector<32x32xf32>
    %378 = arith.minimumf %374, %377 : vector<32x32xf32>
    %379 = math.exp %378 : vector<32x32xf32>
    %cst_122 = arith.constant 1.000000e+00 : f32
    %380 = vector.broadcast %cst_122 : f32 to vector<32x32xf32>
    %381 = arith.subf %379, %380 : vector<32x32xf32>
    %382 = arith.select %376, %374, %381 : vector<32x32xi1>, vector<32x32xf32>
    %c0_123 = arith.constant 0 : index
    %c0_124 = arith.constant 0 : index
    %383 = vector.load %arg28[%c0_123, %c0_124] : memref<32x64xbf16, #tpu.memory_space<vmem>>, vector<32x64xbf16>
    %c0_125 = arith.constant 0 : index
    %c0_126 = arith.constant 0 : index
    %384 = vector.load %arg29[%c0_125, %c0_126] : memref<1x64xf32, #tpu.memory_space<vmem>>, vector<1x64xf32>
    %385 = arith.truncf %382 : vector<32x32xf32> to vector<32x32xbf16>
    %cst_127 = arith.constant dense<0.000000e+00> : vector<32x64xf32>
    %386 = tpu.matmul %385, %383, %cst_127 {dimension_numbers = #tpu.dot_dimension_numbers<[1], [0], [0], [1], [0, 0, 1, 1], [], []>} : vector<32x32xbf16>, vector<32x64xbf16>, vector<32x64xf32> -> vector<32x64xf32>
    %387 = vector.broadcast %384 : vector<1x64xf32> to vector<32x64xf32>
    %388 = arith.addf %386, %387 : vector<32x64xf32>
    %389 = vector.extract_strided_slice %388 {offsets = [0, 0], sizes = [32, 16], strides = [1, 1]} : vector<32x64xf32> to vector<32x16xf32>
    %390 = vector.extract_strided_slice %388 {offsets = [0, 16], sizes = [32, 16], strides = [1, 1]} : vector<32x64xf32> to vector<32x16xf32>
    %391 = vector.extract_strided_slice %388 {offsets = [0, 32], sizes = [32, 16], strides = [1, 1]} : vector<32x64xf32> to vector<32x16xf32>
    %392 = vector.extract_strided_slice %388 {offsets = [0, 48], sizes = [32, 16], strides = [1, 1]} : vector<32x64xf32> to vector<32x16xf32>
    %393 = arith.truncf %389 : vector<32x16xf32> to vector<32x16xbf16>
    %394 = arith.truncf %390 : vector<32x16xf32> to vector<32x16xbf16>
    %cst_128 = arith.constant dense<0.000000e+00> : vector<32x32xf32>
    %395 = tpu.matmul %393, %394, %cst_128 {dimension_numbers = #tpu.dot_dimension_numbers<[1], [1], [0], [0], [0, 0, 1, 0], [], []>} : vector<32x16xbf16>, vector<32x16xbf16>, vector<32x32xf32> -> vector<32x32xf32>
    %396 = arith.addf %395, %0 : vector<32x32xf32>
    %cst_129 = arith.constant dense<0xFF800000> : vector<32xf32>
    %397 = vector.multi_reduction <maximumf>, %396, %cst_129 [1] : vector<32x32xf32> to vector<32xf32>
    %398 = vector.shape_cast %397 : vector<32xf32> to vector<32x1xf32>
    %399 = vector.broadcast %398 : vector<32x1xf32> to vector<32x32xf32>
    %400 = arith.subf %396, %399 : vector<32x32xf32>
    %401 = math.exp %400 : vector<32x32xf32>
    %cst_130 = arith.constant dense<0.000000e+00> : vector<32xf32>
    %402 = vector.multi_reduction <add>, %401, %cst_130 [1] : vector<32x32xf32> to vector<32xf32>
    %403 = vector.shape_cast %402 : vector<32xf32> to vector<32x1xf32>
    %404 = tpu.reciprocal %403 {approx = true} : vector<32x1xf32> -> vector<32x1xf32>
    %405 = vector.broadcast %404 : vector<32x1xf32> to vector<32x32xf32>
    %406 = arith.mulf %401, %405 : vector<32x32xf32>
    %407 = arith.truncf %406 : vector<32x32xf32> to vector<32x32xbf16>
    %408 = arith.truncf %391 : vector<32x16xf32> to vector<32x16xbf16>
    %cst_131 = arith.constant dense<0.000000e+00> : vector<32x16xf32>
    %409 = tpu.matmul %407, %408, %cst_131 {dimension_numbers = #tpu.dot_dimension_numbers<[1], [0], [0], [1], [0, 0, 1, 1], [], []>} : vector<32x32xbf16>, vector<32x16xbf16>, vector<32x16xf32> -> vector<32x16xf32>
    %410 = vector.broadcast %1 : vector<32x1xf32> to vector<32x16xf32>
    %411 = arith.mulf %410, %409 : vector<32x16xf32>
    %412 = arith.addf %411, %392 : vector<32x16xf32>
    %c0_132 = arith.constant 0 : index
    %c0_133 = arith.constant 0 : index
    %413 = vector.load %arg4[%c0_132, %c0_133] : memref<2x32xf32, #tpu.memory_space<vmem>>, vector<2x32xf32>
    %cst_134 = arith.constant dense<0.000000e+00> : vector<2x16xf32>
    %414 = tpu.matmul %413, %344, %cst_134 {dimension_numbers = #tpu.dot_dimension_numbers<[1], [0], [0], [1], [0, 0, 1, 1], [], []>} : vector<2x32xf32>, vector<32x16xf32>, vector<2x16xf32> -> vector<2x16xf32>
    %c0_135 = arith.constant 0 : index
    %c0_136 = arith.constant 0 : index
    %415 = vector.load %arg5[%c0_135, %c0_136] : memref<2x1xf32, #tpu.memory_space<vmem>>, vector<2x1xf32>
    %416 = vector.broadcast %415 : vector<2x1xf32> to vector<2x16xf32>
    %417 = arith.mulf %414, %416 : vector<2x16xf32>
    %c0_137 = arith.constant 0 : index
    %c0_138 = arith.constant 0 : index
    %418 = vector.load %arg31[%c0_137, %c0_138] : memref<2x16xf32, #tpu.memory_space<vmem>>, vector<2x16xf32>
    tpu.vector_store %arg31[%c0_137, %c0_138], %417 {strides = array<i32>} : memref<2x16xf32, #tpu.memory_space<vmem>>, vector<2x16xf32>,
    %cst_139 = arith.constant 0.000000e+00 : f32
    %419 = vector.broadcast %cst_139 : f32 to vector<32x32xf32>
    %420 = tpu.concatenate %71, %207, %344, %139, %275, %412, %419 in 1 : vector<32x16xf32>, vector<32x16xf32>, vector<32x16xf32>, vector<32x16xf32>, vector<32x16xf32>, vector<32x16xf32>, vector<32x32xf32> -> vector<32x128xf32>
    %c0_140 = arith.constant 0 : index
    %c0_141 = arith.constant 0 : index
    %421 = vector.load %arg30[%c0_140, %c0_141] : memref<32x128xf32, #tpu.memory_space<vmem>>, vector<32x128xf32>
    tpu.vector_store %arg30[%c0_140, %c0_141], %420 {strides = array<i32>} : memref<32x128xf32, #tpu.memory_space<vmem>>, vector<32x128xf32>,
    return
  }
}

</mosaic_0001>

<bundles_post_ra>
// kernel: trans_img_forward.1
= control target key start
LH: loop header
LB: loop body
LE: loop exit
PB: predicated region body
PF: predicated region fallthrough
CT: control target
= control target key end

     0   :  { %s4788_s6 = smov 1   ;;  %s4789_s10 = smov 2   ;;  %s5796_s0 = inlined_call_operand.smem [shape: u32[32], index: -1, kind: input, shape index: {}] }
   0x1   :  { %s4839_s5 = sld [smem:[%s5796_s0]]   ;;  %s4790_s14 = smov 3  }
   0x2   :  { %s4844_s9 = sld [smem:[%s5796_s0 + %s4788_s6]]   ;;  %s4791_s18 = smov 4  }
   0x3   :  { %s4849_s13 = sld [smem:[%s5796_s0 + %s4789_s10]]   ;;  %s4792_s22 = smov 5  }
   0x4   :  { %s4854_s17 = sld [smem:[%s5796_s0 + %s4790_s14]]   ;;  %s4793_s26 = smov 6  }
   0x5   :  { %s4859_s21 = sld [smem:[%s5796_s0 + %s4791_s18]]   ;;  %s4794_s30 = smov 7  }
   0x6   :  { %s4864_s25 = sld [smem:[%s5796_s0 + %s4792_s22]]   ;;  %s4795_s4 = smov 8  }
   0x7   :  { %s4869_s29 = sld [smem:[%s5796_s0 + %s4793_s26]]   ;;  %s4796_s10 = smov 9  }
   0x8   :  { %s4874_s3 = sld [smem:[%s5796_s0 + %s4794_s30]]   ;;  %s4797_s15 = smov 10  }
   0x9   :  { %s4879_s8 = sld [smem:[%s5796_s0 + %s4795_s4]]   ;;  %s4798_s20 = smov 11  }
   0xa   :  { %s4884_s14 = sld [smem:[%s5796_s0 + %s4796_s10]]   ;;  %s4799_s26 = smov 12  }
   0xb   :  { %5800 = sst [smem:[#allocation5_spill]] %s4859_s21  ;;  %s4800_s1 = smov 13  }
   0xc   :  { %5801 = sst [smem:[#allocation6_spill]] %s4864_s25  ;;  %s4801_s7 = smov 14  }
   0xd   :  { %s4889_s19 = sld [smem:[%s5796_s0 + %s4797_s15]]   ;;  %s4802_s15 = smov 15  }
   0xe   :  { %s4894_s24 = sld [smem:[%s5796_s0 + %s4798_s20]]   ;;  %s4803_s22 = smov 16  }
   0xf   :  { %s4899_s30 = sld [smem:[%s5796_s0 + %s4799_s26]]   ;;  %s4804_s28 = smov 17  }
  0x10   :  { %s4904_s6 = sld [smem:[%s5796_s0 + %s4800_s1]]  }
  0x11   :  { %s4909_s12 = sld [smem:[%s5796_s0 + %s4801_s7]]   ;;  %s4805_s7 = smov 18  }
  0x12   :  { %s4914_s20 = sld [smem:[%s5796_s0 + %s4802_s15]]   ;;  %s4806_s15 = smov 19  }
  0x13   :  { %s4919_s27 = sld [smem:[%s5796_s0 + %s4803_s22]]   ;;  %s4807_s22 = smov 20  }
  0x14   :  { %s4924_s4 = sld [smem:[%s5796_s0 + %s4804_s28]]   ;;  %s4808_s28 = smov 21  }
  0x15   :  { %s4929_s21 = sld [smem:[%s5796_s0 + %s4805_s7]]   ;;  %s4809_s7 = smov 22  }
  0x16   :  { %s4934_s25 = sld [smem:[%s5796_s0 + %s4806_s15]]   ;;  %s4810_s15 = smov 23  }
  0x19   :  { %5802 = sst [smem:[#allocation7_spill]] %s4919_s27 }
  0x1a   :  { %5803 = sst [smem:[#allocation8_spill]] %s4924_s4 }
  0x1b   :  { %5804 = sst [smem:[#allocation9_spill]] %s4929_s21 }
  0x1c   :  { %5805 = sst [smem:[#allocation10_spill]] %s4934_s25 }
  0x1d   :  { %s4939_s27 = sld [smem:[%s5796_s0 + %s4807_s22]]   ;;  %s4811_s22 = smov 24  }
  0x1e   :  { %s4944_s4 = sld [smem:[%s5796_s0 + %s4808_s28]]   ;;  %s4812_s28 = smov 25  }
  0x1f   :  { %s4949_s21 = sld [smem:[%s5796_s0 + %s4809_s7]]   ;;  %s4813_s7 = smov 26  }
  0x20   :  { %s4954_s25 = sld [smem:[%s5796_s0 + %s4810_s15]]   ;;  %s4814_s15 = smov 27  }
  0x23   :  { %5806 = sst [smem:[#allocation11_spill]] %s4939_s27 }
  0x24   :  { %5807 = sst [smem:[#allocation12_spill]] %s4944_s4 }
  0x25   :  { %5808 = sst [smem:[#allocation13_spill]] %s4949_s21 }
  0x26   :  { %5809 = sst [smem:[#allocation14_spill]] %s4954_s25 }
  0x27   :  { %s4959_s27 = sld [smem:[%s5796_s0 + %s4811_s22]]   ;;  %s4815_s22 = smov 28  }
  0x28   :  { %s4964_s4 = sld [smem:[%s5796_s0 + %s4812_s28]]   ;;  %s4816_s28 = smov 29  }
  0x29   :  { %s4969_s21 = sld [smem:[%s5796_s0 + %s4813_s7]]   ;;  %s4817_s7 = smov 30  }
  0x2a   :  { %s4974_s25 = sld [smem:[%s5796_s0 + %s4814_s15]]   ;;  %s4818_s15 = smov 31  }
  0x2d   :  { %5810 = sst [smem:[#allocation15_spill]] %s4959_s27 }
  0x2e   :  { %5811 = sst [smem:[#allocation16_spill]] %s4964_s4 }
  0x2f   :  { %5812 = sst [smem:[#allocation17_spill]] %s4969_s21 }
  0x30   :  { %5813 = sst [smem:[#allocation18_spill]] %s4974_s25 }
  0x31   :  { %s4979_s27 = sld [smem:[%s5796_s0 + %s4815_s22]]  }
  0x32   :  { %s4984_s4 = sld [smem:[%s5796_s0 + %s4816_s28]]  }
  0x33   :  { %s4989_s21 = sld [smem:[%s5796_s0 + %s4817_s7]]  }
  0x34   :  { %s4994_s25 = sld [smem:[%s5796_s0 + %s4818_s15]]  }
  0x35   :  { %v4499_v0 = vld [vmem:[%s4869_s29] sm:$0xff]   ;;  %v140_v2 = vld [vmem:[%s4839_s5 + $0x8] sm:$0xff]  ;;  %vm164_vm0 = vcmask 130048   ;;  %v141_v3 = vld [vmem:[%s4839_s5 + $0x10] sm:$0xff] }
  0x36   :  { %v139_v1 = vld [vmem:[%s4839_s5] sm:$0xff]  ;;  %4136 = vmatprep.subr.bf16.mxu0 %v4499_v0  ;;  %v142_v5 = vld [vmem:[%s4839_s5 + $0x18] sm:$0xff] }
  0x37   :  { %v150_v4 = vpack.c.bf16 %v140_v2, %v139_v1  ;;  %4137 = vmatpush3.bf16.msra.mxu0 %v4499_v0  ;;  %v151_v6 = vpack.c.bf16 %v142_v5, %v141_v3 }
  0x39   :  { %4138 = vmatprep.mubr.msk.bf16.mxu0 %vm164_vm0, %v150_v4 }
  0x3a   :  { %4139 = vmatmul.mubr.msk.bf16.vlgmr.msra.gmra.mrb[0].mxu0 %vm164_vm0, %v151_v6 }
  0x3b   :  { %69 = vsyncpa [#allocation3], 0  ;;  %v3867_v8 = vld [vmem:[%s4874_s3] ss:$0 sm:$0xff]  ;;  %vm228_vm1 = vcmask 261120   ;;  %s4819_s0 = smov 96  }
  0x3c   :  { %v5023_v22 = vld [vmem:[%s4849_s13 + $0x10] sm:$0xff]  ;;  %v5026_v23 = vld [vmem:[%s4849_s13] sm:$0xff]  ;;  %v5030_v27 = vld [vmem:[%s4849_s13 + $0x8] sm:$0xff]  ;;  %s4820_s5 = smov 64   ;;  %s4821_s29 = smov 32   ;;  %v4822_v38 = vmov 0  }
  0x3d   :  { %v5037_v34 = vld [vmem:[%s4849_s13 + $0x18] sm:$0xff]  ;;  %4497 = vset.pattern.permute.xlu1 %v4822_v38  ;;  %4498 = vset.pattern.permute.xlu0 %v4822_v38  ;;  %v135_v59 = vld [vmem:[%s4854_s17] sm:$0xff]  ;;  %v136_v60 = vld [vmem:[%s4854_s17 + $0x8] sm:$0xff]  ;;  %s4824_s3 = smov 80   ;;  %vm1338_vm10 = vcmask 1043456   ;;  %vm1331_vm11 = vcmask 64512  }
  0x3e   :  { %v137_v61 = vld [vmem:[%s4854_s17 + $0x10] sm:$0xff]  ;;  %v138_v62 = vld [vmem:[%s4854_s17 + $0x18] sm:$0xff]  ;;  %s4823_s17 = smov 112   ;;  %s5823_s22 = sld [smem:[#allocation16_spill]] }
  0x3f   :  { %s5824_s23 = sld [smem:[#allocation17_spill]]  ;;  %s5825_s26 = sld [smem:[#allocation18_spill]] }
  0x40   :  { %s5827_s28 = sld [smem:[#allocation5_spill]]  ;;  %s4830_s1 = smov [#allocation2]  }
  0x41   :  { %s3826_s2 = sshll.u32 %s4830_s1, 4  ;;  %s3827_s2 = int_to_ptr.vmem [resolvable:$true] %s3826_s2 }
  0x42   :  { %s4764_s7 = scalar_lea.vmem %s3827_s2, 32  ;;  %p4769_p1 = scmp.lt.s32.totalorder %s3827_s2, %s3827_s2 }
  0x43   :  { %p4765_p0 = scmp.ne.s32.totalorder %s3827_s2, %s4764_s7  ;;  %p4770_p2 = scmp.lt.s32.totalorder %s4764_s7, %s4764_s7 }
  0x45   :  { %p4771_p3 = por %p4770_p2, %p4769_p1 }
  0x47   :  { %p4772_p4 = pnand %p4771_p3, %p4765_p0 }
 0x10d   :  { %v4140_v7 = vpop.f32.mrb[0].mxu0 }
 0x10e   :  { %v205_v9 = vpop.f32.mrb[1].mxu0  ;;  %v214_v16 = vadd.f32 %v4140_v7, %v3867_v8 }
 0x10f   :  { %v4141_v10 = vpop.f32.mrb[2].mxu0  ;;  %v206_v12 = vadd.f32 %v3867_v8, %v205_v9 }
 0x110   :  { %v208_v11 = vpop.f32.mrb[3].mxu0  ;;  %v5006_v14 = vadd.f32 %v4141_v10, %v3867_v8 }
 0x111   :  { %v5004_v13 = vadd.f32 %v3867_v8, %v208_v11 }
 0x112   :  { %v221_v17 = vpack.c.bf16 %v5006_v14, %v214_v16 }
 0x113   :  { %v5009_v15 = vpack.c.bf16 %v5004_v13, %v206_v12 }
 0x115   :  { %224 = vrot.lane.b32.xlu0 %v5009_v15, %s4819_s0  ;;  %4146 = vmatprep.mubr.msk.bf16.mxu1 %vm228_vm1, %v5009_v15 }
 0x119   :  { %226 = vrot.lane.b32.xlu0 %v221_v17, %s4819_s0 }
 0x187   :  { %v225_v18 = vpop.permute.xlu0 %224 }
 0x188   :  { %4429 = vmatprep.subr.msk.bf16.mxu1 %vm228_vm1, %v225_v18  ;;  %v236_v19 = vsel %vm228_vm1, %v225_v18, 0 }
 0x189   :  { %4143 = vmatpush3.bf16.xpose.msra.mxu1 %v236_v19 }
 0x18b   :  { %v227_v20 = vpop.permute.xlu0 %226 }
 0x18c   :  { %4430 = vmatprep.subr.msk.bf16.mxu1 %vm228_vm1, %v227_v20  ;;  %v239_v21 = vsel %vm228_vm1, %v227_v20, 0 }
 0x191   :  { %4145 = vmatpush3.bf16.xpose.msra.mxu1 %v239_v21 }
 0x198   :  { %4147 = vmatmul.mubr.msk.bf16.vlgmr.msra.gmra.mrb[0].mxu1 %vm228_vm1, %v221_v17 }
 0x26b   :  { %v4148_v24 = vpop.f32.mrb[0].mxu1 }
 0x26c   :  { %v284_v25 = vadd.f32 %v4148_v24, %v5023_v22  ;;  %v275_v26 = vpop.f32.mrb[1].mxu1 }
 0x26d   :  { %v276_v28 = vadd.f32 %v275_v26, %v5026_v23  ;;  %v4149_v29 = vpop.f32.mrb[2].mxu1 }
 0x26e   :  { %v278_v30 = vpop.f32.mrb[3].mxu1  ;;  %v296_v31 = vsel %vm228_vm1, %v284_v25, -inf  ;;  %v287_v35 = vadd.f32 %v4149_v29, %v5037_v34 }
 0x26f   :  { %v279_v32 = vadd.f32 %v278_v30, %v5030_v27  ;;  %297 = vmax.xlane.f32.xlu0 %v296_v31  ;;  %v290_v33 = vsel %vm228_vm1, %v276_v28, -inf }
 0x270   :  { %291 = vmax.xlane.f32.xlu1 %v290_v33  ;;  %v299_v37 = vsel %vm228_vm1, %v287_v35, -inf }
 0x271   :  { %v293_v36 = vsel %vm228_vm1, %v279_v32, -inf }
 0x274   :  { %294 = vmax.xlane.f32.xlu1 %v293_v36 }
 0x278   :  { %300 = vmax.xlane.f32.xlu1 %v299_v37 }
 0x285   :  { %338 = vrot.lane.b32.xlu0 %v221_v17, %s4820_s5 }
 0x289   :  { %425 = vrot.lane.b32.xlu0 %v206_v12, %s4821_s29 }
 0x28d   :  { %429 = vrot.lane.b32.xlu0 %v214_v16, %s4821_s29  ;;  %v4501_v16 = vld [vmem:[%s4879_s8 + $0x8] sm:$0xff]  }
 0x2fc   :  { %v298_v39 = vpop.xlane.xlu0 %297 }
 0x2fd   :  { %v304_v40 = vsub.f32 %v284_v25, %v298_v39  ;;  %v292_v41 = vpop.xlane.xlu1 %291 }
 0x2fe   :  { %v302_v42 = vsub.f32 %v276_v28, %v292_v41 }
 0x2ff   :  { %v310_v43 = vmul.f32 1.442695, %v304_v40 }
 0x300   :  { %v306_v44 = vmul.f32 1.442695, %v302_v42  ;;  %v339_v4 = vpop.permute.xlu0 %338 }
 0x301   :  { %4516 = vpow2.f32 %v310_v43  ;;  %v295_v45 = vpop.xlane.xlu1 %294 }
 0x302   :  { %4518 = vpow2.f32 %v306_v44  ;;  %v303_v46 = vsub.f32 %v279_v32, %v295_v45 }
 0x304   :  { %v308_v49 = vmul.f32 1.442695, %v303_v46  ;;  %v426_v21 = vpop.permute.xlu0 %425 }
 0x305   :  { %v301_v47 = vpop.xlane.xlu1 %300 }
 0x306   :  { %v305_v48 = vsub.f32 %v287_v35, %v301_v47 }
 0x308   :  { %v312_v50 = vmul.f32 1.442695, %v305_v48  ;;  %v430_v29 = vpop.permute.xlu0 %429 }
 0x30a   :  { %4520 = vpow2.f32 %v312_v50 }
 0x30b   :  { %v4517_v51 = vpop.eup %4516  ;;  %4522 = vpow2.f32 %v308_v49 }
 0x30c   :  { %v320_v52 = vsel %vm228_vm1, %v4517_v51, 0.0  ;;  %v4519_v53 = vpop.eup %4518 }
 0x30d   :  { %321 = vadd.xlane.f32.xlu1 %v320_v52  ;;  %v314_v54 = vsel %vm228_vm1, %v4519_v53, 0.0 }
 0x311   :  { %315 = vadd.xlane.f32.xlu1 %v314_v54 }
 0x314   :  { %v4521_v55 = vpop.eup %4520 }
 0x315   :  { %v323_v56 = vsel %vm228_vm1, %v4521_v55, 0.0  ;;  %v4523_v57 = vpop.eup %4522 }
 0x316   :  { %324 = vadd.xlane.f32.xlu1 %v323_v56  ;;  %v317_v58 = vsel %vm228_vm1, %v4523_v57, 0.0 }
 0x31a   :  { %318 = vadd.xlane.f32.xlu1 %v317_v58 }
 0x32b   :  { %336 = vrot.lane.b32.xlu1 %v5009_v15, %s4820_s5  ;;  %v4500_v15 = vld [vmem:[%s4879_s8] sm:$0xff]   ;;  %s5815_s8 = sld [smem:[#allocation8_spill]] }
 0x32f   :  { %399 = vperm.xlu1 %4497, %v135_v59  }
 0x333   :  { %404 = vperm.xlu1 %4497, %v136_v60  }
 0x337   :  { %409 = vperm.xlu1 %4497, %v137_v61  }
 0x33b   :  { %414 = vperm.xlu1 %4497, %v138_v62  }
 0x33f   :  { %427 = vrot.lane.b32.xlu1 %v5004_v13, %s4821_s29 }
 0x343   :  { %431 = vrot.lane.b32.xlu1 %v5006_v14, %s4821_s29 }
 0x39a   :  { %v322_v63 = vpop.xlane.xlu1 %321 }
 0x39e   :  { %v316_v0 = vpop.xlane.xlu1 %315 }
 0x3a3   :  { %v325_v1 = vpop.xlane.xlu1 %324 }
 0x3a4   :  { %4524 = vrcp.f32 %v325_v1 }
 0x3a5   :  { %4526 = vrcp.f32 %v316_v0  ;;  %v3879_v0 = vld [vmem:[%s4884_s14] ss:$0 sm:$0xff]  ;;  %s5816_s14 = sld [smem:[#allocation9_spill]] }
 0x3a6   :  { %4528 = vrcp.f32 %v322_v63 }
 0x3a7   :  { %v319_v2 = vpop.xlane.xlu1 %318 }
 0x3a8   :  { %4530 = vrcp.f32 %v319_v2 }
 0x3ab   :  { %v337_v3 = vpop.permute.xlu1 %336 }
 0x3ac   :  { %4150 = vmatprep.subr.bf16.mxu0 %v337_v3 }
 0x3ad   :  { %4151 = vmatpush3.bf16.msra.mxu0 %v337_v3 }
 0x3ae   :  { %4152 = vmatprep.subr.bf16.mxu0 %v339_v4  ;;  %v4525_v5 = vpop.eup %4524 }
 0x3af   :  { %v4527_v6 = vpop.eup %4526  ;;  %v333_v9 = vmul.f32 %v4525_v5, %v4521_v55  ;;  %v5063_v17 = vpop.permute.xlu1 %399 }
 0x3b0   :  { %v4529_v7 = vpop.eup %4528  ;;  %v330_v10 = vmul.f32 %v4527_v6, %v4519_v53 }
 0x3b1   :  { %4153 = vmatpush3.bf16.msra.mxu0 %v339_v4  ;;  %v332_v12 = vmul.f32 %v4529_v7, %v4517_v51 }
 0x3b2   :  { %v4531_v8 = vpop.eup %4530  ;;  %4158 = vmatprep.subr.bf16.mxu0 %v4500_v15 }
 0x3b3   :  { %v331_v11 = vmul.f32 %v4531_v8, %v4523_v57  ;;  %v335_v14 = vpack.c.bf16 %v333_v9, %v332_v12  ;;  %v5065_v18 = vpop.permute.xlu1 %404 }
 0x3b5   :  { %v334_v13 = vpack.c.bf16 %v331_v11, %v330_v10 }
 0x3b7   :  { %4154 = vmatprep.mubr.msk.bf16.mxu0 %vm228_vm1, %v334_v13  ;;  %v5067_v19 = vpop.permute.xlu1 %409 }
 0x3b8   :  { %4155 = vmatmul.mubr.msk.bf16.vlgmr.msra.gmra.mrb[4].mxu0 %vm228_vm1, %v335_v14 }
 0x3b9   :  { %4159 = vmatpush3.bf16.msra.mxu0 %v4500_v15 }
 0x3ba   :  { %4160 = vmatprep.subr.bf16.mxu0 %v4501_v16 }
 0x3bb   :  { %v5069_v20 = vpop.permute.xlu1 %414 }
 0x3bd   :  { %4161 = vmatpush3.bf16.msra.mxu0 %v4501_v16 }
 0x3bf   :  { %v428_v24 = vpop.permute.xlu1 %427 }
 0x3c3   :  { %v432_v36 = vpop.permute.xlu1 %431 }
 0x48b   :  { %v4156_v25 = vpop.f32.mrb[4].mxu0 }
 0x48c   :  { %v419_v26 = vmul.f32 %v4156_v25, %v5067_v19  ;;  %v382_v28 = vpop.f32.mrb[5].mxu0 }
 0x48d   :  { %v417_v30 = vmul.f32 %v5063_v17, %v382_v28  ;;  %v4157_v31 = vpop.f32.mrb[6].mxu0 }
 0x48e   :  { %v439_v32 = vadd.f32 %v430_v29, %v419_v26  ;;  %v420_v33 = vmul.f32 %v4157_v31, %v5069_v20  ;;  %v385_v35 = vpop.f32.mrb[7].mxu0 }
 0x48f   :  { %v437_v37 = vadd.f32 %v426_v21, %v417_v30  ;;  %v418_v38 = vmul.f32 %v5065_v18, %v385_v35 }
 0x490   :  { %v447_v39 = vmin.f32 %v439_v32, 0.0  ;;  %v440_v40 = vadd.f32 %v432_v36, %v420_v33  ;;  %vm443_vm2 = vcmp.gt.f32.partialorder %v439_v32, 0.0 }
 0x491   :  { %v445_v41 = vmin.f32 %v437_v37, 0.0  ;;  %v438_v42 = vadd.f32 %v428_v24, %v418_v38  ;;  %vm441_vm4 = vcmp.gt.f32.partialorder %v437_v37, 0.0 }
 0x492   :  { %v453_v43 = vmul.f32 1.442695, %v447_v39  ;;  %v448_v44 = vmin.f32 %v440_v40, 0.0  ;;  %vm444_vm3 = vcmp.gt.f32.partialorder %v440_v40, 0.0 }
 0x493   :  { %v449_v45 = vmul.f32 1.442695, %v445_v41  ;;  %v446_v46 = vmin.f32 %v438_v42, 0.0  ;;  %vm442_vm5 = vcmp.gt.f32.partialorder %v438_v42, 0.0 }
 0x494   :  { %4532 = vpow2.f32 %v453_v43  ;;  %v455_v47 = vmul.f32 1.442695, %v448_v44 }
 0x495   :  { %4534 = vpow2.f32 %v449_v45  ;;  %v451_v48 = vmul.f32 1.442695, %v446_v46 }
 0x496   :  { %4536 = vpow2.f32 %v455_v47 }
 0x497   :  { %4538 = vpow2.f32 %v451_v48 }
 0x49e   :  { %v4533_v49 = vpop.eup %4532 }
 0x49f   :  { %v4535_v50 = vpop.eup %4534  ;;  %v3877_v51 = vadd.f32 -1.0, %v4533_v49 }
 0x4a0   :  { %v4537_v52 = vpop.eup %4536  ;;  %v3875_v53 = vadd.f32 -1.0, %v4535_v50 }
 0x4a1   :  { %v4539_v54 = vpop.eup %4538  ;;  %v3878_v55 = vadd.f32 -1.0, %v4537_v52  ;;  %v463_v57 = vsel %vm443_vm2, %v439_v32, %v3877_v51 }
 0x4a2   :  { %v3876_v56 = vadd.f32 -1.0, %v4539_v54  ;;  %v461_v59 = vsel %vm441_vm4, %v437_v37, %v3875_v53 }
 0x4a3   :  { %v464_v58 = vsel %vm444_vm3, %v440_v40, %v3878_v55 }
 0x4a4   :  { %v471_v60 = vpack.c.bf16 %v464_v58, %v463_v57  ;;  %v462_v61 = vsel %vm442_vm5, %v438_v42, %v3876_v56 }
 0x4a5   :  { %v470_v62 = vpack.c.bf16 %v462_v61, %v461_v59 }
 0x4a7   :  { %4162 = vmatprep.mubr.msk.bf16.mxu0 %vm228_vm1, %v470_v62 }
 0x4a8   :  { %4163 = vmatmul.mubr.msk.bf16.vlgmr.msra.gmra.mrb[8].mxu0 %vm228_vm1, %v471_v60 }
 0x57b   :  { %v4164_v63 = vpop.f32.mrb[8].mxu0 }
 0x57c   :  { %v530_v1 = vpop.f32.mrb[9].mxu0  ;;  %v5078_v3 = vadd.f32 %v4164_v63, %v3879_v0 }
 0x57d   :  { %v4165_v2 = vpop.f32.mrb[10].mxu0  ;;  %v531_v6 = vadd.f32 %v3879_v0, %v530_v1 }
 0x57e   :  { %v5080_v4 = vadd.f32 %v4165_v2, %v3879_v0  ;;  %v533_v5 = vpop.f32.mrb[11].mxu0 }
 0x57f   :  { %v534_v7 = vadd.f32 %v3879_v0, %v533_v5 }
 0x580   :  { %v546_v8 = vpack.c.bf16 %v5080_v4, %v5078_v3 }
 0x581   :  { %v545_v9 = vpack.c.bf16 %v534_v7, %v531_v6 }
 0x582   :  { %551 = vrot.lane.b32.xlu1 %v546_v8, %s4823_s17 }
 0x583   :  { %549 = vrot.lane.b32.xlu0 %v545_v9, %s4823_s17  ;;  %4170 = vmatprep.mubr.msk.bf16.mxu1 %vm164_vm0, %v545_v9 }
 0x5f4   :  { %v552_v12 = vpop.permute.xlu1 %551 }
 0x5f5   :  { %v550_v10 = vpop.permute.xlu0 %549  ;;  %v563_v13 = vsel %vm164_vm0, %v552_v12, 0 }
 0x5f6   :  { %4431 = vmatprep.subr.msk.bf16.mxu1 %vm164_vm0, %v550_v10  ;;  %v560_v11 = vsel %vm164_vm0, %v550_v10, 0 }
 0x5f7   :  { %4167 = vmatpush3.bf16.xpose.msra.mxu1 %v560_v11 }
 0x5f8   :  { %4432 = vmatprep.subr.msk.bf16.mxu1 %vm164_vm0, %v552_v12 }
 0x5ff   :  { %4169 = vmatpush3.bf16.xpose.msra.mxu1 %v563_v13 }
 0x606   :  { %4171 = vmatmul.mubr.msk.bf16.vlgmr.msra.gmra.mrb[4].mxu1 %vm164_vm0, %v546_v8 }
 0x6d9   :  { %v4172_v14 = vpop.f32.mrb[4].mxu1 }
 0x6da   :  { %v599_v15 = vpop.f32.mrb[5].mxu1  ;;  %v608_v25 = vadd.f32 %v4172_v14, %v5023_v22 }
 0x6db   :  { %v600_v16 = vadd.f32 %v599_v15, %v5026_v23  ;;  %v4173_v21 = vpop.f32.mrb[6].mxu1 }
 0x6dc   :  { %v602_v24 = vpop.f32.mrb[7].mxu1  ;;  %v611_v30 = vadd.f32 %v4173_v21, %v5037_v34  ;;  %v620_v31 = vsel %vm228_vm1, %v608_v25, -inf }
 0x6dd   :  { %v603_v26 = vadd.f32 %v602_v24, %v5030_v27  ;;  %v614_v28 = vsel %vm228_vm1, %v600_v16, -inf }
 0x6de   :  { %615 = vmax.xlane.f32.xlu0 %v614_v28  ;;  %v623_v32 = vsel %vm228_vm1, %v611_v30, -inf }
 0x6df   :  { %v617_v29 = vsel %vm228_vm1, %v603_v26, -inf }
 0x6e0   :  { %618 = vmax.xlane.f32.xlu1 %v617_v29 }
 0x6e2   :  { %621 = vmax.xlane.f32.xlu0 %v620_v31 }
 0x6e6   :  { %624 = vmax.xlane.f32.xlu0 %v623_v32 }
 0x76b   :  { %v616_v33 = vpop.xlane.xlu0 %615 }
 0x76c   :  { %v626_v35 = vsub.f32 %v600_v16, %v616_v33  ;;  %v3888_v33 = vld [vmem:[%s4894_s24] ss:$0 sm:$0xff]  ;;  %s5818_s24 = sld [smem:[#allocation11_spill]] }
 0x76d   :  { %v619_v36 = vpop.xlane.xlu1 %618 }
 0x76e   :  { %v630_v39 = vmul.f32 1.442695, %v626_v35  ;;  %v627_v40 = vsub.f32 %v603_v26, %v619_v36 }
 0x76f   :  { %v622_v37 = vpop.xlane.xlu0 %621 }
 0x770   :  { %v628_v38 = vsub.f32 %v608_v25, %v622_v37  ;;  %v632_v44 = vmul.f32 1.442695, %v627_v40 }
 0x772   :  { %v634_v41 = vmul.f32 1.442695, %v628_v38 }
 0x773   :  { %v625_v42 = vpop.xlane.xlu0 %624 }
 0x774   :  { %4540 = vpow2.f32 %v634_v41  ;;  %v629_v43 = vsub.f32 %v611_v30, %v625_v42 }
 0x775   :  { %4542 = vpow2.f32 %v630_v39 }
 0x776   :  { %v636_v45 = vmul.f32 1.442695, %v629_v43 }
 0x778   :  { %4544 = vpow2.f32 %v636_v45 }
 0x779   :  { %4546 = vpow2.f32 %v632_v44 }
 0x77e   :  { %v4541_v46 = vpop.eup %4540 }
 0x77f   :  { %v644_v47 = vsel %vm228_vm1, %v4541_v46, 0.0  ;;  %v4543_v48 = vpop.eup %4542 }
 0x780   :  { %645 = vadd.xlane.f32.xlu1 %v644_v47  ;;  %v638_v50 = vsel %vm228_vm1, %v4543_v48, 0.0 }
 0x782   :  { %v4545_v49 = vpop.eup %4544 }
 0x783   :  { %v647_v51 = vsel %vm228_vm1, %v4545_v49, 0.0  ;;  %v4547_v52 = vpop.eup %4546 }
 0x784   :  { %639 = vadd.xlane.f32.xlu1 %v638_v50  ;;  %648 = vadd.xlane.f32.xlu0 %v647_v51  ;;  %v641_v53 = vsel %vm228_vm1, %v4547_v52, 0.0 }
 0x788   :  { %642 = vadd.xlane.f32.xlu0 %v641_v53 }
 0x795   :  { %660 = vrot.lane.b32.xlu1 %v545_v9, %s4819_s0 }
 0x799   :  { %729 = vrot.lane.b32.xlu1 %v531_v6, %s4824_s3  ;;  %v4502_v6 = vld [vmem:[%s4889_s19] sm:$0xff]   ;;  %s5817_s19 = sld [smem:[#allocation10_spill]] }
 0x79d   :  { %731 = vrot.lane.b32.xlu1 %v534_v7, %s4824_s3 }
 0x79e   :  { %662 = vrot.lane.b32.xlu0 %v546_v8, %s4819_s0 }
 0x7a1   :  { %735 = vrot.lane.b32.xlu1 %v5080_v4, %s4824_s3 }
 0x7a2   :  { %733 = vrot.lane.b32.xlu0 %v5078_v3, %s4824_s3 }
 0x80d   :  { %v646_v54 = vpop.xlane.xlu1 %645 }
 0x811   :  { %v640_v55 = vpop.xlane.xlu1 %639  ;;  %v649_v56 = vpop.xlane.xlu0 %648 }
 0x812   :  { %4548 = vrcp.f32 %v649_v56 }
 0x813   :  { %4550 = vrcp.f32 %v640_v55 }
 0x814   :  { %4552 = vrcp.f32 %v646_v54 }
 0x815   :  { %v661_v57 = vpop.permute.xlu1 %660  ;;  %v643_v58 = vpop.xlane.xlu0 %642 }
 0x816   :  { %4554 = vrcp.f32 %v643_v58  ;;  %4174 = vmatprep.subr.bf16.mxu0 %v661_v57 }
 0x817   :  { %4175 = vmatpush3.bf16.msra.mxu0 %v661_v57 }
 0x819   :  { %v663_v59 = vpop.permute.xlu0 %662  ;;  %v730_v7 = vpop.permute.xlu1 %729 }
 0x81a   :  { %4176 = vmatprep.subr.bf16.mxu0 %v663_v59 }
 0x81b   :  { %4177 = vmatpush3.bf16.msra.mxu0 %v663_v59 }
 0x81c   :  { %v4549_v60 = vpop.eup %4548  ;;  %4182 = vmatprep.subr.bf16.mxu0 %v4502_v6 }
 0x81d   :  { %v4551_v61 = vpop.eup %4550  ;;  %v657_v0 = vmul.f32 %v4549_v60, %v4545_v49  ;;  %v732_v8 = vpop.permute.xlu1 %731 }
 0x81e   :  { %v4553_v62 = vpop.eup %4552  ;;  %v654_v1 = vmul.f32 %v4551_v61, %v4543_v48  ;;  %v734_v25 = vpop.permute.xlu0 %733 }
 0x81f   :  { %v656_v3 = vmul.f32 %v4553_v62, %v4541_v46 }
 0x820   :  { %v4555_v63 = vpop.eup %4554 }
 0x821   :  { %v655_v2 = vmul.f32 %v4555_v63, %v4547_v52  ;;  %v659_v5 = vpack.c.bf16 %v657_v0, %v656_v3  ;;  %v736_v16 = vpop.permute.xlu1 %735 }
 0x823   :  { %v658_v4 = vpack.c.bf16 %v655_v2, %v654_v1 }
 0x825   :  { %4178 = vmatprep.mubr.msk.bf16.mxu0 %vm228_vm1, %v658_v4 }
 0x826   :  { %4179 = vmatmul.mubr.msk.bf16.vlgmr.msra.gmra.mrb[12].mxu0 %vm228_vm1, %v659_v5 }
 0x827   :  { %4183 = vmatpush3.bf16.msra.mxu0 %v4502_v6 }
 0x8f9   :  { %v4180_v9 = vpop.f32.mrb[12].mxu0 }
 0x8fa   :  { %v706_v10 = vpop.f32.mrb[13].mxu0  ;;  %v723_v13 = vmul.f32 %v4180_v9, %v5067_v19 }
 0x8fb   :  { %v721_v11 = vmul.f32 %v706_v10, %v5063_v17  ;;  %v4181_v12 = vpop.f32.mrb[14].mxu0 }
 0x8fc   :  { %v724_v14 = vmul.f32 %v4181_v12, %v5069_v20  ;;  %v709_v15 = vpop.f32.mrb[15].mxu0  ;;  %v5125_v29 = vadd.f32 %v734_v25, %v723_v13 }
 0x8fd   :  { %v722_v21 = vmul.f32 %v709_v15, %v5065_v18  ;;  %v5121_v26 = vadd.f32 %v730_v7, %v721_v11 }
 0x8fe   :  { %v5119_v24 = vadd.f32 %v736_v16, %v724_v14 }
 0x8ff   :  { %v5123_v28 = vadd.f32 %v732_v8, %v722_v21 }
 0x900   :  { %v749_v31 = vpack.c.bf16 %v5119_v24, %v5125_v29 }
 0x901   :  { %v748_v30 = vpack.c.bf16 %v5123_v28, %v5121_v26 }
 0x903   :  { %4184 = vmatprep.mubr.msk.bf16.mxu0 %vm164_vm0, %v748_v30 }
 0x904   :  { %4185 = vmatmul.mubr.msk.bf16.vlgmr.msra.gmra.mrb[16].mxu0 %vm164_vm0, %v749_v31 }
 0x9d7   :  { %v4186_v32 = vpop.f32.mrb[16].mxu0 }
 0x9d8   :  { %v802_v35 = vpop.f32.mrb[17].mxu0  ;;  %v5134_v37 = vadd.f32 %v4186_v32, %v3888_v33 }
 0x9d9   :  { %v4187_v36 = vpop.f32.mrb[18].mxu0  ;;  %v803_v40 = vadd.f32 %v3888_v33, %v802_v35 }
 0x9da   :  { %v5136_v38 = vadd.f32 %v4187_v36, %v3888_v33  ;;  %v805_v39 = vpop.f32.mrb[19].mxu0 }
 0x9db   :  { %v806_v41 = vadd.f32 %v3888_v33, %v805_v39 }
 0x9dc   :  { %v818_v42 = vpack.c.bf16 %v5136_v38, %v5134_v37 }
 0x9dd   :  { %v817_v43 = vpack.c.bf16 %v806_v41, %v803_v40 }
 0x9de   :  { %823 = vrot.lane.b32.xlu1 %v818_v42, %s4819_s0 }
 0x9df   :  { %821 = vrot.lane.b32.xlu0 %v817_v43, %s4819_s0  ;;  %4192 = vmatprep.mubr.msk.bf16.mxu1 %vm228_vm1, %v817_v43 }
 0xa50   :  { %v824_v46 = vpop.permute.xlu1 %823 }
 0xa51   :  { %v822_v44 = vpop.permute.xlu0 %821  ;;  %v835_v47 = vsel %vm228_vm1, %v824_v46, 0 }
 0xa52   :  { %4433 = vmatprep.subr.msk.bf16.mxu1 %vm228_vm1, %v822_v44  ;;  %v832_v45 = vsel %vm228_vm1, %v822_v44, 0  ;;  %v4503_v44 = vld [vmem:[%s4899_s30] sm:$0xff]  }
 0xa53   :  { %4189 = vmatpush3.bf16.xpose.msra.mxu1 %v832_v45  ;;  %v4504_v45 = vld [vmem:[%s4899_s30 + $0x8] sm:$0xff]   ;;  %s5819_s30 = sld [smem:[#allocation12_spill]] }
 0xa54   :  { %4434 = vmatprep.subr.msk.bf16.mxu1 %vm228_vm1, %v824_v46 }
 0xa5b   :  { %4191 = vmatpush3.bf16.xpose.msra.mxu1 %v835_v47 }
 0xa62   :  { %4193 = vmatmul.mubr.msk.bf16.vlgmr.msra.gmra.mrb[8].mxu1 %vm228_vm1, %v818_v42 }
 0xb35   :  { %v4194_v48 = vpop.f32.mrb[8].mxu1 }
 0xb36   :  { %v871_v49 = vpop.f32.mrb[9].mxu1  ;;  %v880_v53 = vadd.f32 %v4194_v48, %v5023_v22 }
 0xb37   :  { %v872_v50 = vadd.f32 %v871_v49, %v5026_v23  ;;  %v4195_v51 = vpop.f32.mrb[10].mxu1 }
 0xb38   :  { %v874_v52 = vpop.f32.mrb[11].mxu1  ;;  %v883_v57 = vadd.f32 %v4195_v51, %v5037_v34  ;;  %v892_v58 = vsel %vm228_vm1, %v880_v53, -inf }
 0xb39   :  { %v875_v54 = vadd.f32 %v874_v52, %v5030_v27  ;;  %v886_v55 = vsel %vm228_vm1, %v872_v50, -inf }
 0xb3a   :  { %887 = vmax.xlane.f32.xlu0 %v886_v55  ;;  %v895_v59 = vsel %vm228_vm1, %v883_v57, -inf }
 0xb3b   :  { %v889_v56 = vsel %vm228_vm1, %v875_v54, -inf }
 0xb3c   :  { %890 = vmax.xlane.f32.xlu1 %v889_v56 }
 0xb3e   :  { %893 = vmax.xlane.f32.xlu0 %v892_v58 }
 0xb42   :  { %896 = vmax.xlane.f32.xlu0 %v895_v59 }
 0xbc7   :  { %v888_v60 = vpop.xlane.xlu0 %887 }
 0xbc8   :  { %v898_v61 = vsub.f32 %v872_v50, %v888_v60 }
 0xbc9   :  { %v891_v62 = vpop.xlane.xlu1 %890 }
 0xbca   :  { %v902_v1 = vmul.f32 1.442695, %v898_v61  ;;  %v899_v2 = vsub.f32 %v875_v54, %v891_v62 }
 0xbcb   :  { %v894_v63 = vpop.xlane.xlu0 %893 }
 0xbcc   :  { %v900_v0 = vsub.f32 %v880_v53, %v894_v63  ;;  %v904_v6 = vmul.f32 1.442695, %v899_v2 }
 0xbce   :  { %v906_v3 = vmul.f32 1.442695, %v900_v0 }
 0xbcf   :  { %v897_v4 = vpop.xlane.xlu0 %896 }
 0xbd0   :  { %4556 = vpow2.f32 %v906_v3  ;;  %v901_v5 = vsub.f32 %v883_v57, %v897_v4 }
 0xbd1   :  { %4558 = vpow2.f32 %v902_v1 }
 0xbd2   :  { %v908_v7 = vmul.f32 1.442695, %v901_v5 }
 0xbd4   :  { %4560 = vpow2.f32 %v908_v7 }
 0xbd5   :  { %4562 = vpow2.f32 %v904_v6 }
 0xbda   :  { %v4557_v8 = vpop.eup %4556 }
 0xbdb   :  { %v916_v9 = vsel %vm228_vm1, %v4557_v8, 0.0  ;;  %v4559_v10 = vpop.eup %4558 }
 0xbdc   :  { %917 = vadd.xlane.f32.xlu1 %v916_v9  ;;  %v910_v12 = vsel %vm228_vm1, %v4559_v10, 0.0 }
 0xbde   :  { %v4561_v11 = vpop.eup %4560 }
 0xbdf   :  { %v919_v13 = vsel %vm228_vm1, %v4561_v11, 0.0  ;;  %v4563_v14 = vpop.eup %4562 }
 0xbe0   :  { %911 = vadd.xlane.f32.xlu1 %v910_v12  ;;  %920 = vadd.xlane.f32.xlu0 %v919_v13  ;;  %v913_v15 = vsel %vm228_vm1, %v4563_v14, 0.0 }
 0xbe4   :  { %914 = vadd.xlane.f32.xlu0 %v913_v15 }
 0xbf1   :  { %932 = vrot.lane.b32.xlu1 %v817_v43, %s4820_s5 }
 0xbf5   :  { %1001 = vrot.lane.b32.xlu1 %v803_v40, %s4821_s29 }
 0xbf9   :  { %1003 = vrot.lane.b32.xlu1 %v806_v41, %s4821_s29 }
 0xbfa   :  { %934 = vrot.lane.b32.xlu0 %v818_v42, %s4820_s5 }
 0xbfd   :  { %1007 = vrot.lane.b32.xlu1 %v5136_v38, %s4821_s29 }
 0xbfe   :  { %1005 = vrot.lane.b32.xlu0 %v5134_v37, %s4821_s29 }
 0xc69   :  { %v918_v16 = vpop.xlane.xlu1 %917 }
 0xc6d   :  { %v912_v21 = vpop.xlane.xlu1 %911  ;;  %v921_v25 = vpop.xlane.xlu0 %920 }
 0xc6e   :  { %4564 = vrcp.f32 %v921_v25 }
 0xc6f   :  { %4566 = vrcp.f32 %v912_v21 }
 0xc70   :  { %4568 = vrcp.f32 %v918_v16 }
 0xc71   :  { %v933_v30 = vpop.permute.xlu1 %932  ;;  %v915_v31 = vpop.xlane.xlu0 %914 }
 0xc72   :  { %4570 = vrcp.f32 %v915_v31  ;;  %4196 = vmatprep.subr.bf16.mxu0 %v933_v30 }
 0xc73   :  { %4197 = vmatpush3.bf16.msra.mxu0 %v933_v30 }
 0xc75   :  { %v935_v32 = vpop.permute.xlu0 %934  ;;  %v1002_v46 = vpop.permute.xlu1 %1001 }
 0xc76   :  { %4198 = vmatprep.subr.bf16.mxu0 %v935_v32 }
 0xc77   :  { %4199 = vmatpush3.bf16.msra.mxu0 %v935_v32  ;;  %v3900_v32 = vld [vmem:[%s4904_s6] ss:$0 sm:$0xff]  ;;  %s5820_s6 = sld [smem:[#allocation13_spill]] }
 0xc78   :  { %v4565_v33 = vpop.eup %4564  ;;  %4204 = vmatprep.subr.bf16.mxu0 %v4503_v44 }
 0xc79   :  { %v4567_v35 = vpop.eup %4566  ;;  %v929_v38 = vmul.f32 %v4565_v33, %v4561_v11  ;;  %v1004_v47 = vpop.permute.xlu1 %1003 }
 0xc7a   :  { %v4569_v36 = vpop.eup %4568  ;;  %v926_v39 = vmul.f32 %v4567_v35, %v4559_v10  ;;  %v1006_v51 = vpop.permute.xlu0 %1005 }
 0xc7b   :  { %v928_v41 = vmul.f32 %v4569_v36, %v4557_v8 }
 0xc7c   :  { %v4571_v37 = vpop.eup %4570 }
 0xc7d   :  { %v927_v40 = vmul.f32 %v4571_v37, %v4563_v14  ;;  %v931_v43 = vpack.c.bf16 %v929_v38, %v928_v41  ;;  %v1008_v57 = vpop.permute.xlu1 %1007 }
 0xc7f   :  { %v930_v42 = vpack.c.bf16 %v927_v40, %v926_v39 }
 0xc81   :  { %4200 = vmatprep.mubr.msk.bf16.mxu0 %vm228_vm1, %v930_v42 }
 0xc82   :  { %4201 = vmatmul.mubr.msk.bf16.vlgmr.msra.gmra.mrb[20].mxu0 %vm228_vm1, %v931_v43 }
 0xc83   :  { %4205 = vmatpush3.bf16.msra.mxu0 %v4503_v44 }
 0xc84   :  { %4206 = vmatprep.subr.bf16.mxu0 %v4504_v45 }
 0xc87   :  { %4207 = vmatpush3.bf16.msra.mxu0 %v4504_v45 }
 0xd55   :  { %v4202_v48 = vpop.f32.mrb[20].mxu0 }
 0xd56   :  { %v995_v49 = vmul.f32 %v4202_v48, %v5067_v19  ;;  %v978_v50 = vpop.f32.mrb[21].mxu0 }
 0xd57   :  { %v993_v52 = vmul.f32 %v978_v50, %v5063_v17  ;;  %v4203_v53 = vpop.f32.mrb[22].mxu0 }
 0xd58   :  { %v1015_v54 = vadd.f32 %v1006_v51, %v995_v49  ;;  %v996_v55 = vmul.f32 %v4203_v53, %v5069_v20  ;;  %v981_v56 = vpop.f32.mrb[23].mxu0 }
 0xd59   :  { %v1013_v58 = vadd.f32 %v1002_v46, %v993_v52  ;;  %v994_v59 = vmul.f32 %v981_v56, %v5065_v18 }
 0xd5a   :  { %v1023_v60 = vmin.f32 %v1015_v54, 0.0  ;;  %v1016_v61 = vadd.f32 %v1008_v57, %v996_v55  ;;  %vm1019_vm6 = vcmp.gt.f32.partialorder %v1015_v54, 0.0 }
 0xd5b   :  { %v1021_v62 = vmin.f32 %v1013_v58, 0.0  ;;  %v1014_v63 = vadd.f32 %v1004_v47, %v994_v59  ;;  %vm1017_vm8 = vcmp.gt.f32.partialorder %v1013_v58, 0.0 }
 0xd5c   :  { %v1029_v0 = vmul.f32 1.442695, %v1023_v60  ;;  %v1024_v1 = vmin.f32 %v1016_v61, 0.0  ;;  %vm1020_vm7 = vcmp.gt.f32.partialorder %v1016_v61, 0.0 }
 0xd5d   :  { %v1025_v2 = vmul.f32 1.442695, %v1021_v62  ;;  %v1022_v3 = vmin.f32 %v1014_v63, 0.0  ;;  %vm1018_vm9 = vcmp.gt.f32.partialorder %v1014_v63, 0.0 }
 0xd5e   :  { %4572 = vpow2.f32 %v1029_v0  ;;  %v1031_v4 = vmul.f32 1.442695, %v1024_v1 }
 0xd5f   :  { %4574 = vpow2.f32 %v1025_v2  ;;  %v1027_v5 = vmul.f32 1.442695, %v1022_v3 }
 0xd60   :  { %4576 = vpow2.f32 %v1031_v4 }
 0xd61   :  { %4578 = vpow2.f32 %v1027_v5 }
 0xd68   :  { %v4573_v6 = vpop.eup %4572 }
 0xd69   :  { %v4575_v7 = vpop.eup %4574  ;;  %v3898_v8 = vadd.f32 -1.0, %v4573_v6 }
 0xd6a   :  { %v4577_v9 = vpop.eup %4576  ;;  %v3896_v10 = vadd.f32 -1.0, %v4575_v7 }
 0xd6b   :  { %v4579_v11 = vpop.eup %4578  ;;  %v3899_v12 = vadd.f32 -1.0, %v4577_v9  ;;  %v1039_v14 = vsel %vm1019_vm6, %v1015_v54, %v3898_v8 }
 0xd6c   :  { %v3897_v13 = vadd.f32 -1.0, %v4579_v11  ;;  %v1037_v16 = vsel %vm1017_vm8, %v1013_v58, %v3896_v10 }
 0xd6d   :  { %v1040_v15 = vsel %vm1020_vm7, %v1016_v61, %v3899_v12 }
 0xd6e   :  { %v1047_v21 = vpack.c.bf16 %v1040_v15, %v1039_v14  ;;  %v1038_v25 = vsel %vm1018_vm9, %v1014_v63, %v3897_v13 }
 0xd6f   :  { %v1046_v30 = vpack.c.bf16 %v1038_v25, %v1037_v16 }
 0xd71   :  { %4208 = vmatprep.mubr.msk.bf16.mxu0 %vm228_vm1, %v1046_v30 }
 0xd72   :  { %4209 = vmatmul.mubr.msk.bf16.vlgmr.msra.gmra.mrb[24].mxu0 %vm228_vm1, %v1047_v21  ;;  %v1321_v21 = vld [vmem:[%s4909_s12] sm:$0xf]  ;;  %s4825_s12 = smov 16  }
 0xe45   :  { %v4210_v31 = vpop.f32.mrb[24].mxu0 }
 0xe46   :  { %v1106_v33 = vpop.f32.mrb[25].mxu0  ;;  %v5179_v36 = vadd.f32 %v4210_v31, %v3900_v32 }
 0xe47   :  { %v4211_v35 = vpop.f32.mrb[26].mxu0  ;;  %v5183_v39 = vadd.f32 %v3900_v32, %v1106_v33 }
 0xe48   :  { %v5181_v37 = vadd.f32 %v4211_v35, %v3900_v32  ;;  %v1109_v38 = vpop.f32.mrb[27].mxu0  ;;  %v143_v35 = vld [vmem:[%s4844_s9] sm:$0xff] }
 0xe49   :  { %v5185_v40 = vadd.f32 %v3900_v32, %v1109_v38  ;;  %v144_v38 = vld [vmem:[%s4844_s9 + $0x8] sm:$0xff] }
 0xe4a   :  { %v1122_v41 = vpack.c.bf16 %v5181_v37, %v5179_v36 }
 0xe4b   :  { %v1121_v42 = vpack.c.bf16 %v5185_v40, %v5183_v39 }
 0xe4c   :  { %1127 = vrot.lane.b32.xlu1 %v1122_v41, %s4823_s17 }
 0xe4d   :  { %1125 = vrot.lane.b32.xlu0 %v1121_v42, %s4823_s17  ;;  %4216 = vmatprep.mubr.msk.bf16.mxu1 %vm164_vm0, %v1121_v42 }
 0xebe   :  { %v1128_v45 = vpop.permute.xlu1 %1127 }
 0xebf   :  { %v1126_v43 = vpop.permute.xlu0 %1125  ;;  %v1139_v46 = vsel %vm164_vm0, %v1128_v45, 0 }
 0xec0   :  { %4435 = vmatprep.subr.msk.bf16.mxu1 %vm164_vm0, %v1126_v43  ;;  %v1136_v44 = vsel %vm164_vm0, %v1126_v43, 0 }
 0xec1   :  { %4213 = vmatpush3.bf16.xpose.msra.mxu1 %v1136_v44 }
 0xec2   :  { %4436 = vmatprep.subr.msk.bf16.mxu1 %vm164_vm0, %v1128_v45  ;;  %v1323_v45 = vpack.c.bf16 %v144_v38, %v143_v35 }
 0xec9   :  { %4215 = vmatpush3.bf16.xpose.msra.mxu1 %v1139_v46 }
 0xed0   :  { %4217 = vmatmul.mubr.msk.bf16.vlgmr.msra.gmra.mrb[12].mxu1 %vm164_vm0, %v1122_v41 }
 0xfa3   :  { %v4218_v47 = vpop.f32.mrb[12].mxu1 }
 0xfa4   :  { %v1175_v48 = vpop.f32.mrb[13].mxu1  ;;  %v1184_v52 = vadd.f32 %v4218_v47, %v5023_v22  ;;  %v1340_v47 = vsel %vm1338_vm10, %v1321_v21, 0 }
 0xfa5   :  { %v1176_v49 = vadd.f32 %v1175_v48, %v5026_v23  ;;  %v4219_v50 = vpop.f32.mrb[14].mxu1  ;;  %v145_v48 = vld [vmem:[%s4844_s9 + $0x10] sm:$0xff] }
 0xfa6   :  { %v1178_v51 = vpop.f32.mrb[15].mxu1  ;;  %v1187_v56 = vadd.f32 %v4219_v50, %v5037_v34  ;;  %v1196_v57 = vsel %vm228_vm1, %v1184_v52, -inf }
 0xfa7   :  { %v1179_v53 = vadd.f32 %v1178_v51, %v5030_v27  ;;  %v1190_v54 = vsel %vm228_vm1, %v1176_v49, -inf }
 0xfa8   :  { %1191 = vmax.xlane.f32.xlu0 %v1190_v54  ;;  %v1199_v58 = vsel %vm228_vm1, %v1187_v56, -inf }
 0xfa9   :  { %v1193_v55 = vsel %vm228_vm1, %v1179_v53, -inf }
 0xfaa   :  { %1194 = vmax.xlane.f32.xlu1 %v1193_v55 }
 0xfac   :  { %1197 = vmax.xlane.f32.xlu0 %v1196_v57 }
 0xfb0   :  { %1200 = vmax.xlane.f32.xlu0 %v1199_v58 }
0x1035   :  { %v1192_v23 = vpop.xlane.xlu0 %1191 }
0x1036   :  { %v1202_v59 = vsub.f32 %v1176_v49, %v1192_v23  ;;  %v146_v49 = vld [vmem:[%s4844_s9 + $0x18] sm:$0xff]  ;;  %s5814_s9 = sld [smem:[#allocation7_spill]] }
0x1037   :  { %v1195_v60 = vpop.xlane.xlu1 %1194  ;;  %v1324_v50 = vpack.c.bf16 %v146_v49, %v145_v48 }
0x1038   :  { %v1206_v27 = vmul.f32 1.442695, %v1202_v59  ;;  %v1203_v62 = vsub.f32 %v1179_v53, %v1195_v60 }
0x1039   :  { %v1198_v22 = vpop.xlane.xlu0 %1197 }
0x103a   :  { %v1204_v61 = vsub.f32 %v1184_v52, %v1198_v22  ;;  %v1208_v2 = vmul.f32 1.442695, %v1203_v62 }
0x103c   :  { %v1210_v63 = vmul.f32 1.442695, %v1204_v61 }
0x103d   :  { %v1201_v0 = vpop.xlane.xlu0 %1200 }
0x103e   :  { %4580 = vpow2.f32 %v1210_v63  ;;  %v1205_v1 = vsub.f32 %v1187_v56, %v1201_v0  ;;  %v3909_v56 = vld [vmem:[%s4914_s20] ss:$0 sm:$0xff]  ;;  %s5821_s20 = sld [smem:[#allocation14_spill]] }
0x103f   :  { %4582 = vpow2.f32 %v1206_v27 }
0x1040   :  { %v1212_v34 = vmul.f32 1.442695, %v1205_v1 }
0x1042   :  { %4584 = vpow2.f32 %v1212_v34 }
0x1043   :  { %4586 = vpow2.f32 %v1208_v2 }
0x1048   :  { %v4581_v3 = vpop.eup %4580 }
0x1049   :  { %v1220_v4 = vsel %vm228_vm1, %v4581_v3, 0.0  ;;  %v4583_v5 = vpop.eup %4582 }
0x104a   :  { %1221 = vadd.xlane.f32.xlu1 %v1220_v4  ;;  %v1214_v7 = vsel %vm228_vm1, %v4583_v5, 0.0  ;;  %v5252_v4 = vld [vmem:[%s4849_s13] sm:$0xff] }
0x104c   :  { %v4585_v6 = vpop.eup %4584 }
0x104d   :  { %v1223_v8 = vsel %vm228_vm1, %v4585_v6, 0.0  ;;  %v4587_v9 = vpop.eup %4586 }
0x104e   :  { %1215 = vadd.xlane.f32.xlu1 %v1214_v7  ;;  %1224 = vadd.xlane.f32.xlu0 %v1223_v8  ;;  %v1217_v10 = vsel %vm228_vm1, %v4587_v9, 0.0  ;;  %v5256_v8 = vld [vmem:[%s4849_s13 + $0x10] sm:$0xff] }
0x1052   :  { %1218 = vadd.xlane.f32.xlu0 %v1217_v10  ;;  %v5260_v10 = vld [vmem:[%s4849_s13 + $0x8] sm:$0xff] }
0x105f   :  { %1236 = vrot.lane.b32.xlu1 %v1121_v42, %s4819_s0 }
0x1068   :  { %1238 = vrot.lane.b32.xlu0 %v1122_v41, %s4819_s0 }
0x10d7   :  { %v1222_v11 = vpop.xlane.xlu1 %1221 }
0x10db   :  { %v1216_v12 = vpop.xlane.xlu1 %1215  ;;  %v1225_v13 = vpop.xlane.xlu0 %1224 }
0x10dc   :  { %4588 = vrcp.f32 %v1225_v13 }
0x10dd   :  { %4590 = vrcp.f32 %v1216_v12 }
0x10de   :  { %4592 = vrcp.f32 %v1222_v11 }
0x10df   :  { %v1237_v14 = vpop.permute.xlu1 %1236  ;;  %v1219_v15 = vpop.xlane.xlu0 %1218 }
0x10e0   :  { %4594 = vrcp.f32 %v1219_v15  ;;  %4220 = vmatprep.subr.bf16.mxu0 %v1237_v14 }
0x10e1   :  { %4221 = vmatpush3.bf16.msra.mxu0 %v1237_v14  ;;  %v5266_v14 = vld [vmem:[%s4849_s13 + $0x18] sm:$0xff] }
0x10e3   :  { %v1239_v16 = vpop.permute.xlu0 %1238 }
0x10e4   :  { %4222 = vmatprep.subr.bf16.mxu0 %v1239_v16 }
0x10e5   :  { %4223 = vmatpush3.bf16.msra.mxu0 %v1239_v16 }
0x10e6   :  { %4437 = vmatprep.subr.msk.bf16.mxu0 %vm1338_vm10, %v1321_v21  ;;  %v4589_v25 = vpop.eup %4588 }
0x10e7   :  { %v4591_v30 = vpop.eup %4590  ;;  %v1233_v33 = vmul.f32 %v4589_v25, %v4585_v6 }
0x10e8   :  { %v4593_v31 = vpop.eup %4592  ;;  %v1230_v41 = vmul.f32 %v4591_v30, %v4583_v5 }
0x10e9   :  { %v1232_v43 = vmul.f32 %v4593_v31, %v4581_v3 }
0x10ea   :  { %v4595_v32 = vpop.eup %4594 }
0x10eb   :  { %v1231_v42 = vmul.f32 %v4595_v32, %v4587_v9  ;;  %v1235_v46 = vpack.c.bf16 %v1233_v33, %v1232_v43 }
0x10ed   :  { %v1234_v44 = vpack.c.bf16 %v1231_v42, %v1230_v41 }
0x10ef   :  { %4224 = vmatprep.mubr.msk.bf16.mxu0 %vm228_vm1, %v1234_v44 }
0x10f0   :  { %4225 = vmatmul.mubr.msk.bf16.vlgmr.msra.gmra.mrb[28].mxu0 %vm228_vm1, %v1235_v46 }
0x10f1   :  { %4229 = vmatpush3.bf16.msra.mxu0 %v1340_v47  ;;  %4230 = vmatprep.mubr.msk.bf16.mxu0 %vm1331_vm11, %v1323_v45 }
0x10f8   :  { %4231 = vmatmul.mubr.msk.bf16.vlgmr.msra.gmra.mrb[32].mxu0 %vm1331_vm11, %v1324_v50 }
0x11c3   :  { %v5222_v51 = vpop.f32.mrb[28].mxu0 }
0x11c4   :  { %v5224_v52 = vpop.f32.mrb[29].mxu0 }
0x11c5   :  { %v5226_v53 = vpop.f32.mrb[30].mxu0 }
0x11c6   :  { %v5228_v54 = vpop.f32.mrb[31].mxu0 }
0x11cb   :  { %v4232_v55 = vpop.f32.mrb[32].mxu0 }
0x11cc   :  { %v1376_v57 = vpop.f32.mrb[33].mxu0  ;;  %v5239_v27 = vadd.f32 %v4232_v55, %v3909_v56 }
0x11cd   :  { %v4233_v58 = vpop.f32.mrb[34].mxu0  ;;  %v5231_v59 = vadd.f32 %v3909_v56, %v1376_v57 }
0x11ce   :  { %v1379_v23 = vpop.f32.mrb[35].mxu0  ;;  %v5235_v22 = vadd.f32 %v4233_v58, %v3909_v56 }
0x11cf   :  { %v5233_v60 = vadd.f32 %v3909_v56, %v1379_v23 }
0x11d0   :  { %v1392_v62 = vpack.c.bf16 %v5235_v22, %v5239_v27 }
0x11d1   :  { %v1391_v61 = vpack.c.bf16 %v5233_v60, %v5231_v59 }
0x11d3   :  { %1395 = vrot.lane.b32.xlu1 %v1391_v61, %s4819_s0  ;;  %4238 = vmatprep.mubr.msk.bf16.mxu1 %vm228_vm1, %v1391_v61 }
0x11d7   :  { %1397 = vrot.lane.b32.xlu1 %v1392_v62, %s4819_s0 }
0x1245   :  { %v1396_v63 = vpop.permute.xlu1 %1395 }
0x1246   :  { %4438 = vmatprep.subr.msk.bf16.mxu1 %vm228_vm1, %v1396_v63  ;;  %v1406_v0 = vsel %vm228_vm1, %v1396_v63, 0 }
0x1247   :  { %4235 = vmatpush3.bf16.xpose.msra.mxu1 %v1406_v0 }
0x1249   :  { %v1398_v1 = vpop.permute.xlu1 %1397 }
0x124a   :  { %4439 = vmatprep.subr.msk.bf16.mxu1 %vm228_vm1, %v1398_v1  ;;  %v1409_v2 = vsel %vm228_vm1, %v1398_v1, 0 }
0x124f   :  { %4237 = vmatpush3.bf16.xpose.msra.mxu1 %v1409_v2 }
0x1256   :  { %4239 = vmatmul.mubr.msk.bf16.vlgmr.msra.gmra.mrb[16].mxu1 %vm228_vm1, %v1392_v62 }
0x1329   :  { %v4240_v34 = vpop.f32.mrb[16].mxu1 }
0x132a   :  { %v1445_v3 = vpop.f32.mrb[17].mxu1  ;;  %v1454_v9 = vadd.f32 %v5256_v8, %v4240_v34 }
0x132b   :  { %v1446_v5 = vadd.f32 %v5252_v4, %v1445_v3  ;;  %v4241_v6 = vpop.f32.mrb[18].mxu1 }
0x132c   :  { %v1448_v7 = vpop.f32.mrb[19].mxu1  ;;  %v1457_v15 = vadd.f32 %v5266_v14, %v4241_v6  ;;  %v1466_v16 = vsel %vm228_vm1, %v1454_v9, -inf }
0x132d   :  { %v1449_v11 = vadd.f32 %v5260_v10, %v1448_v7  ;;  %v1460_v12 = vsel %vm228_vm1, %v1446_v5, -inf  ;;  %v4505_v7 = vld [vmem:[%s5814_s9] sm:$0xff]  }
0x132e   :  { %1461 = vmax.xlane.f32.xlu0 %v1460_v12  ;;  %v1469_v21 = vsel %vm228_vm1, %v1457_v15, -inf }
0x132f   :  { %v1463_v13 = vsel %vm228_vm1, %v1449_v11, -inf }
0x1330   :  { %1464 = vmax.xlane.f32.xlu1 %v1463_v13 }
0x1332   :  { %1467 = vmax.xlane.f32.xlu0 %v1466_v16 }
0x1336   :  { %1470 = vmax.xlane.f32.xlu0 %v1469_v21 }
0x13bb   :  { %v1462_v25 = vpop.xlane.xlu0 %1461 }
0x13bc   :  { %v1472_v30 = vsub.f32 %v1446_v5, %v1462_v25 }
0x13bd   :  { %v1465_v31 = vpop.xlane.xlu1 %1464 }
0x13be   :  { %v1476_v35 = vmul.f32 1.442695, %v1472_v30  ;;  %v1473_v38 = vsub.f32 %v1449_v11, %v1465_v31 }
0x13bf   :  { %v1468_v32 = vpop.xlane.xlu0 %1467 }
0x13c0   :  { %v1474_v33 = vsub.f32 %v1454_v9, %v1468_v32  ;;  %v1478_v44 = vmul.f32 1.442695, %v1473_v38  ;;  %v4506_v9 = vld [vmem:[%s5814_s9 + $0x8] sm:$0xff]  }
0x13c2   :  { %v1480_v41 = vmul.f32 1.442695, %v1474_v33 }
0x13c3   :  { %v1471_v42 = vpop.xlane.xlu0 %1470 }
0x13c4   :  { %4596 = vpow2.f32 %v1480_v41  ;;  %v1475_v43 = vsub.f32 %v1457_v15, %v1471_v42 }
0x13c5   :  { %4598 = vpow2.f32 %v1476_v35 }
0x13c6   :  { %v1482_v45 = vmul.f32 1.442695, %v1475_v43 }
0x13c8   :  { %4600 = vpow2.f32 %v1482_v45 }
0x13c9   :  { %4602 = vpow2.f32 %v1478_v44 }
0x13ce   :  { %v4597_v46 = vpop.eup %4596 }
0x13cf   :  { %v1490_v47 = vsel %vm228_vm1, %v4597_v46, 0.0  ;;  %v4599_v48 = vpop.eup %4598 }
0x13d0   :  { %1491 = vadd.xlane.f32.xlu1 %v1490_v47  ;;  %v1484_v50 = vsel %vm228_vm1, %v4599_v48, 0.0 }
0x13d2   :  { %v4601_v49 = vpop.eup %4600 }
0x13d3   :  { %v1493_v55 = vsel %vm228_vm1, %v4601_v49, 0.0  ;;  %v4603_v56 = vpop.eup %4602 }
0x13d4   :  { %1485 = vadd.xlane.f32.xlu1 %v1484_v50  ;;  %1494 = vadd.xlane.f32.xlu0 %v1493_v55  ;;  %v1487_v57 = vsel %vm228_vm1, %v4603_v56, 0.0 }
0x13d8   :  { %1488 = vadd.xlane.f32.xlu0 %v1487_v57 }
0x13e5   :  { %1506 = vrot.lane.b32.xlu1 %v1391_v61, %s4820_s5 }
0x13e9   :  { %1575 = vrot.lane.b32.xlu1 %v5231_v59, %s4821_s29 }
0x13ed   :  { %1577 = vrot.lane.b32.xlu1 %v5233_v60, %s4821_s29 }
0x13ee   :  { %1508 = vrot.lane.b32.xlu0 %v1392_v62, %s4820_s5 }
0x13f1   :  { %1581 = vrot.lane.b32.xlu1 %v5235_v22, %s4821_s29 }
0x13f2   :  { %1579 = vrot.lane.b32.xlu0 %v5239_v27, %s4821_s29 }
0x145d   :  { %v1492_v58 = vpop.xlane.xlu1 %1491 }
0x1461   :  { %v1486_v23 = vpop.xlane.xlu1 %1485  ;;  %v1495_v63 = vpop.xlane.xlu0 %1494 }
0x1462   :  { %4604 = vrcp.f32 %v1495_v63 }
0x1463   :  { %4606 = vrcp.f32 %v1486_v23 }
0x1464   :  { %4608 = vrcp.f32 %v1492_v58 }
0x1465   :  { %v1507_v61 = vpop.permute.xlu1 %1506  ;;  %v1489_v0 = vpop.xlane.xlu0 %1488 }
0x1466   :  { %4610 = vrcp.f32 %v1489_v0  ;;  %4242 = vmatprep.subr.bf16.mxu0 %v1507_v61 }
0x1467   :  { %4243 = vmatpush3.bf16.msra.mxu0 %v1507_v61 }
0x1469   :  { %v1509_v59 = vpop.permute.xlu0 %1508  ;;  %v1576_v11 = vpop.permute.xlu1 %1575 }
0x146a   :  { %4244 = vmatprep.subr.bf16.mxu0 %v1509_v59 }
0x146b   :  { %4245 = vmatpush3.bf16.msra.mxu0 %v1509_v59 }
0x146c   :  { %v4605_v60 = vpop.eup %4604  ;;  %4250 = vmatprep.subr.bf16.mxu0 %v4505_v7 }
0x146d   :  { %v4607_v22 = vpop.eup %4606  ;;  %v1503_v1 = vmul.f32 %v4605_v60, %v4601_v49  ;;  %v1578_v12 = vpop.permute.xlu1 %1577 }
0x146e   :  { %v4609_v62 = vpop.eup %4608  ;;  %v1500_v2 = vmul.f32 %v4607_v22, %v4599_v48  ;;  %v1580_v21 = vpop.permute.xlu0 %1579 }
0x146f   :  { %v1502_v3 = vmul.f32 %v4609_v62, %v4597_v46 }
0x1470   :  { %v4611_v27 = vpop.eup %4610 }
0x1471   :  { %v1501_v34 = vmul.f32 %v4611_v27, %v4603_v56  ;;  %v1505_v6 = vpack.c.bf16 %v1503_v1, %v1502_v3  ;;  %v1582_v35 = vpop.permute.xlu1 %1581  ;;  %v3920_v3 = vld [vmem:[%s5815_s8] ss:$0 sm:$0xff] }
0x1473   :  { %v1504_v5 = vpack.c.bf16 %v1501_v34, %v1500_v2 }
0x1475   :  { %4246 = vmatprep.mubr.msk.bf16.mxu0 %vm228_vm1, %v1504_v5 }
0x1476   :  { %4247 = vmatmul.mubr.msk.bf16.vlgmr.msra.gmra.mrb[36].mxu0 %vm228_vm1, %v1505_v6 }
0x1477   :  { %4251 = vmatpush3.bf16.msra.mxu0 %v4505_v7 }
0x1478   :  { %4252 = vmatprep.subr.bf16.mxu0 %v4506_v9 }
0x147b   :  { %4253 = vmatpush3.bf16.msra.mxu0 %v4506_v9 }
0x1549   :  { %v4248_v13 = vpop.f32.mrb[36].mxu0 }
0x154a   :  { %v1569_v15 = vmul.f32 %v4248_v13, %v5067_v19  ;;  %v1552_v16 = vpop.f32.mrb[37].mxu0 }
0x154b   :  { %v1567_v25 = vmul.f32 %v1552_v16, %v5063_v17  ;;  %v4249_v30 = vpop.f32.mrb[38].mxu0 }
0x154c   :  { %v1589_v31 = vadd.f32 %v1580_v21, %v1569_v15  ;;  %v1570_v32 = vmul.f32 %v4249_v30, %v5069_v20  ;;  %v1555_v33 = vpop.f32.mrb[39].mxu0 }
0x154d   :  { %v1587_v38 = vadd.f32 %v1576_v11, %v1567_v25  ;;  %v1568_v41 = vmul.f32 %v1555_v33, %v5065_v18 }
0x154e   :  { %v1597_v42 = vmin.f32 %v1589_v31, 0.0  ;;  %v1590_v43 = vadd.f32 %v1582_v35, %v1570_v32  ;;  %vm1593_vm12 = vcmp.gt.f32.partialorder %v1589_v31, 0.0 }
0x154f   :  { %v1595_v44 = vmin.f32 %v1587_v38, 0.0  ;;  %v1588_v45 = vadd.f32 %v1578_v12, %v1568_v41  ;;  %vm1591_vm14 = vcmp.gt.f32.partialorder %v1587_v38, 0.0 }
0x1550   :  { %v1603_v46 = vmul.f32 1.442695, %v1597_v42  ;;  %v1598_v47 = vmin.f32 %v1590_v43, 0.0  ;;  %vm1594_vm13 = vcmp.gt.f32.partialorder %v1590_v43, 0.0 }
0x1551   :  { %v1599_v48 = vmul.f32 1.442695, %v1595_v44  ;;  %v1596_v49 = vmin.f32 %v1588_v45, 0.0  ;;  %vm1592_vm15 = vcmp.gt.f32.partialorder %v1588_v45, 0.0 }
0x1552   :  { %4612 = vpow2.f32 %v1603_v46  ;;  %v1605_v50 = vmul.f32 1.442695, %v1598_v47 }
0x1553   :  { %4614 = vpow2.f32 %v1599_v48  ;;  %v1601_v55 = vmul.f32 1.442695, %v1596_v49 }
0x1554   :  { %4616 = vpow2.f32 %v1605_v50 }
0x1555   :  { %4618 = vpow2.f32 %v1601_v55 }
0x155c   :  { %v4613_v56 = vpop.eup %4612 }
0x155d   :  { %v4615_v57 = vpop.eup %4614  ;;  %v3918_v58 = vadd.f32 -1.0, %v4613_v56 }
0x155e   :  { %v4617_v23 = vpop.eup %4616  ;;  %v3916_v63 = vadd.f32 -1.0, %v4615_v57 }
0x155f   :  { %v4619_v61 = vpop.eup %4618  ;;  %v3919_v0 = vadd.f32 -1.0, %v4617_v23  ;;  %v1613_v60 = vsel %vm1593_vm12, %v1589_v31, %v3918_v58 }
0x1560   :  { %v3917_v59 = vadd.f32 -1.0, %v4619_v61  ;;  %v1611_v62 = vsel %vm1591_vm14, %v1587_v38, %v3916_v63  ;;  %vm3724_vm14 = vcmask 123904  }
0x1561   :  { %v1614_v22 = vsel %vm1594_vm13, %v1590_v43, %v3919_v0 }
0x1562   :  { %v1621_v27 = vpack.c.bf16 %v1614_v22, %v1613_v60  ;;  %v1612_v1 = vsel %vm1592_vm15, %v1588_v45, %v3917_v59 }
0x1563   :  { %v1620_v2 = vpack.c.bf16 %v1612_v1, %v1611_v62 }
0x1565   :  { %4254 = vmatprep.mubr.msk.bf16.mxu0 %vm228_vm1, %v1620_v2 }
0x1566   :  { %4255 = vmatmul.mubr.msk.bf16.vlgmr.msra.gmra.mrb[40].mxu0 %vm228_vm1, %v1621_v27 }
0x1639   :  { %v4256_v34 = vpop.f32.mrb[40].mxu0 }
0x163a   :  { %v1680_v5 = vpop.f32.mrb[41].mxu0  ;;  %v5296_v7 = vadd.f32 %v4256_v34, %v3920_v3 }
0x163b   :  { %v4257_v6 = vpop.f32.mrb[42].mxu0  ;;  %v1681_v12 = vadd.f32 %v3920_v3, %v1680_v5 }
0x163c   :  { %v5298_v9 = vadd.f32 %v4257_v6, %v3920_v3  ;;  %v1683_v11 = vpop.f32.mrb[43].mxu0 }
0x163d   :  { %v1684_v13 = vadd.f32 %v3920_v3, %v1683_v11 }
0x163e   :  { %v1696_v15 = vpack.c.bf16 %v5298_v9, %v5296_v7 }
0x163f   :  { %v1695_v16 = vpack.c.bf16 %v1684_v13, %v1681_v12 }
0x1640   :  { %1701 = vrot.lane.b32.xlu1 %v1696_v15, %s4823_s17 }
0x1641   :  { %1699 = vrot.lane.b32.xlu0 %v1695_v16, %s4823_s17  ;;  %4262 = vmatprep.mubr.msk.bf16.mxu1 %vm164_vm0, %v1695_v16 }
0x16b2   :  { %v1702_v30 = vpop.permute.xlu1 %1701 }
0x16b3   :  { %v1700_v21 = vpop.permute.xlu0 %1699  ;;  %v1713_v31 = vsel %vm164_vm0, %v1702_v30, 0 }
0x16b4   :  { %4440 = vmatprep.subr.msk.bf16.mxu1 %vm164_vm0, %v1700_v21  ;;  %v1710_v25 = vsel %vm164_vm0, %v1700_v21, 0 }
0x16b5   :  { %4259 = vmatpush3.bf16.xpose.msra.mxu1 %v1710_v25 }
0x16b6   :  { %4441 = vmatprep.subr.msk.bf16.mxu1 %vm164_vm0, %v1702_v30 }
0x16bd   :  { %4261 = vmatpush3.bf16.xpose.msra.mxu1 %v1713_v31 }
0x16c4   :  { %4263 = vmatmul.mubr.msk.bf16.vlgmr.msra.gmra.mrb[20].mxu1 %vm164_vm0, %v1696_v15 }
0x1797   :  { %v4264_v32 = vpop.f32.mrb[20].mxu1 }
0x1798   :  { %v1749_v33 = vpop.f32.mrb[21].mxu1  ;;  %v1758_v42 = vadd.f32 %v5256_v8, %v4264_v32 }
0x1799   :  { %v1750_v35 = vadd.f32 %v5252_v4, %v1749_v33  ;;  %v4265_v38 = vpop.f32.mrb[22].mxu1 }
0x179a   :  { %v1752_v41 = vpop.f32.mrb[23].mxu1  ;;  %v1761_v46 = vadd.f32 %v5266_v14, %v4265_v38  ;;  %v1770_v47 = vsel %vm228_vm1, %v1758_v42, -inf }
0x179b   :  { %v1753_v43 = vadd.f32 %v5260_v10, %v1752_v41  ;;  %v1764_v44 = vsel %vm228_vm1, %v1750_v35, -inf  ;;  %v4507_v41 = vld [vmem:[%s5816_s14] sm:$0xff]  }
0x179c   :  { %1765 = vmax.xlane.f32.xlu0 %v1764_v44  ;;  %v1773_v48 = vsel %vm228_vm1, %v1761_v46, -inf }
0x179d   :  { %v1767_v45 = vsel %vm228_vm1, %v1753_v43, -inf }
0x179e   :  { %1768 = vmax.xlane.f32.xlu1 %v1767_v45 }
0x17a0   :  { %1771 = vmax.xlane.f32.xlu0 %v1770_v47 }
0x17a4   :  { %1774 = vmax.xlane.f32.xlu0 %v1773_v48 }
0x1829   :  { %v1766_v49 = vpop.xlane.xlu0 %1765 }
0x182a   :  { %v1776_v50 = vsub.f32 %v1750_v35, %v1766_v49 }
0x182b   :  { %v1769_v55 = vpop.xlane.xlu1 %1768 }
0x182c   :  { %v1780_v58 = vmul.f32 1.442695, %v1776_v50  ;;  %v1777_v23 = vsub.f32 %v1753_v43, %v1769_v55 }
0x182d   :  { %v1772_v56 = vpop.xlane.xlu0 %1771 }
0x182e   :  { %v1778_v57 = vsub.f32 %v1758_v42, %v1772_v56  ;;  %v1782_v59 = vmul.f32 1.442695, %v1777_v23 }
0x1830   :  { %v1784_v63 = vmul.f32 1.442695, %v1778_v57 }
0x1831   :  { %v1775_v61 = vpop.xlane.xlu0 %1774 }
0x1832   :  { %4620 = vpow2.f32 %v1784_v63  ;;  %v1779_v0 = vsub.f32 %v1761_v46, %v1775_v61 }
0x1833   :  { %4622 = vpow2.f32 %v1780_v58 }
0x1834   :  { %v1786_v60 = vmul.f32 1.442695, %v1779_v0 }
0x1836   :  { %4624 = vpow2.f32 %v1786_v60 }
0x1837   :  { %4626 = vpow2.f32 %v1782_v59 }
0x183c   :  { %v4621_v22 = vpop.eup %4620 }
0x183d   :  { %v1794_v62 = vsel %vm228_vm1, %v4621_v22, 0.0  ;;  %v4623_v27 = vpop.eup %4622 }
0x183e   :  { %1795 = vadd.xlane.f32.xlu1 %v1794_v62  ;;  %v1788_v2 = vsel %vm228_vm1, %v4623_v27, 0.0 }
0x1840   :  { %v4625_v1 = vpop.eup %4624 }
0x1841   :  { %v1797_v34 = vsel %vm228_vm1, %v4625_v1, 0.0  ;;  %v4627_v3 = vpop.eup %4626 }
0x1842   :  { %1789 = vadd.xlane.f32.xlu1 %v1788_v2  ;;  %1798 = vadd.xlane.f32.xlu0 %v1797_v34  ;;  %v1791_v5 = vsel %vm228_vm1, %v4627_v3, 0.0 }
0x1846   :  { %1792 = vadd.xlane.f32.xlu0 %v1791_v5 }
0x1853   :  { %1810 = vrot.lane.b32.xlu1 %v1695_v16, %s4819_s0 }
0x1857   :  { %1879 = vrot.lane.b32.xlu1 %v1681_v12, %s4824_s3 }
0x185b   :  { %1881 = vrot.lane.b32.xlu1 %v1684_v13, %s4824_s3 }
0x185c   :  { %1812 = vrot.lane.b32.xlu0 %v1696_v15, %s4819_s0 }
0x185f   :  { %1885 = vrot.lane.b32.xlu1 %v5298_v9, %s4824_s3 }
0x1860   :  { %1883 = vrot.lane.b32.xlu0 %v5296_v7, %s4824_s3 }
0x18cb   :  { %v1796_v6 = vpop.xlane.xlu1 %1795 }
0x18cf   :  { %v1790_v11 = vpop.xlane.xlu1 %1789  ;;  %v1799_v21 = vpop.xlane.xlu0 %1798 }
0x18d0   :  { %4628 = vrcp.f32 %v1799_v21 }
0x18d1   :  { %4630 = vrcp.f32 %v1790_v11 }
0x18d2   :  { %4632 = vrcp.f32 %v1796_v6 }
0x18d3   :  { %v1811_v25 = vpop.permute.xlu1 %1810  ;;  %v1793_v16 = vpop.xlane.xlu0 %1792 }
0x18d4   :  { %4634 = vrcp.f32 %v1793_v16  ;;  %4266 = vmatprep.subr.bf16.mxu0 %v1811_v25 }
0x18d5   :  { %4267 = vmatpush3.bf16.msra.mxu0 %v1811_v25 }
0x18d7   :  { %v1813_v12 = vpop.permute.xlu0 %1812  ;;  %v1880_v42 = vpop.permute.xlu1 %1879 }
0x18d8   :  { %4268 = vmatprep.subr.bf16.mxu0 %v1813_v12 }
0x18d9   :  { %4269 = vmatpush3.bf16.msra.mxu0 %v1813_v12 }
0x18da   :  { %v4629_v13 = vpop.eup %4628  ;;  %4274 = vmatprep.subr.bf16.mxu0 %v4507_v41 }
0x18db   :  { %v4631_v9 = vpop.eup %4630  ;;  %v1807_v7 = vmul.f32 %v4629_v13, %v4625_v1  ;;  %v1882_v43 = vpop.permute.xlu1 %1881 }
0x18dc   :  { %v4633_v15 = vpop.eup %4632  ;;  %v1804_v31 = vmul.f32 %v4631_v9, %v4623_v27  ;;  %v1884_v58 = vpop.permute.xlu0 %1883 }
0x18dd   :  { %v1806_v33 = vmul.f32 %v4633_v15, %v4621_v22  ;;  %v3929_v22 = vld [vmem:[%s5817_s19] ss:$0 sm:$0xff] }
0x18de   :  { %v4635_v30 = vpop.eup %4634 }
0x18df   :  { %v1805_v32 = vmul.f32 %v4635_v30, %v4627_v3  ;;  %v1809_v38 = vpack.c.bf16 %v1807_v7, %v1806_v33  ;;  %v1886_v55 = vpop.permute.xlu1 %1885 }
0x18e1   :  { %v1808_v35 = vpack.c.bf16 %v1805_v32, %v1804_v31 }
0x18e3   :  { %4270 = vmatprep.mubr.msk.bf16.mxu0 %vm228_vm1, %v1808_v35 }
0x18e4   :  { %4271 = vmatmul.mubr.msk.bf16.vlgmr.msra.gmra.mrb[44].mxu0 %vm228_vm1, %v1809_v38 }
0x18e5   :  { %4275 = vmatpush3.bf16.msra.mxu0 %v4507_v41 }
0x19b7   :  { %v4272_v44 = vpop.f32.mrb[44].mxu0 }
0x19b8   :  { %v1856_v45 = vpop.f32.mrb[45].mxu0  ;;  %v1873_v48 = vmul.f32 %v4272_v44, %v5067_v19 }
0x19b9   :  { %v1871_v46 = vmul.f32 %v1856_v45, %v5063_v17  ;;  %v4273_v47 = vpop.f32.mrb[46].mxu0 }
0x19ba   :  { %v1874_v49 = vmul.f32 %v4273_v47, %v5069_v20  ;;  %v1859_v50 = vpop.f32.mrb[47].mxu0  ;;  %v5343_v61 = vadd.f32 %v1884_v58, %v1873_v48 }
0x19bb   :  { %v1872_v56 = vmul.f32 %v1859_v50, %v5065_v18  ;;  %v5339_v23 = vadd.f32 %v1880_v42, %v1871_v46 }
0x19bc   :  { %v5337_v57 = vadd.f32 %v1886_v55, %v1874_v49 }
0x19bd   :  { %v5341_v63 = vadd.f32 %v1882_v43, %v1872_v56 }
0x19be   :  { %v1899_v59 = vpack.c.bf16 %v5337_v57, %v5343_v61 }
0x19bf   :  { %v1898_v0 = vpack.c.bf16 %v5341_v63, %v5339_v23 }
0x19c1   :  { %4276 = vmatprep.mubr.msk.bf16.mxu0 %vm164_vm0, %v1898_v0 }
0x19c2   :  { %4277 = vmatmul.mubr.msk.bf16.vlgmr.msra.gmra.mrb[48].mxu0 %vm164_vm0, %v1899_v59 }
0x1a95   :  { %v4278_v60 = vpop.f32.mrb[48].mxu0 }
0x1a96   :  { %v1952_v62 = vpop.f32.mrb[49].mxu0  ;;  %v5352_v1 = vadd.f32 %v4278_v60, %v3929_v22 }
0x1a97   :  { %v4279_v27 = vpop.f32.mrb[50].mxu0  ;;  %v1953_v3 = vadd.f32 %v3929_v22, %v1952_v62 }
0x1a98   :  { %v5354_v2 = vadd.f32 %v4279_v27, %v3929_v22  ;;  %v1955_v34 = vpop.f32.mrb[51].mxu0 }
0x1a99   :  { %v1956_v5 = vadd.f32 %v3929_v22, %v1955_v34 }
0x1a9a   :  { %v1968_v6 = vpack.c.bf16 %v5354_v2, %v5352_v1 }
0x1a9b   :  { %v1967_v11 = vpack.c.bf16 %v1956_v5, %v1953_v3 }
0x1a9c   :  { %1973 = vrot.lane.b32.xlu1 %v1968_v6, %s4819_s0 }
0x1a9d   :  { %1971 = vrot.lane.b32.xlu0 %v1967_v11, %s4819_s0  ;;  %4284 = vmatprep.mubr.msk.bf16.mxu1 %vm228_vm1, %v1967_v11 }
0x1b0e   :  { %v1974_v16 = vpop.permute.xlu1 %1973 }
0x1b0f   :  { %v1972_v21 = vpop.permute.xlu0 %1971  ;;  %v1985_v12 = vsel %vm228_vm1, %v1974_v16, 0 }
0x1b10   :  { %4442 = vmatprep.subr.msk.bf16.mxu1 %vm228_vm1, %v1972_v21  ;;  %v1982_v25 = vsel %vm228_vm1, %v1972_v21, 0 }
0x1b11   :  { %4281 = vmatpush3.bf16.xpose.msra.mxu1 %v1982_v25 }
0x1b12   :  { %4443 = vmatprep.subr.msk.bf16.mxu1 %vm228_vm1, %v1974_v16 }
0x1b19   :  { %4283 = vmatpush3.bf16.xpose.msra.mxu1 %v1985_v12 }
0x1b20   :  { %4285 = vmatmul.mubr.msk.bf16.vlgmr.msra.gmra.mrb[24].mxu1 %vm228_vm1, %v1968_v6 }
0x1bf3   :  { %v4286_v13 = vpop.f32.mrb[24].mxu1 }
0x1bf4   :  { %v2021_v9 = vpop.f32.mrb[25].mxu1  ;;  %v2030_v31 = vadd.f32 %v5256_v8, %v4286_v13 }
0x1bf5   :  { %v2022_v15 = vadd.f32 %v5252_v4, %v2021_v9  ;;  %v4287_v30 = vpop.f32.mrb[26].mxu1 }
0x1bf6   :  { %v2024_v7 = vpop.f32.mrb[27].mxu1  ;;  %v2033_v38 = vadd.f32 %v5266_v14, %v4287_v30  ;;  %v2042_v41 = vsel %vm228_vm1, %v2030_v31, -inf }
0x1bf7   :  { %v2025_v32 = vadd.f32 %v5260_v10, %v2024_v7  ;;  %v2036_v33 = vsel %vm228_vm1, %v2022_v15, -inf }
0x1bf8   :  { %2037 = vmax.xlane.f32.xlu0 %v2036_v33  ;;  %v2045_v42 = vsel %vm228_vm1, %v2033_v38, -inf }
0x1bf9   :  { %v2039_v35 = vsel %vm228_vm1, %v2025_v32, -inf }
0x1bfa   :  { %2040 = vmax.xlane.f32.xlu1 %v2039_v35  ;;  %v4508_v35 = vld [vmem:[%s5818_s24] sm:$0xff]  }
0x1bfc   :  { %2043 = vmax.xlane.f32.xlu0 %v2042_v41 }
0x1c00   :  { %2046 = vmax.xlane.f32.xlu0 %v2045_v42 }
0x1c85   :  { %v2038_v43 = vpop.xlane.xlu0 %2037 }
0x1c86   :  { %v2048_v44 = vsub.f32 %v2022_v15, %v2038_v43 }
0x1c87   :  { %v2041_v45 = vpop.xlane.xlu1 %2040 }
0x1c88   :  { %v2052_v48 = vmul.f32 1.442695, %v2048_v44  ;;  %v2049_v49 = vsub.f32 %v2025_v32, %v2041_v45 }
0x1c89   :  { %v2044_v46 = vpop.xlane.xlu0 %2043 }
0x1c8a   :  { %v2050_v47 = vsub.f32 %v2030_v31, %v2044_v46  ;;  %v2054_v58 = vmul.f32 1.442695, %v2049_v49 }
0x1c8c   :  { %v2056_v50 = vmul.f32 1.442695, %v2050_v47 }
0x1c8d   :  { %v2047_v55 = vpop.xlane.xlu0 %2046 }
0x1c8e   :  { %4636 = vpow2.f32 %v2056_v50  ;;  %v2051_v56 = vsub.f32 %v2033_v38, %v2047_v55  ;;  %v4509_v38 = vld [vmem:[%s5818_s24 + $0x8] sm:$0xff]  }
0x1c8f   :  { %4638 = vpow2.f32 %v2052_v48 }
0x1c90   :  { %v2058_v0 = vmul.f32 1.442695, %v2051_v56 }
0x1c92   :  { %4640 = vpow2.f32 %v2058_v0 }
0x1c93   :  { %4642 = vpow2.f32 %v2054_v58 }
0x1c98   :  { %v4637_v59 = vpop.eup %4636 }
0x1c99   :  { %v2066_v60 = vsel %vm228_vm1, %v4637_v59, 0.0  ;;  %v4639_v22 = vpop.eup %4638 }
0x1c9a   :  { %2067 = vadd.xlane.f32.xlu1 %v2066_v60  ;;  %v2060_v27 = vsel %vm228_vm1, %v4639_v22, 0.0 }
0x1c9c   :  { %v4641_v62 = vpop.eup %4640 }
0x1c9d   :  { %v2069_v34 = vsel %vm228_vm1, %v4641_v62, 0.0  ;;  %v4643_v21 = vpop.eup %4642 }
0x1c9e   :  { %2061 = vadd.xlane.f32.xlu1 %v2060_v27  ;;  %2070 = vadd.xlane.f32.xlu0 %v2069_v34  ;;  %v2063_v25 = vsel %vm228_vm1, %v4643_v21, 0.0 }
0x1ca2   :  { %2064 = vadd.xlane.f32.xlu0 %v2063_v25 }
0x1caf   :  { %2082 = vrot.lane.b32.xlu1 %v1967_v11, %s4820_s5 }
0x1cb3   :  { %2151 = vrot.lane.b32.xlu1 %v1953_v3, %s4821_s29 }
0x1cb7   :  { %2153 = vrot.lane.b32.xlu1 %v1956_v5, %s4821_s29 }
0x1cb8   :  { %2084 = vrot.lane.b32.xlu0 %v1968_v6, %s4820_s5 }
0x1cbb   :  { %2157 = vrot.lane.b32.xlu1 %v5354_v2, %s4821_s29 }
0x1cbc   :  { %2155 = vrot.lane.b32.xlu0 %v5352_v1, %s4821_s29 }
0x1d27   :  { %v2068_v16 = vpop.xlane.xlu1 %2067 }
0x1d2b   :  { %v2062_v12 = vpop.xlane.xlu1 %2061  ;;  %v2071_v13 = vpop.xlane.xlu0 %2070 }
0x1d2c   :  { %4644 = vrcp.f32 %v2071_v13 }
0x1d2d   :  { %4646 = vrcp.f32 %v2062_v12 }
0x1d2e   :  { %4648 = vrcp.f32 %v2068_v16 }
0x1d2f   :  { %v2083_v9 = vpop.permute.xlu1 %2082  ;;  %v2065_v11 = vpop.xlane.xlu0 %2064 }
0x1d30   :  { %4650 = vrcp.f32 %v2065_v11  ;;  %4288 = vmatprep.subr.bf16.mxu0 %v2083_v9 }
0x1d31   :  { %4289 = vmatpush3.bf16.msra.mxu0 %v2083_v9 }
0x1d33   :  { %v2085_v3 = vpop.permute.xlu0 %2084  ;;  %v2152_v41 = vpop.permute.xlu1 %2151 }
0x1d34   :  { %4290 = vmatprep.subr.bf16.mxu0 %v2085_v3 }
0x1d35   :  { %4291 = vmatpush3.bf16.msra.mxu0 %v2085_v3 }
0x1d36   :  { %v4645_v2 = vpop.eup %4644  ;;  %4296 = vmatprep.subr.bf16.mxu0 %v4508_v35 }
0x1d37   :  { %v4647_v5 = vpop.eup %4646  ;;  %v2079_v15 = vmul.f32 %v4645_v2, %v4641_v62  ;;  %v2154_v42 = vpop.permute.xlu1 %2153 }
0x1d38   :  { %v4649_v6 = vpop.eup %4648  ;;  %v2076_v30 = vmul.f32 %v4647_v5, %v4639_v22  ;;  %v2156_v46 = vpop.permute.xlu0 %2155 }
0x1d39   :  { %v2078_v31 = vmul.f32 %v4649_v6, %v4637_v59 }
0x1d3a   :  { %v4651_v1 = vpop.eup %4650 }
0x1d3b   :  { %v2077_v7 = vmul.f32 %v4651_v1, %v4643_v21  ;;  %v2081_v33 = vpack.c.bf16 %v2079_v15, %v2078_v31  ;;  %v2158_v56 = vpop.permute.xlu1 %2157 }
0x1d3d   :  { %v2080_v32 = vpack.c.bf16 %v2077_v7, %v2076_v30 }
0x1d3f   :  { %4292 = vmatprep.mubr.msk.bf16.mxu0 %vm228_vm1, %v2080_v32 }
0x1d40   :  { %4293 = vmatmul.mubr.msk.bf16.vlgmr.msra.gmra.mrb[52].mxu0 %vm228_vm1, %v2081_v33 }
0x1d41   :  { %4297 = vmatpush3.bf16.msra.mxu0 %v4508_v35 }
0x1d42   :  { %4298 = vmatprep.subr.bf16.mxu0 %v4509_v38 }
0x1d45   :  { %4299 = vmatpush3.bf16.msra.mxu0 %v4509_v38  ;;  %v3941_v38 = vld [vmem:[%s5819_s30] ss:$0 sm:$0xff] }
0x1e13   :  { %v4294_v43 = vpop.f32.mrb[52].mxu0 }
0x1e14   :  { %v2145_v44 = vmul.f32 %v4294_v43, %v5067_v19  ;;  %v2128_v45 = vpop.f32.mrb[53].mxu0 }
0x1e15   :  { %v2143_v47 = vmul.f32 %v2128_v45, %v5063_v17  ;;  %v4295_v48 = vpop.f32.mrb[54].mxu0 }
0x1e16   :  { %v2165_v49 = vadd.f32 %v2156_v46, %v2145_v44  ;;  %v2146_v50 = vmul.f32 %v4295_v48, %v5069_v20  ;;  %v2131_v55 = vpop.f32.mrb[55].mxu0 }
0x1e17   :  { %v2163_v58 = vadd.f32 %v2152_v41, %v2143_v47  ;;  %v2144_v0 = vmul.f32 %v2131_v55, %v5065_v18 }
0x1e18   :  { %v2173_v59 = vmin.f32 %v2165_v49, 0.0  ;;  %v2166_v60 = vadd.f32 %v2158_v56, %v2146_v50  ;;  %vm2169_vm2 = vcmp.gt.f32.partialorder %v2165_v49, 0.0 }
0x1e19   :  { %v2171_v22 = vmin.f32 %v2163_v58, 0.0  ;;  %v2164_v62 = vadd.f32 %v2154_v42, %v2144_v0  ;;  %vm2167_vm4 = vcmp.gt.f32.partialorder %v2163_v58, 0.0 }
0x1e1a   :  { %v2179_v27 = vmul.f32 1.442695, %v2173_v59  ;;  %v2174_v34 = vmin.f32 %v2166_v60, 0.0  ;;  %vm2170_vm3 = vcmp.gt.f32.partialorder %v2166_v60, 0.0 }
0x1e1b   :  { %v2175_v21 = vmul.f32 1.442695, %v2171_v22  ;;  %v2172_v25 = vmin.f32 %v2164_v62, 0.0  ;;  %vm2168_vm5 = vcmp.gt.f32.partialorder %v2164_v62, 0.0 }
0x1e1c   :  { %4652 = vpow2.f32 %v2179_v27  ;;  %v2181_v16 = vmul.f32 1.442695, %v2174_v34 }
0x1e1d   :  { %4654 = vpow2.f32 %v2175_v21  ;;  %v2177_v12 = vmul.f32 1.442695, %v2172_v25 }
0x1e1e   :  { %4656 = vpow2.f32 %v2181_v16 }
0x1e1f   :  { %4658 = vpow2.f32 %v2177_v12 }
0x1e26   :  { %v4653_v13 = vpop.eup %4652 }
0x1e27   :  { %v4655_v9 = vpop.eup %4654  ;;  %v3939_v11 = vadd.f32 -1.0, %v4653_v13 }
0x1e28   :  { %v4657_v3 = vpop.eup %4656  ;;  %v3937_v2 = vadd.f32 -1.0, %v4655_v9 }
0x1e29   :  { %v4659_v5 = vpop.eup %4658  ;;  %v3940_v6 = vadd.f32 -1.0, %v4657_v3  ;;  %v2189_v15 = vsel %vm2169_vm2, %v2165_v49, %v3939_v11 }
0x1e2a   :  { %v3938_v1 = vadd.f32 -1.0, %v4659_v5  ;;  %v2187_v7 = vsel %vm2167_vm4, %v2163_v58, %v3937_v2 }
0x1e2b   :  { %v2190_v30 = vsel %vm2170_vm3, %v2166_v60, %v3940_v6 }
0x1e2c   :  { %v2197_v31 = vpack.c.bf16 %v2190_v30, %v2189_v15  ;;  %v2188_v32 = vsel %vm2168_vm5, %v2164_v62, %v3938_v1 }
0x1e2d   :  { %v2196_v33 = vpack.c.bf16 %v2188_v32, %v2187_v7 }
0x1e2f   :  { %4300 = vmatprep.mubr.msk.bf16.mxu0 %vm228_vm1, %v2196_v33 }
0x1e30   :  { %4301 = vmatmul.mubr.msk.bf16.vlgmr.msra.gmra.mrb[56].mxu0 %vm228_vm1, %v2197_v31 }
0x1f03   :  { %v4302_v35 = vpop.f32.mrb[56].mxu0 }
0x1f04   :  { %v2256_v41 = vpop.f32.mrb[57].mxu0  ;;  %v5397_v43 = vadd.f32 %v4302_v35, %v3941_v38 }
0x1f05   :  { %v4303_v42 = vpop.f32.mrb[58].mxu0  ;;  %v5401_v46 = vadd.f32 %v3941_v38, %v2256_v41 }
0x1f06   :  { %v5399_v44 = vadd.f32 %v4303_v42, %v3941_v38  ;;  %v2259_v45 = vpop.f32.mrb[59].mxu0 }
0x1f07   :  { %v5403_v47 = vadd.f32 %v3941_v38, %v2259_v45 }
0x1f08   :  { %v5407_v48 = vpack.c.bf16 %v5399_v44, %v5397_v43 }
0x1f09   :  { %v2271_v49 = vpack.c.bf16 %v5403_v47, %v5401_v46 }
0x1f0a   :  { %2277 = vrot.lane.b32.xlu1 %v5407_v48, %s4823_s17 }
0x1f0b   :  { %2275 = vrot.lane.b32.xlu0 %v2271_v49, %s4823_s17  ;;  %4308 = vmatprep.mubr.msk.bf16.mxu1 %vm164_vm0, %v2271_v49 }
0x1f7c   :  { %v2278_v56 = vpop.permute.xlu1 %2277 }
0x1f7d   :  { %v2276_v50 = vpop.permute.xlu0 %2275  ;;  %v2289_v58 = vsel %vm164_vm0, %v2278_v56, 0 }
0x1f7e   :  { %4444 = vmatprep.subr.msk.bf16.mxu1 %vm164_vm0, %v2276_v50  ;;  %v2286_v55 = vsel %vm164_vm0, %v2276_v50, 0 }
0x1f7f   :  { %4305 = vmatpush3.bf16.xpose.msra.mxu1 %v2286_v55 }
0x1f80   :  { %4445 = vmatprep.subr.msk.bf16.mxu1 %vm164_vm0, %v2278_v56  ;;  %v4510_v56 = vld [vmem:[%s5820_s6] sm:$0xff]  }
0x1f87   :  { %4307 = vmatpush3.bf16.xpose.msra.mxu1 %v2289_v58 }
0x1f8e   :  { %4309 = vmatmul.mubr.msk.bf16.vlgmr.msra.gmra.mrb[28].mxu1 %vm164_vm0, %v5407_v48 }
0x2061   :  { %v4310_v0 = vpop.f32.mrb[28].mxu1 }
0x2062   :  { %v2325_v59 = vpop.f32.mrb[29].mxu1  ;;  %v2334_v27 = vadd.f32 %v5256_v8, %v4310_v0 }
0x2063   :  { %v2326_v60 = vadd.f32 %v5252_v4, %v2325_v59  ;;  %v4311_v22 = vpop.f32.mrb[30].mxu1 }
0x2064   :  { %v2328_v62 = vpop.f32.mrb[31].mxu1  ;;  %v2337_v16 = vadd.f32 %v5266_v14, %v4311_v22  ;;  %v2346_v12 = vsel %vm228_vm1, %v2334_v27, -inf }
0x2065   :  { %v2329_v34 = vadd.f32 %v5260_v10, %v2328_v62  ;;  %v2340_v21 = vsel %vm228_vm1, %v2326_v60, -inf }
0x2066   :  { %2341 = vmax.xlane.f32.xlu0 %v2340_v21  ;;  %v2349_v13 = vsel %vm228_vm1, %v2337_v16, -inf }
0x2067   :  { %v2343_v25 = vsel %vm228_vm1, %v2329_v34, -inf }
0x2068   :  { %2344 = vmax.xlane.f32.xlu1 %v2343_v25 }
0x206a   :  { %2347 = vmax.xlane.f32.xlu0 %v2346_v12 }
0x206e   :  { %2350 = vmax.xlane.f32.xlu0 %v2349_v13 }
0x2079   :  { %2386 = vrot.lane.b32.xlu1 %v2271_v49, %s4819_s0 }
0x20f3   :  { %v2342_v4 = vpop.xlane.xlu0 %2341 }
0x20f4   :  { %v2352_v9 = vsub.f32 %v2326_v60, %v2342_v4 }
0x20f5   :  { %v2345_v8 = vpop.xlane.xlu1 %2344 }
0x20f6   :  { %v2356_v2 = vmul.f32 1.442695, %v2352_v9  ;;  %v2353_v5 = vsub.f32 %v2329_v34, %v2345_v8 }
0x20f7   :  { %v2348_v10 = vpop.xlane.xlu0 %2347 }
0x20f8   :  { %v2354_v11 = vsub.f32 %v2334_v27, %v2348_v10  ;;  %v2358_v15 = vmul.f32 1.442695, %v2353_v5 }
0x20f9   :  { %v2387_v3 = vpop.permute.xlu1 %2386 }
0x20fa   :  { %v2360_v6 = vmul.f32 1.442695, %v2354_v11  ;;  %4312 = vmatprep.subr.bf16.mxu0 %v2387_v3 }
0x20fb   :  { %4313 = vmatpush3.bf16.msra.mxu0 %v2387_v3  ;;  %v2351_v14 = vpop.xlane.xlu0 %2350 }
0x20fc   :  { %4660 = vpow2.f32 %v2360_v6  ;;  %v2355_v1 = vsub.f32 %v2337_v16, %v2351_v14  ;;  %v4511_v16 = vld [vmem:[%s5820_s6 + $0x8] sm:$0xff]  }
0x20fd   :  { %4662 = vpow2.f32 %v2356_v2  ;;  %v3950_v2 = vld [vmem:[%s5821_s20] ss:$0 sm:$0xff] }
0x20fe   :  { %v2362_v30 = vmul.f32 1.442695, %v2355_v1 }
0x2100   :  { %4664 = vpow2.f32 %v2362_v30 }
0x2101   :  { %4666 = vpow2.f32 %v2358_v15 }
0x2106   :  { %v4661_v7 = vpop.eup %4660 }
0x2107   :  { %v2370_v31 = vsel %vm228_vm1, %v4661_v7, 0.0  ;;  %v4663_v32 = vpop.eup %4662 }
0x2108   :  { %2371 = vadd.xlane.f32.xlu1 %v2370_v31  ;;  %v2364_v35 = vsel %vm228_vm1, %v4663_v32, 0.0 }
0x210a   :  { %v4665_v33 = vpop.eup %4664 }
0x210b   :  { %v2373_v38 = vsel %vm228_vm1, %v4665_v33, 0.0  ;;  %v4667_v41 = vpop.eup %4666 }
0x210c   :  { %2365 = vadd.xlane.f32.xlu1 %v2364_v35  ;;  %2374 = vadd.xlane.f32.xlu0 %v2373_v38  ;;  %v2367_v42 = vsel %vm228_vm1, %v4667_v41, 0.0 }
0x2110   :  { %2368 = vadd.xlane.f32.xlu0 %v2367_v42 }
0x211d   :  { %2475 = vrot.lane.b32.xlu1 %v5339_v23, %s4825_s12 }
0x2121   :  { %2477 = vrot.lane.b32.xlu1 %v5341_v63, %s4825_s12 }
0x2125   :  { %2481 = vrot.lane.b32.xlu1 %v5337_v57, %s4825_s12 }
0x2126   :  { %2388 = vrot.lane.b32.xlu0 %v5407_v48, %s4819_s0 }
0x212a   :  { %2479 = vrot.lane.b32.xlu0 %v5343_v61, %s4825_s12 }
0x2195   :  { %v2372_v45 = vpop.xlane.xlu1 %2371 }
0x2199   :  { %v2366_v49 = vpop.xlane.xlu1 %2365  ;;  %v2375_v50 = vpop.xlane.xlu0 %2374 }
0x219a   :  { %4668 = vrcp.f32 %v2375_v50 }
0x219b   :  { %4670 = vrcp.f32 %v2366_v49 }
0x219c   :  { %4672 = vrcp.f32 %v2372_v45  ;;  %v5500_v45 = vld [vmem:[%s4849_s13] sm:$0xff] }
0x219d   :  { %v2369_v55 = vpop.xlane.xlu0 %2368  ;;  %v2476_v58 = vpop.permute.xlu1 %2475 }
0x219e   :  { %4674 = vrcp.f32 %v2369_v55  ;;  %v5447_v21 = vsel %vm164_vm0, %v5121_v26, %v2476_v58 }
0x21a1   :  { %v2389_v23 = vpop.permute.xlu0 %2388  ;;  %v2478_v0 = vpop.permute.xlu1 %2477 }
0x21a2   :  { %4314 = vmatprep.subr.bf16.mxu0 %v2389_v23  ;;  %v5443_v27 = vsel %vm164_vm0, %v5123_v28, %v2478_v0  ;;  %v5514_v0 = vld [vmem:[%s4849_s13 + $0x18] sm:$0xff] }
0x21a3   :  { %4315 = vmatpush3.bf16.msra.mxu0 %v2389_v23  ;;  %v2496_v12 = vpack.c.bf16 %v5443_v27, %v5447_v21  ;;  %v5508_v23 = vld [vmem:[%s4849_s13 + $0x8] sm:$0xff] }
0x21a4   :  { %4320 = vmatprep.subr.bf16.mxu0 %v4510_v56  ;;  %v4669_v57 = vpop.eup %4668 }
0x21a5   :  { %v4671_v63 = vpop.eup %4670  ;;  %v2383_v59 = vmul.f32 %v4669_v57, %v4665_v33  ;;  %v2482_v13 = vpop.permute.xlu1 %2481 }
0x21a6   :  { %v4673_v48 = vpop.eup %4672  ;;  %v2380_v60 = vmul.f32 %v4671_v63, %v4663_v32  ;;  %v2480_v4 = vpop.permute.xlu0 %2479  ;;  %v5457_v26 = vsel %vm164_vm0, %v5119_v24, %v2482_v13 }
0x21a7   :  { %v2382_v62 = vmul.f32 %v4673_v48, %v4661_v7  ;;  %v5461_v28 = vsel %vm164_vm0, %v5125_v29, %v2480_v4 }
0x21a8   :  { %v4675_v61 = vpop.eup %4674  ;;  %v2497_v8 = vpack.c.bf16 %v5457_v26, %v5461_v28 }
0x21a9   :  { %v2381_v22 = vmul.f32 %v4675_v61, %v4667_v41  ;;  %v2385_v25 = vpack.c.bf16 %v2383_v59, %v2382_v62 }
0x21ab   :  { %v2384_v34 = vpack.c.bf16 %v2381_v22, %v2380_v60 }
0x21ad   :  { %4316 = vmatprep.mubr.msk.bf16.mxu0 %vm228_vm1, %v2384_v34 }
0x21ae   :  { %4317 = vmatmul.mubr.msk.bf16.vlgmr.msra.gmra.mrb[60].mxu0 %vm228_vm1, %v2385_v25 }
0x21af   :  { %4321 = vmatpush3.bf16.msra.mxu0 %v4510_v56  ;;  %4324 = vmatprep.mubr.msk.bf16.mxu0 %vm228_vm1, %v2496_v12  ;;  %v5504_v56 = vld [vmem:[%s4849_s13 + $0x10] sm:$0xff]  ;;  %s5822_s13 = sld [smem:[#allocation15_spill]] }
0x21b0   :  { %4322 = vmatprep.subr.bf16.mxu0 %v4511_v16 }
0x21b3   :  { %4323 = vmatpush3.bf16.msra.mxu0 %v4511_v16 }
0x21b6   :  { %4325 = vmatmul.mubr.msk.bf16.vlgmr.msra.gmra.mrb[64].mxu0 %vm228_vm1, %v2497_v8 }
0x2281   :  { %v5466_v9 = vpop.f32.mrb[60].mxu0 }
0x2282   :  { %v5468_v10 = vpop.f32.mrb[61].mxu0 }
0x2283   :  { %v5470_v11 = vpop.f32.mrb[62].mxu0 }
0x2284   :  { %v5472_v3 = vpop.f32.mrb[63].mxu0 }
0x2289   :  { %v4326_v24 = vpop.f32.mrb[64].mxu0 }
0x228a   :  { %v2556_v5 = vpop.f32.mrb[65].mxu0  ;;  %v5475_v29 = vadd.f32 %v4326_v24, %v3950_v2 }
0x228b   :  { %v4327_v6 = vpop.f32.mrb[66].mxu0  ;;  %v5479_v15 = vadd.f32 %v3950_v2, %v2556_v5 }
0x228c   :  { %v5477_v14 = vadd.f32 %v4327_v6, %v3950_v2  ;;  %v2559_v1 = vpop.f32.mrb[67].mxu0 }
0x228d   :  { %v5481_v30 = vadd.f32 %v3950_v2, %v2559_v1 }
0x228e   :  { %v5485_v7 = vpack.c.bf16 %v5477_v14, %v5475_v29 }
0x228f   :  { %v2571_v31 = vpack.c.bf16 %v5481_v30, %v5479_v15 }
0x2290   :  { %2577 = vrot.lane.b32.xlu1 %v5485_v7, %s4823_s17 }
0x2291   :  { %2575 = vrot.lane.b32.xlu0 %v2571_v31, %s4823_s17  ;;  %4332 = vmatprep.mubr.msk.bf16.mxu1 %vm164_vm0, %v2571_v31 }
0x2302   :  { %v2578_v35 = vpop.permute.xlu1 %2577 }
0x2303   :  { %v2576_v32 = vpop.permute.xlu0 %2575  ;;  %v2589_v38 = vsel %vm164_vm0, %v2578_v35, 0 }
0x2304   :  { %v2586_v33 = vsel %vm164_vm0, %v2576_v32, 0  ;;  %4446 = vmatprep.subr.msk.bf16.mxu1 %vm164_vm0, %v2576_v32 }
0x2305   :  { %4329 = vmatpush3.bf16.xpose.msra.mxu1 %v2586_v33 }
0x2306   :  { %4447 = vmatprep.subr.msk.bf16.mxu1 %vm164_vm0, %v2578_v35 }
0x230d   :  { %4331 = vmatpush3.bf16.xpose.msra.mxu1 %v2589_v38 }
0x2314   :  { %4333 = vmatmul.mubr.msk.bf16.vlgmr.msra.gmra.mrb[32].mxu1 %vm164_vm0, %v5485_v7 }
0x23e7   :  { %v4334_v41 = vpop.f32.mrb[32].mxu1 }
0x23e8   :  { %v2625_v42 = vpop.f32.mrb[33].mxu1  ;;  %v2634_v58 = vadd.f32 %v5504_v56, %v4334_v41 }
0x23e9   :  { %v2626_v49 = vadd.f32 %v5500_v45, %v2625_v42  ;;  %v4335_v50 = vpop.f32.mrb[34].mxu1 }
0x23ea   :  { %v2628_v55 = vpop.f32.mrb[35].mxu1  ;;  %v2637_v61 = vadd.f32 %v5514_v0, %v4335_v50  ;;  %v2646_v59 = vsel %vm228_vm1, %v2634_v58, -inf }
0x23eb   :  { %v2629_v57 = vadd.f32 %v5508_v23, %v2628_v55  ;;  %v2640_v63 = vsel %vm228_vm1, %v2626_v49, -inf }
0x23ec   :  { %2641 = vmax.xlane.f32.xlu0 %v2640_v63  ;;  %v2649_v60 = vsel %vm228_vm1, %v2637_v61, -inf }
0x23ed   :  { %v2643_v48 = vsel %vm228_vm1, %v2629_v57, -inf }
0x23ee   :  { %2644 = vmax.xlane.f32.xlu1 %v2643_v48 }
0x23f0   :  { %2647 = vmax.xlane.f32.xlu0 %v2646_v59 }
0x23f4   :  { %2650 = vmax.xlane.f32.xlu0 %v2649_v60 }
0x2479   :  { %v2642_v22 = vpop.xlane.xlu0 %2641 }
0x247a   :  { %v2652_v62 = vsub.f32 %v2626_v49, %v2642_v22  ;;  %v4512_v22 = vld [vmem:[%s5822_s13] sm:$0xff]  }
0x247b   :  { %v2645_v34 = vpop.xlane.xlu1 %2644 }
0x247c   :  { %v2656_v12 = vmul.f32 1.442695, %v2652_v62  ;;  %v2653_v13 = vsub.f32 %v2629_v57, %v2645_v34 }
0x247d   :  { %v2648_v25 = vpop.xlane.xlu0 %2647 }
0x247e   :  { %v2654_v16 = vsub.f32 %v2634_v58, %v2648_v25  ;;  %v2658_v2 = vmul.f32 1.442695, %v2653_v13 }
0x2480   :  { %v2660_v4 = vmul.f32 1.442695, %v2654_v16 }
0x2481   :  { %v2651_v8 = vpop.xlane.xlu0 %2650 }
0x2482   :  { %4676 = vpow2.f32 %v2660_v4  ;;  %v2655_v24 = vsub.f32 %v2637_v61, %v2651_v8 }
0x2483   :  { %4678 = vpow2.f32 %v2656_v12 }
0x2484   :  { %v2662_v5 = vmul.f32 1.442695, %v2655_v24 }
0x2486   :  { %4680 = vpow2.f32 %v2662_v5 }
0x2487   :  { %4682 = vpow2.f32 %v2658_v2 }
0x248c   :  { %v4677_v6 = vpop.eup %4676 }
0x248d   :  { %v2670_v1 = vsel %vm228_vm1, %v4677_v6, 0.0  ;;  %v4679_v32 = vpop.eup %4678 }
0x248e   :  { %2671 = vadd.xlane.f32.xlu1 %v2670_v1  ;;  %v2664_v35 = vsel %vm228_vm1, %v4679_v32, 0.0 }
0x2490   :  { %v4681_v33 = vpop.eup %4680 }
0x2491   :  { %v2673_v38 = vsel %vm228_vm1, %v4681_v33, 0.0  ;;  %v4683_v41 = vpop.eup %4682 }
0x2492   :  { %2665 = vadd.xlane.f32.xlu1 %v2664_v35  ;;  %2674 = vadd.xlane.f32.xlu0 %v2673_v38  ;;  %v2667_v42 = vsel %vm228_vm1, %v4683_v41, 0.0 }
0x2496   :  { %2668 = vadd.xlane.f32.xlu0 %v2667_v42 }
0x24a3   :  { %2686 = vrot.lane.b32.xlu1 %v2571_v31, %s4819_s0 }
0x24a7   :  { %2755 = vrot.lane.b32.xlu1 %v5479_v15, %s4824_s3 }
0x24ab   :  { %2757 = vrot.lane.b32.xlu1 %v5481_v30, %s4824_s3 }
0x24ac   :  { %2688 = vrot.lane.b32.xlu0 %v5485_v7, %s4819_s0 }
0x24af   :  { %2761 = vrot.lane.b32.xlu1 %v5477_v14, %s4824_s3 }
0x24b0   :  { %2759 = vrot.lane.b32.xlu0 %v5475_v29, %s4824_s3 }
0x251b   :  { %v2672_v49 = vpop.xlane.xlu1 %2671 }
0x251f   :  { %v2666_v50 = vpop.xlane.xlu1 %2665  ;;  %v2675_v55 = vpop.xlane.xlu0 %2674 }
0x2520   :  { %4684 = vrcp.f32 %v2675_v55 }
0x2521   :  { %4686 = vrcp.f32 %v2666_v50 }
0x2522   :  { %4688 = vrcp.f32 %v2672_v49 }
0x2523   :  { %v2687_v31 = vpop.permute.xlu1 %2686  ;;  %v2669_v15 = vpop.xlane.xlu0 %2668 }
0x2524   :  { %4690 = vrcp.f32 %v2669_v15  ;;  %4336 = vmatprep.subr.bf16.mxu0 %v2687_v31 }
0x2525   :  { %4337 = vmatpush3.bf16.msra.mxu0 %v2687_v31 }
0x2527   :  { %v2689_v30 = vpop.permute.xlu0 %2688  ;;  %v2756_v62 = vpop.permute.xlu1 %2755 }
0x2528   :  { %4338 = vmatprep.subr.bf16.mxu0 %v2689_v30 }
0x2529   :  { %4339 = vmatpush3.bf16.msra.mxu0 %v2689_v30 }
0x252a   :  { %v4685_v7 = vpop.eup %4684  ;;  %4344 = vmatprep.subr.bf16.mxu0 %v4512_v22 }
0x252b   :  { %v4687_v14 = vpop.eup %4686  ;;  %v2683_v29 = vmul.f32 %v4685_v7, %v4681_v33  ;;  %v2758_v34 = vpop.permute.xlu1 %2757 }
0x252c   :  { %v4689_v58 = vpop.eup %4688  ;;  %v2680_v63 = vmul.f32 %v4687_v14, %v4679_v32  ;;  %v2760_v13 = vpop.permute.xlu0 %2759 }
0x252d   :  { %v2682_v61 = vmul.f32 %v4689_v58, %v4677_v6 }
0x252e   :  { %v4691_v57 = vpop.eup %4690 }
0x252f   :  { %v2681_v48 = vmul.f32 %v4691_v57, %v4683_v41  ;;  %v2685_v60 = vpack.c.bf16 %v2683_v29, %v2682_v61  ;;  %v2762_v6 = vpop.permute.xlu1 %2761 }
0x2531   :  { %v2684_v59 = vpack.c.bf16 %v2681_v48, %v2680_v63 }
0x2533   :  { %4340 = vmatprep.mubr.msk.bf16.mxu0 %vm228_vm1, %v2684_v59 }
0x2534   :  { %4341 = vmatmul.mubr.msk.bf16.vlgmr.msra.gmra.mrb[68].mxu0 %vm228_vm1, %v2685_v60 }
0x2535   :  { %4345 = vmatpush3.bf16.msra.mxu0 %v4512_v22 }
0x2607   :  { %v4342_v25 = vpop.f32.mrb[68].mxu0 }
0x2608   :  { %v2749_v16 = vmul.f32 %v4342_v25, %v5067_v19  ;;  %v2732_v12 = vpop.f32.mrb[69].mxu0 }
0x2609   :  { %v2747_v4 = vmul.f32 %v2732_v12, %v5063_v17  ;;  %v4343_v8 = vpop.f32.mrb[70].mxu0 }
0x260a   :  { %v2769_v24 = vadd.f32 %v2760_v13, %v2749_v16  ;;  %v2750_v2 = vmul.f32 %v4343_v8, %v5069_v20  ;;  %v2735_v5 = vpop.f32.mrb[71].mxu0  ;;  %v3963_v16 = vld [vmem:[%s5823_s22] ss:$0 sm:$0xff] }
0x260b   :  { %v2767_v1 = vadd.f32 %v2756_v62, %v2747_v4  ;;  %v2748_v32 = vmul.f32 %v2735_v5, %v5065_v18 }
0x260c   :  { %v2777_v33 = vmin.f32 %v2769_v24, 0.0  ;;  %v2770_v35 = vadd.f32 %v2762_v6, %v2750_v2  ;;  %vm2773_vm6 = vcmp.gt.f32.partialorder %v2769_v24, 0.0 }
0x260d   :  { %v2775_v38 = vmin.f32 %v2767_v1, 0.0  ;;  %v2768_v41 = vadd.f32 %v2758_v34, %v2748_v32  ;;  %vm2771_vm8 = vcmp.gt.f32.partialorder %v2767_v1, 0.0 }
0x260e   :  { %v2783_v42 = vmul.f32 1.442695, %v2777_v33  ;;  %v2778_v49 = vmin.f32 %v2770_v35, 0.0  ;;  %vm2774_vm7 = vcmp.gt.f32.partialorder %v2770_v35, 0.0 }
0x260f   :  { %v2779_v50 = vmul.f32 1.442695, %v2775_v38  ;;  %v2776_v55 = vmin.f32 %v2768_v41, 0.0  ;;  %vm2772_vm9 = vcmp.gt.f32.partialorder %v2768_v41, 0.0 }
0x2610   :  { %4692 = vpow2.f32 %v2783_v42  ;;  %v2785_v31 = vmul.f32 1.442695, %v2778_v49 }
0x2611   :  { %4694 = vpow2.f32 %v2779_v50  ;;  %v2781_v15 = vmul.f32 1.442695, %v2776_v55 }
0x2612   :  { %4696 = vpow2.f32 %v2785_v31 }
0x2613   :  { %4698 = vpow2.f32 %v2781_v15 }
0x261a   :  { %v4693_v30 = vpop.eup %4692 }
0x261b   :  { %v4695_v7 = vpop.eup %4694  ;;  %v3961_v14 = vadd.f32 -1.0, %v4693_v30 }
0x261c   :  { %v4697_v58 = vpop.eup %4696  ;;  %v3959_v57 = vadd.f32 -1.0, %v4695_v7 }
0x261d   :  { %v4699_v29 = vpop.eup %4698  ;;  %v3962_v63 = vadd.f32 -1.0, %v4697_v58  ;;  %v2793_v61 = vsel %vm2773_vm6, %v2769_v24, %v3961_v14 }
0x261e   :  { %v3960_v48 = vadd.f32 -1.0, %v4699_v29  ;;  %v2791_v60 = vsel %vm2771_vm8, %v2767_v1, %v3959_v57 }
0x261f   :  { %v2794_v59 = vsel %vm2774_vm7, %v2770_v35, %v3962_v63 }
0x2620   :  { %v2799_v22 = vpack.c.bf16 %v2794_v59, %v2793_v61  ;;  %v2792_v62 = vsel %vm2772_vm9, %v2768_v41, %v3960_v48 }
0x2621   :  { %v2798_v34 = vpack.c.bf16 %v2792_v62, %v2791_v60 }
0x2623   :  { %4346 = vmatprep.mubr.msk.bf16.mxu0 %vm164_vm0, %v2798_v34 }
0x2624   :  { %4347 = vmatmul.mubr.msk.bf16.vlgmr.msra.gmra.mrb[72].mxu0 %vm164_vm0, %v2799_v22 }
0x26f7   :  { %v4348_v25 = vpop.f32.mrb[72].mxu0 }
0x26f8   :  { %v2852_v12 = vpop.f32.mrb[73].mxu0  ;;  %v5544_v4 = vadd.f32 %v4348_v25, %v3963_v16 }
0x26f9   :  { %v4349_v13 = vpop.f32.mrb[74].mxu0  ;;  %v2853_v2 = vadd.f32 %v3963_v16, %v2852_v12 }
0x26fa   :  { %v5546_v8 = vadd.f32 %v4349_v13, %v3963_v16  ;;  %v2855_v24 = vpop.f32.mrb[75].mxu0 }
0x26fb   :  { %v2856_v5 = vadd.f32 %v3963_v16, %v2855_v24 }
0x26fc   :  { %v2868_v6 = vpack.c.bf16 %v5546_v8, %v5544_v4 }
0x26fd   :  { %v2867_v1 = vpack.c.bf16 %v2856_v5, %v2853_v2 }
0x26fe   :  { %2873 = vrot.lane.b32.xlu1 %v2868_v6, %s4823_s17 }
0x26ff   :  { %2871 = vrot.lane.b32.xlu0 %v2867_v1, %s4823_s17  ;;  %4354 = vmatprep.mubr.msk.bf16.mxu1 %vm164_vm0, %v2867_v1 }
0x2770   :  { %v2874_v35 = vpop.permute.xlu1 %2873 }
0x2771   :  { %v2872_v32 = vpop.permute.xlu0 %2871  ;;  %v2885_v38 = vsel %vm164_vm0, %v2874_v35, 0 }
0x2772   :  { %v2882_v33 = vsel %vm164_vm0, %v2872_v32, 0  ;;  %4448 = vmatprep.subr.msk.bf16.mxu1 %vm164_vm0, %v2872_v32 }
0x2773   :  { %4351 = vmatpush3.bf16.xpose.msra.mxu1 %v2882_v33 }
0x2774   :  { %4449 = vmatprep.subr.msk.bf16.mxu1 %vm164_vm0, %v2874_v35 }
0x277b   :  { %4353 = vmatpush3.bf16.xpose.msra.mxu1 %v2885_v38 }
0x2782   :  { %4355 = vmatmul.mubr.msk.bf16.vlgmr.msra.gmra.mrb[36].mxu1 %vm164_vm0, %v2868_v6 }
0x2855   :  { %v4356_v41 = vpop.f32.mrb[36].mxu1 }
0x2856   :  { %v2921_v42 = vpop.f32.mrb[37].mxu1  ;;  %v2930_v31 = vadd.f32 %v5504_v56, %v4356_v41 }
0x2857   :  { %v2922_v49 = vadd.f32 %v5500_v45, %v2921_v42  ;;  %v4357_v50 = vpop.f32.mrb[38].mxu1 }
0x2858   :  { %v2924_v55 = vpop.f32.mrb[39].mxu1  ;;  %v2933_v14 = vadd.f32 %v5514_v0, %v4357_v50  ;;  %v2942_v58 = vsel %vm228_vm1, %v2930_v31, -inf }
0x2859   :  { %v2925_v15 = vadd.f32 %v5508_v23, %v2924_v55  ;;  %v2936_v30 = vsel %vm228_vm1, %v2922_v49, -inf }
0x285a   :  { %2937 = vmax.xlane.f32.xlu0 %v2936_v30  ;;  %v2945_v57 = vsel %vm228_vm1, %v2933_v14, -inf }
0x285b   :  { %v2939_v7 = vsel %vm228_vm1, %v2925_v15, -inf }
0x285c   :  { %2940 = vmax.xlane.f32.xlu1 %v2939_v7 }
0x285e   :  { %2943 = vmax.xlane.f32.xlu0 %v2942_v58 }
0x2862   :  { %2946 = vmax.xlane.f32.xlu0 %v2945_v57 }
0x28e7   :  { %v2938_v29 = vpop.xlane.xlu0 %2937 }
0x28e8   :  { %v2948_v63 = vsub.f32 %v2922_v49, %v2938_v29  ;;  %v4513_v29 = vld [vmem:[%s5824_s23] sm:$0xff]  }
0x28e9   :  { %v2941_v48 = vpop.xlane.xlu1 %2940 }
0x28ea   :  { %v2952_v60 = vmul.f32 1.442695, %v2948_v63  ;;  %v2949_v22 = vsub.f32 %v2925_v15, %v2941_v48 }
0x28eb   :  { %v2944_v61 = vpop.xlane.xlu0 %2943 }
0x28ec   :  { %v2950_v59 = vsub.f32 %v2930_v31, %v2944_v61  ;;  %v2954_v16 = vmul.f32 1.442695, %v2949_v22 }
0x28ee   :  { %v2956_v62 = vmul.f32 1.442695, %v2950_v59 }
0x28ef   :  { %v2947_v34 = vpop.xlane.xlu0 %2946 }
0x28f0   :  { %4700 = vpow2.f32 %v2956_v62  ;;  %v2951_v25 = vsub.f32 %v2933_v14, %v2947_v34 }
0x28f1   :  { %4702 = vpow2.f32 %v2952_v60 }
0x28f2   :  { %v2958_v12 = vmul.f32 1.442695, %v2951_v25 }
0x28f4   :  { %4704 = vpow2.f32 %v2958_v12 }
0x28f5   :  { %4706 = vpow2.f32 %v2954_v16 }
0x28fa   :  { %v4701_v13 = vpop.eup %4700 }
0x28fb   :  { %v2966_v24 = vsel %vm228_vm1, %v4701_v13, 0.0  ;;  %v4703_v32 = vpop.eup %4702 }
0x28fc   :  { %2967 = vadd.xlane.f32.xlu1 %v2966_v24  ;;  %v2960_v35 = vsel %vm228_vm1, %v4703_v32, 0.0 }
0x28fe   :  { %v4705_v33 = vpop.eup %4704 }
0x28ff   :  { %v2969_v38 = vsel %vm228_vm1, %v4705_v33, 0.0  ;;  %v4707_v41 = vpop.eup %4706 }
0x2900   :  { %2961 = vadd.xlane.f32.xlu1 %v2960_v35  ;;  %2970 = vadd.xlane.f32.xlu0 %v2969_v38  ;;  %v2963_v42 = vsel %vm228_vm1, %v4707_v41, 0.0 }
0x2904   :  { %2964 = vadd.xlane.f32.xlu0 %v2963_v42 }
0x2911   :  { %2982 = vrot.lane.b32.xlu1 %v2867_v1, %s4819_s0 }
0x2915   :  { %3051 = vrot.lane.b32.xlu1 %v2853_v2, %s4824_s3 }
0x2919   :  { %3053 = vrot.lane.b32.xlu1 %v2856_v5, %s4824_s3 }
0x291a   :  { %2984 = vrot.lane.b32.xlu0 %v2868_v6, %s4819_s0 }
0x291d   :  { %3057 = vrot.lane.b32.xlu1 %v5546_v8, %s4824_s3 }
0x291e   :  { %3055 = vrot.lane.b32.xlu0 %v5544_v4, %s4824_s3 }
0x2989   :  { %v2968_v49 = vpop.xlane.xlu1 %2967 }
0x298d   :  { %v2962_v50 = vpop.xlane.xlu1 %2961  ;;  %v2971_v55 = vpop.xlane.xlu0 %2970 }
0x298e   :  { %4708 = vrcp.f32 %v2971_v55 }
0x298f   :  { %4710 = vrcp.f32 %v2962_v50 }
0x2990   :  { %4712 = vrcp.f32 %v2968_v49  ;;  %v3971_v49 = vld [vmem:[%s5825_s26] ss:$0 sm:$0xff] }
0x2991   :  { %v2983_v31 = vpop.permute.xlu1 %2982  ;;  %v2965_v1 = vpop.xlane.xlu0 %2964 }
0x2992   :  { %4714 = vrcp.f32 %v2965_v1  ;;  %4358 = vmatprep.subr.bf16.mxu0 %v2983_v31 }
0x2993   :  { %4359 = vmatpush3.bf16.msra.mxu0 %v2983_v31 }
0x2995   :  { %v2985_v2 = vpop.permute.xlu0 %2984  ;;  %v3052_v63 = vpop.permute.xlu1 %3051 }
0x2996   :  { %4360 = vmatprep.subr.bf16.mxu0 %v2985_v2 }
0x2997   :  { %4361 = vmatpush3.bf16.msra.mxu0 %v2985_v2 }
0x2998   :  { %v4709_v5 = vpop.eup %4708  ;;  %4366 = vmatprep.subr.bf16.mxu0 %v4513_v29 }
0x2999   :  { %v4711_v8 = vpop.eup %4710  ;;  %v2979_v4 = vmul.f32 %v4709_v5, %v4705_v33  ;;  %v3054_v48 = vpop.permute.xlu1 %3053 }
0x299a   :  { %v4713_v6 = vpop.eup %4712  ;;  %v2976_v30 = vmul.f32 %v4711_v8, %v4703_v32  ;;  %v3056_v24 = vpop.permute.xlu0 %3055 }
0x299b   :  { %v2978_v14 = vmul.f32 %v4713_v6, %v4701_v13 }
0x299c   :  { %v4715_v15 = vpop.eup %4714 }
0x299d   :  { %v2977_v7 = vmul.f32 %v4715_v15, %v4707_v41  ;;  %v2981_v57 = vpack.c.bf16 %v2979_v4, %v2978_v14  ;;  %v3058_v16 = vpop.permute.xlu1 %3057 }
0x299f   :  { %v2980_v58 = vpack.c.bf16 %v2977_v7, %v2976_v30 }
0x29a1   :  { %4362 = vmatprep.mubr.msk.bf16.mxu0 %vm228_vm1, %v2980_v58 }
0x29a2   :  { %4363 = vmatmul.mubr.msk.bf16.vlgmr.msra.gmra.mrb[76].mxu0 %vm228_vm1, %v2981_v57 }
0x29a3   :  { %4367 = vmatpush3.bf16.msra.mxu0 %v4513_v29 }
0x2a75   :  { %v4364_v61 = vpop.f32.mrb[76].mxu0 }
0x2a76   :  { %v3028_v59 = vpop.f32.mrb[77].mxu0  ;;  %v3045_v62 = vmul.f32 %v4364_v61, %v5067_v19 }
0x2a77   :  { %v3043_v60 = vmul.f32 %v3028_v59, %v5063_v17  ;;  %v4365_v22 = vpop.f32.mrb[78].mxu0 }
0x2a78   :  { %v3046_v34 = vmul.f32 %v4365_v22, %v5069_v20  ;;  %v3031_v25 = vpop.f32.mrb[79].mxu0  ;;  %v5591_v35 = vadd.f32 %v3056_v24, %v3045_v62 }
0x2a79   :  { %v3044_v12 = vmul.f32 %v3031_v25, %v5065_v18  ;;  %v5587_v32 = vadd.f32 %v3052_v63, %v3043_v60 }
0x2a7a   :  { %v5585_v13 = vadd.f32 %v3058_v16, %v3046_v34 }
0x2a7b   :  { %v5589_v33 = vadd.f32 %v3054_v48, %v3044_v12 }
0x2a7c   :  { %v5599_v41 = vpack.c.bf16 %v5585_v13, %v5591_v35 }
0x2a7d   :  { %v5595_v38 = vpack.c.bf16 %v5589_v33, %v5587_v32 }
0x2a7f   :  { %4368 = vmatprep.mubr.msk.bf16.mxu0 %vm164_vm0, %v5595_v38 }
0x2a80   :  { %4369 = vmatmul.mubr.msk.bf16.vlgmr.msra.gmra.mrb[80].mxu0 %vm164_vm0, %v5599_v41 }
0x2b53   :  { %v4370_v42 = vpop.f32.mrb[80].mxu0 }
0x2b54   :  { %v3124_v50 = vpop.f32.mrb[81].mxu0  ;;  %v5606_v31 = vadd.f32 %v4370_v42, %v3971_v49 }
0x2b55   :  { %v4371_v55 = vpop.f32.mrb[82].mxu0  ;;  %v3125_v5 = vadd.f32 %v3971_v49, %v3124_v50 }
0x2b56   :  { %v5608_v1 = vadd.f32 %v4371_v55, %v3971_v49  ;;  %v3127_v2 = vpop.f32.mrb[83].mxu0 }
0x2b57   :  { %v3128_v8 = vadd.f32 %v3971_v49, %v3127_v2 }
0x2b58   :  { %v3140_v6 = vpack.c.bf16 %v5608_v1, %v5606_v31 }
0x2b59   :  { %v3139_v15 = vpack.c.bf16 %v3128_v8, %v3125_v5 }
0x2b5a   :  { %3145 = vrot.lane.b32.xlu1 %v3140_v6, %s4819_s0 }
0x2b5b   :  { %3143 = vrot.lane.b32.xlu0 %v3139_v15, %s4819_s0  ;;  %4376 = vmatprep.mubr.msk.bf16.mxu1 %vm228_vm1, %v3139_v15 }
0x2bcc   :  { %v3146_v7 = vpop.permute.xlu1 %3145 }
0x2bcd   :  { %v3144_v4 = vpop.permute.xlu0 %3143  ;;  %v3157_v14 = vsel %vm228_vm1, %v3146_v7, 0 }
0x2bce   :  { %v3154_v30 = vsel %vm228_vm1, %v3144_v4, 0  ;;  %4450 = vmatprep.subr.msk.bf16.mxu1 %vm228_vm1, %v3144_v4 }
0x2bcf   :  { %4373 = vmatpush3.bf16.xpose.msra.mxu1 %v3154_v30 }
0x2bd0   :  { %4451 = vmatprep.subr.msk.bf16.mxu1 %vm228_vm1, %v3146_v7 }
0x2bd7   :  { %4375 = vmatpush3.bf16.xpose.msra.mxu1 %v3157_v14 }
0x2bde   :  { %4377 = vmatmul.mubr.msk.bf16.vlgmr.msra.gmra.mrb[40].mxu1 %vm228_vm1, %v3140_v6 }
0x2cb1   :  { %v4378_v58 = vpop.f32.mrb[40].mxu1 }
0x2cb2   :  { %v3193_v57 = vpop.f32.mrb[41].mxu1  ;;  %v3202_v61 = vadd.f32 %v5504_v56, %v4378_v58 }
0x2cb3   :  { %v3194_v29 = vadd.f32 %v5500_v45, %v3193_v57  ;;  %v4379_v63 = vpop.f32.mrb[42].mxu1 }
0x2cb4   :  { %v3196_v48 = vpop.f32.mrb[43].mxu1  ;;  %v3205_v62 = vadd.f32 %v5514_v0, %v4379_v63  ;;  %v3214_v34 = vsel %vm228_vm1, %v3202_v61, -inf }
0x2cb5   :  { %v3197_v59 = vadd.f32 %v5508_v23, %v3196_v48  ;;  %v3208_v60 = vsel %vm228_vm1, %v3194_v29, -inf }
0x2cb6   :  { %3209 = vmax.xlane.f32.xlu0 %v3208_v60  ;;  %v3217_v25 = vsel %vm228_vm1, %v3205_v62, -inf }
0x2cb7   :  { %v3211_v22 = vsel %vm228_vm1, %v3197_v59, -inf }
0x2cb8   :  { %3212 = vmax.xlane.f32.xlu1 %v3211_v22 }
0x2cba   :  { %3215 = vmax.xlane.f32.xlu0 %v3214_v34 }
0x2cbe   :  { %3218 = vmax.xlane.f32.xlu0 %v3217_v25 }
0x2d43   :  { %v3210_v16 = vpop.xlane.xlu0 %3209 }
0x2d44   :  { %v3220_v12 = vsub.f32 %v3194_v29, %v3210_v16 }
0x2d45   :  { %v3213_v24 = vpop.xlane.xlu1 %3212 }
0x2d46   :  { %v3224_v50 = vmul.f32 1.442695, %v3220_v12  ;;  %v3221_v55 = vsub.f32 %v3197_v59, %v3213_v24 }
0x2d47   :  { %v3216_v42 = vpop.xlane.xlu0 %3215 }
0x2d48   :  { %v3222_v49 = vsub.f32 %v3202_v61, %v3216_v42  ;;  %v3226_v7 = vmul.f32 1.442695, %v3221_v55  ;;  %v4514_v55 = vld [vmem:[%s4979_s27] sm:$0xff]  }
0x2d4a   :  { %v3228_v2 = vmul.f32 1.442695, %v3222_v49 }
0x2d4b   :  { %v3219_v4 = vpop.xlane.xlu0 %3218 }
0x2d4c   :  { %4716 = vpow2.f32 %v3228_v2  ;;  %v3223_v30 = vsub.f32 %v3205_v62, %v3219_v4  ;;  %v4515_v2 = vld [vmem:[%s4979_s27 + $0x8] sm:$0xff]   ;;  %s5826_s27 = sld [smem:[#allocation6_spill]] }
0x2d4d   :  { %4718 = vpow2.f32 %v3224_v50 }
0x2d4e   :  { %v3230_v14 = vmul.f32 1.442695, %v3223_v30 }
0x2d50   :  { %4720 = vpow2.f32 %v3230_v14 }
0x2d51   :  { %4722 = vpow2.f32 %v3226_v7 }
0x2d56   :  { %v4717_v58 = vpop.eup %4716 }
0x2d57   :  { %v3238_v57 = vsel %vm228_vm1, %v4717_v58, 0.0  ;;  %v4719_v63 = vpop.eup %4718 }
0x2d58   :  { %3239 = vadd.xlane.f32.xlu1 %v3238_v57  ;;  %v3232_v48 = vsel %vm228_vm1, %v4719_v63, 0.0 }
0x2d5a   :  { %v4721_v29 = vpop.eup %4720 }
0x2d5b   :  { %v3241_v61 = vsel %vm228_vm1, %v4721_v29, 0.0  ;;  %v4723_v59 = vpop.eup %4722 }
0x2d5c   :  { %3233 = vadd.xlane.f32.xlu1 %v3232_v48  ;;  %3242 = vadd.xlane.f32.xlu0 %v3241_v61  ;;  %v3235_v60 = vsel %vm228_vm1, %v4723_v59, 0.0 }
0x2d60   :  { %3236 = vadd.xlane.f32.xlu0 %v3235_v60 }
0x2d6d   :  { %3254 = vrot.lane.b32.xlu1 %v3139_v15, %s4820_s5 }
0x2d71   :  { %3323 = vrot.lane.b32.xlu1 %v3125_v5, %s4821_s29 }
0x2d75   :  { %3325 = vrot.lane.b32.xlu1 %v3128_v8, %s4821_s29 }
0x2d76   :  { %3256 = vrot.lane.b32.xlu0 %v3140_v6, %s4820_s5 }
0x2d79   :  { %3329 = vrot.lane.b32.xlu1 %v5608_v1, %s4821_s29 }
0x2d7a   :  { %3327 = vrot.lane.b32.xlu0 %v5606_v31, %s4821_s29 }
0x2de5   :  { %v3240_v22 = vpop.xlane.xlu1 %3239 }
0x2de9   :  { %v3234_v62 = vpop.xlane.xlu1 %3233  ;;  %v3243_v34 = vpop.xlane.xlu0 %3242 }
0x2dea   :  { %4724 = vrcp.f32 %v3243_v34 }
0x2deb   :  { %4726 = vrcp.f32 %v3234_v62 }
0x2dec   :  { %4728 = vrcp.f32 %v3240_v22 }
0x2ded   :  { %v3255_v25 = vpop.permute.xlu1 %3254  ;;  %v3237_v15 = vpop.xlane.xlu0 %3236 }
0x2dee   :  { %4730 = vrcp.f32 %v3237_v15  ;;  %4380 = vmatprep.subr.bf16.mxu0 %v3255_v25 }
0x2def   :  { %4381 = vmatpush3.bf16.msra.mxu0 %v3255_v25 }
0x2df1   :  { %v3257_v5 = vpop.permute.xlu0 %3256  ;;  %v3324_v4 = vpop.permute.xlu1 %3323 }
0x2df2   :  { %4382 = vmatprep.subr.bf16.mxu0 %v3257_v5 }
0x2df3   :  { %4383 = vmatpush3.bf16.msra.mxu0 %v3257_v5 }
0x2df4   :  { %v4725_v1 = vpop.eup %4724  ;;  %4388 = vmatprep.subr.bf16.mxu0 %v4514_v55 }
0x2df5   :  { %v4727_v8 = vpop.eup %4726  ;;  %v3251_v16 = vmul.f32 %v4725_v1, %v4721_v29  ;;  %v3326_v30 = vpop.permute.xlu1 %3325 }
0x2df6   :  { %v4729_v6 = vpop.eup %4728  ;;  %v3248_v12 = vmul.f32 %v4727_v8, %v4719_v63  ;;  %v3328_v63 = vpop.permute.xlu0 %3327 }
0x2df7   :  { %v3250_v42 = vmul.f32 %v4729_v6, %v4717_v58 }
0x2df8   :  { %v4731_v31 = vpop.eup %4730 }
0x2df9   :  { %v3249_v24 = vmul.f32 %v4731_v31, %v4723_v59  ;;  %v3253_v50 = vpack.c.bf16 %v3251_v16, %v3250_v42  ;;  %v3330_v60 = vpop.permute.xlu1 %3329 }
0x2dfb   :  { %v3252_v49 = vpack.c.bf16 %v3249_v24, %v3248_v12 }
0x2dfd   :  { %4384 = vmatprep.mubr.msk.bf16.mxu0 %vm228_vm1, %v3252_v49 }
0x2dfe   :  { %4385 = vmatmul.mubr.msk.bf16.vlgmr.msra.gmra.mrb[84].mxu0 %vm228_vm1, %v3253_v50 }
0x2dff   :  { %4389 = vmatpush3.bf16.msra.mxu0 %v4514_v55 }
0x2e00   :  { %4390 = vmatprep.subr.bf16.mxu0 %v4515_v2 }
0x2e03   :  { %4391 = vmatpush3.bf16.msra.mxu0 %v4515_v2 }
0x2ed1   :  { %v4386_v7 = vpop.f32.mrb[84].mxu0 }
0x2ed2   :  { %v3317_v14 = vmul.f32 %v4386_v7, %v5067_v19  ;;  %v3300_v57 = vpop.f32.mrb[85].mxu0 }
0x2ed3   :  { %v3315_v58 = vmul.f32 %v3300_v57, %v5063_v17  ;;  %v4387_v29 = vpop.f32.mrb[86].mxu0 }
0x2ed4   :  { %v3337_v48 = vadd.f32 %v3328_v63, %v3317_v14  ;;  %v3318_v61 = vmul.f32 %v4387_v29, %v5069_v20  ;;  %v3303_v59 = vpop.f32.mrb[87].mxu0 }
0x2ed5   :  { %v3335_v22 = vadd.f32 %v3324_v4, %v3315_v58  ;;  %v3316_v62 = vmul.f32 %v3303_v59, %v5065_v18  ;;  %v3983_v59 = vld [vmem:[%s4984_s4] ss:$0 sm:$0xff]  ;;  %s4826_s4 = smov 48  }
0x2ed6   :  { %v3345_v34 = vmin.f32 %v3337_v48, 0.0  ;;  %v3338_v25 = vadd.f32 %v3330_v60, %v3318_v61  ;;  %vm3341_vm10 = vcmp.gt.f32.partialorder %v3337_v48, 0.0 }
0x2ed7   :  { %v3343_v15 = vmin.f32 %v3335_v22, 0.0  ;;  %v3336_v5 = vadd.f32 %v3326_v30, %v3316_v62  ;;  %vm3339_vm12 = vcmp.gt.f32.partialorder %v3335_v22, 0.0 }
0x2ed8   :  { %v3351_v1 = vmul.f32 1.442695, %v3345_v34  ;;  %v3346_v8 = vmin.f32 %v3338_v25, 0.0  ;;  %vm3342_vm11 = vcmp.gt.f32.partialorder %v3338_v25, 0.0 }
0x2ed9   :  { %v3347_v6 = vmul.f32 1.442695, %v3343_v15  ;;  %v3344_v31 = vmin.f32 %v3336_v5, 0.0  ;;  %vm3340_vm13 = vcmp.gt.f32.partialorder %v3336_v5, 0.0 }
0x2eda   :  { %4732 = vpow2.f32 %v3351_v1  ;;  %v3353_v16 = vmul.f32 1.442695, %v3346_v8 }
0x2edb   :  { %4734 = vpow2.f32 %v3347_v6  ;;  %v3349_v12 = vmul.f32 1.442695, %v3344_v31 }
0x2edc   :  { %4736 = vpow2.f32 %v3353_v16 }
0x2edd   :  { %4738 = vpow2.f32 %v3349_v12 }
0x2ee4   :  { %v4733_v24 = vpop.eup %4732 }
0x2ee5   :  { %v4735_v42 = vpop.eup %4734  ;;  %v3981_v49 = vadd.f32 -1.0, %v4733_v24 }
0x2ee6   :  { %v4737_v50 = vpop.eup %4736  ;;  %v3979_v55 = vadd.f32 -1.0, %v4735_v42 }
0x2ee7   :  { %v4739_v2 = vpop.eup %4738  ;;  %v3982_v4 = vadd.f32 -1.0, %v4737_v50  ;;  %v3361_v7 = vsel %vm3341_vm10, %v3337_v48, %v3981_v49 }
0x2ee8   :  { %v3980_v30 = vadd.f32 -1.0, %v4739_v2  ;;  %v3359_v57 = vsel %vm3339_vm12, %v3335_v22, %v3979_v55 }
0x2ee9   :  { %v3362_v14 = vsel %vm3342_vm11, %v3338_v25, %v3982_v4 }
0x2eea   :  { %v3369_v63 = vpack.c.bf16 %v3362_v14, %v3361_v7  ;;  %v3360_v58 = vsel %vm3340_vm13, %v3336_v5, %v3980_v30 }
0x2eeb   :  { %v3368_v29 = vpack.c.bf16 %v3360_v58, %v3359_v57 }
0x2eed   :  { %4392 = vmatprep.mubr.msk.bf16.mxu0 %vm228_vm1, %v3368_v29 }
0x2eee   :  { %4393 = vmatmul.mubr.msk.bf16.vlgmr.msra.gmra.mrb[88].mxu0 %vm228_vm1, %v3369_v63 }
0x2fc1   :  { %v4394_v61 = vpop.f32.mrb[88].mxu0 }
0x2fc2   :  { %v3428_v60 = vpop.f32.mrb[89].mxu0  ;;  %v5651_v34 = vadd.f32 %v4394_v61, %v3983_v59 }
0x2fc3   :  { %v4395_v62 = vpop.f32.mrb[90].mxu0  ;;  %v5655_v1 = vadd.f32 %v3983_v59, %v3428_v60 }
0x2fc4   :  { %v5653_v15 = vadd.f32 %v4395_v62, %v3983_v59  ;;  %v3431_v48 = vpop.f32.mrb[91].mxu0 }
0x2fc5   :  { %v5657_v25 = vadd.f32 %v3983_v59, %v3431_v48 }
0x2fc6   :  { %v3444_v22 = vpack.c.bf16 %v5653_v15, %v5651_v34 }
0x2fc7   :  { %v3443_v5 = vpack.c.bf16 %v5657_v25, %v5655_v1 }
0x2fc8   :  { %3449 = vrot.lane.b32.xlu1 %v3444_v22, %s4823_s17 }
0x2fc9   :  { %3447 = vrot.lane.b32.xlu0 %v3443_v5, %s4823_s17  ;;  %4400 = vmatprep.mubr.msk.bf16.mxu1 %vm164_vm0, %v3443_v5 }
0x303a   :  { %v3450_v31 = vpop.permute.xlu1 %3449 }
0x303b   :  { %v3448_v8 = vpop.permute.xlu0 %3447  ;;  %v3461_v16 = vsel %vm164_vm0, %v3450_v31, 0 }
0x303c   :  { %v3458_v6 = vsel %vm164_vm0, %v3448_v8, 0  ;;  %4452 = vmatprep.subr.msk.bf16.mxu1 %vm164_vm0, %v3448_v8 }
0x303d   :  { %4397 = vmatpush3.bf16.xpose.msra.mxu1 %v3458_v6 }
0x303e   :  { %4453 = vmatprep.subr.msk.bf16.mxu1 %vm164_vm0, %v3450_v31 }
0x3045   :  { %4399 = vmatpush3.bf16.xpose.msra.mxu1 %v3461_v16 }
0x304c   :  { %4401 = vmatmul.mubr.msk.bf16.vlgmr.msra.gmra.mrb[44].mxu1 %vm164_vm0, %v3444_v22  ;;  %vm4828_vm0 = vmmov 0  }
0x311f   :  { %v4402_v12 = vpop.f32.mrb[44].mxu1 }
0x3120   :  { %v3497_v24 = vpop.f32.mrb[45].mxu1  ;;  %v3506_v55 = vadd.f32 %v5504_v56, %v4402_v12 }
0x3121   :  { %v3498_v42 = vadd.f32 %v5500_v45, %v3497_v24  ;;  %v4403_v49 = vpop.f32.mrb[46].mxu1 }
0x3122   :  { %v3500_v50 = vpop.f32.mrb[47].mxu1  ;;  %v3509_v7 = vadd.f32 %v5514_v0, %v4403_v49  ;;  %v3518_v14 = vsel %vm228_vm1, %v3506_v55, -inf }
0x3123   :  { %v3501_v2 = vadd.f32 %v5508_v23, %v3500_v50  ;;  %v3512_v4 = vsel %vm228_vm1, %v3498_v42, -inf }
0x3124   :  { %3513 = vmax.xlane.f32.xlu0 %v3512_v4  ;;  %v3521_v57 = vsel %vm228_vm1, %v3509_v7, -inf }
0x3125   :  { %v3515_v30 = vsel %vm228_vm1, %v3501_v2, -inf }
0x3126   :  { %3516 = vmax.xlane.f32.xlu1 %v3515_v30 }
0x3128   :  { %3519 = vmax.xlane.f32.xlu0 %v3518_v14 }
0x312c   :  { %3522 = vmax.xlane.f32.xlu0 %v3521_v57 }
0x31b1   :  { %v3514_v45 = vpop.xlane.xlu0 %3513 }
0x31b2   :  { %v3524_v63 = vsub.f32 %v3498_v42, %v3514_v45 }
0x31b3   :  { %v3517_v58 = vpop.xlane.xlu1 %3516 }
0x31b4   :  { %v3528_v23 = vmul.f32 1.442695, %v3524_v63  ;;  %v3525_v61 = vsub.f32 %v3501_v2, %v3517_v58  ;;  %v1300_v2 = vmul.f32 %v5226_v53, %v5069_v20  ;;  %v2449_v58 = vmul.f32 %v5466_v9, %v5067_v19 }
0x31b5   :  { %v3520_v56 = vpop.xlane.xlu0 %3519  ;;  %v4829_v9 = vmov 0.0  }
0x31b6   :  { %v3526_v29 = vsub.f32 %v3506_v55, %v3520_v56  ;;  %v3530_v48 = vmul.f32 1.442695, %v3525_v61 }
0x31b8   :  { %v3532_v59 = vmul.f32 1.442695, %v3526_v29 }
0x31b9   :  { %v3523_v60 = vpop.xlane.xlu0 %3522 }
0x31ba   :  { %4740 = vpow2.f32 %v3532_v59  ;;  %v3527_v62 = vsub.f32 %v3509_v7, %v3523_v60 }
0x31bb   :  { %4742 = vpow2.f32 %v3528_v23 }
0x31bc   :  { %v3534_v0 = vmul.f32 1.442695, %v3527_v62 }
0x31be   :  { %4744 = vpow2.f32 %v3534_v0 }
0x31bf   :  { %4746 = vpow2.f32 %v3530_v48  ;;  %v3643_v48 = vld [vmem:[%s5827_s28] sm:$0x3] }
0x31c4   :  { %v5679_v8 = vpop.eup %4740 }
0x31c5   :  { %v3542_v6 = vsel %vm228_vm1, %v5679_v8, 0.0  ;;  %v5683_v31 = vpop.eup %4742 }
0x31c6   :  { %3543 = vadd.xlane.f32.xlu1 %v3542_v6  ;;  %v3536_v12 = vsel %vm228_vm1, %v5683_v31, 0.0 }
0x31c8   :  { %v4745_v16 = vpop.eup %4744 }
0x31c9   :  { %v3545_v24 = vsel %vm228_vm1, %v4745_v16, 0.0  ;;  %v5688_v42 = vpop.eup %4746 }
0x31ca   :  { %3537 = vadd.xlane.f32.xlu1 %v3536_v12  ;;  %3546 = vadd.xlane.f32.xlu0 %v3545_v24  ;;  %v3539_v49 = vsel %vm228_vm1, %v5688_v42, 0.0 }
0x31ce   :  { %3540 = vadd.xlane.f32.xlu0 %v3539_v49 }
0x31db   :  { %3558 = vrot.lane.b32.xlu1 %v3443_v5, %s4819_s0 }
0x31df   :  { %1305 = vrot.lane.b32.xlu1 %v5183_v39, %s4824_s3 }
0x31e3   :  { %1307 = vrot.lane.b32.xlu1 %v5185_v40, %s4824_s3 }
0x31e4   :  { %3560 = vrot.lane.b32.xlu0 %v3444_v22, %s4819_s0 }
0x31e7   :  { %1311 = vrot.lane.b32.xlu1 %v5181_v37, %s4824_s3 }
0x31e8   :  { %1309 = vrot.lane.b32.xlu0 %v5179_v36, %s4824_s3  ;;  %v3717_v36 = vld [vmem:[%s5826_s27] sm:$0x3] }
0x31eb   :  { %2457 = vrot.lane.b32.xlu1 %v5403_v47, %s4824_s3 }
0x31ec   :  { %2455 = vrot.lane.b32.xlu0 %v5401_v46, %s4824_s3  ;;  %v1297_v46 = vmul.f32 %v5224_v52, %v5063_v17 }
0x31ef   :  { %2461 = vrot.lane.b32.xlu1 %v5399_v44, %s4824_s3 }
0x31f0   :  { %2459 = vrot.lane.b32.xlu0 %v5397_v43, %s4824_s3 }
0x31f3   :  { %3629 = vrot.lane.b32.xlu1 %v5657_v25, %s4824_s3 }
0x31f4   :  { %3627 = vrot.lane.b32.xlu0 %v5655_v1, %s4824_s3 }
0x31f7   :  { %3633 = vrot.lane.b32.xlu1 %v5653_v15, %s4824_s3 }
0x31f8   :  { %3631 = vrot.lane.b32.xlu0 %v5651_v34, %s4824_s3  ;;  %v4827_v34 = vmov 0.0|0.0  }
0x31fb   :  { %3730 = vrot.lane.b32.xlu1 %v5587_v32, %s4821_s29 }
0x31fc   :  { %3720 = vperm.xlu0 %4498, %v3717_v36  }
0x31ff   :  { %3732 = vrot.lane.b32.xlu1 %v5589_v33, %s4821_s29 }
0x3200   :  { %3734 = vrot.lane.b32.xlu0 %v5591_v35, %s4821_s29  ;;  %v1298_v35 = vmul.f32 %v5228_v54, %v5065_v18 }
0x3203   :  { %3736 = vrot.lane.b32.xlu1 %v5585_v13, %s4821_s29  ;;  %v1299_v13 = vmul.f32 %v5222_v51, %v5067_v19  ;;  %v2447_v51 = vmul.f32 %v5468_v10, %v5063_v17  ;;  %v2448_v10 = vmul.f32 %v5472_v3, %v5065_v18  ;;  %v2450_v3 = vmul.f32 %v5470_v11, %v5069_v20 }
0x3253   :  { %v3544_v37 = vpop.xlane.xlu1 %3543 }
0x3257   :  { %v3538_v39 = vpop.xlane.xlu1 %3537  ;;  %v3547_v40 = vpop.xlane.xlu0 %3546 }
0x3258   :  { %4748 = vrcp.f32 %v3547_v40 }
0x3259   :  { %4750 = vrcp.f32 %v3538_v39 }
0x325a   :  { %4752 = vrcp.f32 %v3544_v37 }
0x325b   :  { %v3559_v43 = vpop.permute.xlu1 %3558  ;;  %v3541_v44 = vpop.xlane.xlu0 %3540 }
0x325c   :  { %4754 = vrcp.f32 %v3541_v44  ;;  %4404 = vmatprep.subr.bf16.mxu0 %v3559_v43 }
0x325d   :  { %4405 = vmatpush3.bf16.msra.mxu0 %v3559_v43 }
0x325f   :  { %v1306_v47 = vpop.permute.xlu1 %1305  ;;  %v3561_v32 = vpop.permute.xlu0 %3560 }
0x3260   :  { %v1317_v33 = vadd.f32 %v1306_v47, %v1297_v46  ;;  %4406 = vmatprep.subr.bf16.mxu0 %v3561_v32 }
0x3261   :  { %4407 = vmatpush3.bf16.msra.mxu0 %v3561_v32 }
0x3262   :  { %3746 = vrot.lane.b32.xlu0 %v1317_v33, %s4826_s4  ;;  %4423 = vmatprep.subr.bf16.mxu0 %v4827_v34  ;;  %v4749_v15 = vpop.eup %4748 }
0x3263   :  { %v1308_v1 = vpop.permute.xlu1 %1307  ;;  %v1310_v25 = vpop.permute.xlu0 %1309  ;;  %v3555_v4 = vmul.f32 %v4749_v15, %v4745_v16 }
0x3264   :  { %v4751_v22 = vpop.eup %4750  ;;  %v1318_v52 = vadd.f32 %v1308_v1, %v1298_v35  ;;  %v1319_v5 = vadd.f32 %v1310_v25, %v1299_v13 }
0x3265   :  { %v4753_v50 = vpop.eup %4752  ;;  %v3552_v7 = vmul.f32 %v4751_v22, %v5683_v31 }
0x3266   :  { %v4755_v55 = vpop.eup %4754  ;;  %3750 = vrot.lane.b32.xlu0 %v1319_v5, %s4826_s4  ;;  %3748 = vrot.lane.b32.xlu1 %v1318_v52, %s4826_s4  ;;  %v3554_v57 = vmul.f32 %v4753_v50, %v5679_v8 }
0x3267   :  { %v1312_v54 = vpop.permute.xlu1 %1311  ;;  %v2456_v30 = vpop.permute.xlu0 %2455  ;;  %v3553_v14 = vmul.f32 %v4755_v55, %v5688_v42 }
0x3268   :  { %v1320_v45 = vadd.f32 %v1312_v54, %v1300_v2  ;;  %v2467_v63 = vadd.f32 %v2456_v30, %v2447_v51  ;;  %v3557_v56 = vpack.c.bf16 %v3555_v4, %v3554_v57 }
0x3269   :  { %v3556_v53 = vpack.c.bf16 %v3553_v14, %v3552_v7 }
0x326a   :  { %3762 = vrot.lane.b32.xlu0 %v2467_v63, %s4820_s5  ;;  %3752 = vrot.lane.b32.xlu1 %v1320_v45, %s4826_s4 }
0x326b   :  { %v2458_v29 = vpop.permute.xlu1 %2457  ;;  %4408 = vmatprep.mubr.msk.bf16.mxu0 %vm228_vm1, %v3556_v53  ;;  %v2460_v23 = vpop.permute.xlu0 %2459 }
0x326c   :  { %v2468_v61 = vadd.f32 %v2458_v29, %v2448_v10  ;;  %v2469_v59 = vadd.f32 %v2460_v23, %v2449_v58  ;;  %4409 = vmatmul.mubr.msk.bf16.vlgmr.msra.gmra.mrb[92].mxu0 %vm228_vm1, %v3557_v56 }
0x326d   :  { %4425 = vmatpush3.bf16.msra.mxu0 %v5595_v38  ;;  %4420 = vmatprep.mubr.msk.f32.mxu0 %vm4828_vm0, %v4829_v9 }
0x326e   :  { %3766 = vrot.lane.b32.xlu0 %v2469_v59, %s4820_s5  ;;  %3764 = vrot.lane.b32.xlu1 %v2468_v61, %s4820_s5 }
0x326f   :  { %v2462_v60 = vpop.permute.xlu1 %2461  ;;  %4426 = vmatprep.subr.bf16.mxu0 %v4827_v34  ;;  %v3628_v38 = vpop.permute.xlu0 %3627 }
0x3270   :  { %v2470_v62 = vadd.f32 %v2462_v60, %v2450_v3 }
0x3271   :  { %4428 = vmatpush3.bf16.msra.mxu0 %v5599_v41 }
0x3272   :  { %3768 = vrot.lane.b32.xlu1 %v2470_v62, %s4820_s5 }
0x3273   :  { %v3630_v31 = vpop.permute.xlu1 %3629  ;;  %v3632_v12 = vpop.permute.xlu0 %3631 }
0x3274   :  { %4421 = vmatmul.mubr.msk.f32.vlgmr.msra.gmra.mrb[96].mxu0 %vm228_vm1, %v3643_v48 }
0x3277   :  { %v3634_v40 = vpop.permute.xlu1 %3633 }
0x327b   :  { %v3721_v37 = vpop.permute.xlu0 %3720 }
0x333f   :  { %v4410_v0 = vpop.f32.mrb[92].mxu0 }
0x3340   :  { %v3604_v8 = vpop.f32.mrb[93].mxu0  ;;  %v3621_v24 = vmul.f32 %v4410_v0, %v5067_v19 }
0x3341   :  { %v3619_v6 = vmul.f32 %v3604_v8, %v5063_v17  ;;  %v4411_v11 = vpop.f32.mrb[94].mxu0 }
0x3342   :  { %v3607_v16 = vpop.f32.mrb[95].mxu0  ;;  %v3622_v41 = vmul.f32 %v4411_v11, %v5069_v20  ;;  %v3641_v39 = vadd.f32 %v3632_v12, %v3621_v24 }
0x3343   :  { %v3639_v42 = vadd.f32 %v3628_v38, %v3619_v6  ;;  %v3620_v49 = vmul.f32 %v3607_v16, %v5065_v18 }
0x3344   :  { %v3642_v19 = vadd.f32 %v3634_v40, %v3622_v41 }
0x3345   :  { %v3640_v36 = vadd.f32 %v3630_v31, %v3620_v49  ;;  %3778 = vrot.lane.b32.xlu0 %v3639_v42, %s4824_s3 }
0x3347   :  { %3780 = vrot.lane.b32.xlu1 %v3640_v36, %s4824_s3  ;;  %v3713_v17 = vpop.f32.mrb[96].mxu0 }
0x3348   :  { %v3723_v43 = vmul.f32 %v3721_v37, %v3713_v17  ;;  %v4422_v44 = vpop.f32.mrb[97].mxu0 }
0x3349   :  { %3782 = vrot.lane.b32.xlu0 %v3641_v39, %s4824_s3 }
0x334a   :  { %3725 = vst.msk [vmem:[#allocation2] sm:$0x3] %vm3724_vm14, %v3723_v43 }
0x334b   :  { %3784 = vrot.lane.b32.xlu1 %v3642_v19, %s4824_s3 }
0x334c   :  { %4775 = shalt.err (!%p4772_p4)
}
0x334d   :  { %s4776_s10 = scalar_lea.hbm %s4994_s25, 32 }
0x334e   :  { %p4777_p5 = scmp.ne.s32.totalorder %s4994_s25, %s4776_s10  ;;  %p4780_p6 = scmp.lt.u32.totalorder %s4776_s10, %s4994_s25 }
0x3350   :  { %p4782_p7 = pnand %p4780_p6, %p4777_p5 }
0x3352   :  { %4785 = shalt.err (!%p4782_p7)
}
0x3353   :  { %3829 = dma.vmem_to_hbm [thread:$0]  %s3827_s2, 32, %s4994_s25, [#allocation3]   ;;  %v3731_v18 = vpop.permute.xlu1 %3730  ;;  %v3735_v46 = vpop.permute.xlu0 %3734  ;;  %vm3794_vm15 = vcmask 392192   ;;  %vm3799_vm2 = vcmask 523264   ;;  %vm3804_vm3 = vcmask 654336   ;;  %vm3809_vm4 = vcmask 785408  }
0x3354   :  { %v3790_v25 = vsel %vm228_vm1, %v5447_v21, %v3731_v18  ;;  %v3792_v4 = vsel %vm228_vm1, %v5461_v28, %v3735_v46 }
0x3357   :  { %v3733_v20 = vpop.permute.xlu1 %3732  ;;  %v3747_v32 = vpop.permute.xlu0 %3746 }
0x3358   :  { %v3795_v52 = vsel %vm3794_vm15, %v3790_v25, %v3747_v32  ;;  %v3791_v5 = vsel %vm228_vm1, %v5443_v27, %v3733_v20 }
0x335b   :  { %v3737_v47 = vpop.permute.xlu1 %3736  ;;  %v3751_v13 = vpop.permute.xlu0 %3750 }
0x335c   :  { %v3797_v7 = vsel %vm3794_vm15, %v3792_v4, %v3751_v13  ;;  %v3793_v14 = vsel %vm228_vm1, %v5457_v26, %v3737_v47 }
0x335f   :  { %v3749_v33 = vpop.permute.xlu1 %3748  ;;  %v3763_v34 = vpop.permute.xlu0 %3762 }
0x3360   :  { %v3800_v50 = vsel %vm3799_vm2, %v3795_v52, %v3763_v34  ;;  %v3796_v2 = vsel %vm3794_vm15, %v3791_v5, %v3749_v33 }
0x3363   :  { %v3753_v35 = vpop.permute.xlu1 %3752  ;;  %v3767_v1 = vpop.permute.xlu0 %3766 }
0x3364   :  { %v3802_v57 = vsel %vm3799_vm2, %v3797_v7, %v3767_v1  ;;  %v3798_v63 = vsel %vm3794_vm15, %v3793_v14, %v3753_v35 }
0x3367   :  { %v3765_v15 = vpop.permute.xlu1 %3764 }
0x3368   :  { %v3801_v21 = vsel %vm3799_vm2, %v3796_v2, %v3765_v15 }
0x336b   :  { %v3769_v22 = vpop.permute.xlu1 %3768 }
0x336c   :  { %v3803_v53 = vsel %vm3799_vm2, %v3798_v63, %v3769_v22 }
0x33b7   :  { %v3779_v55 = vpop.permute.xlu0 %3778 }
0x33b8   :  { %v3805_v51 = vsel %vm3804_vm3, %v3800_v50, %v3779_v55 }
0x33b9   :  { %v3810_v54 = vsel %vm3809_vm4, %v3805_v51, 0.0  ;;  %v3781_v30 = vpop.permute.xlu1 %3780 }
0x33ba   :  { %3814 = vst [vmem:[%s4989_s21] sm:$0xff] %v3810_v54  ;;  %v3806_v27 = vsel %vm3804_vm3, %v3801_v21, %v3781_v30 }
0x33bb   :  { %v3811_v45 = vsel %vm3809_vm4, %v3806_v27, 0.0  ;;  %v3783_v28 = vpop.permute.xlu0 %3782 }
0x33bc   :  { %3815 = vst [vmem:[%s4989_s21 + $0x8] sm:$0xff] %v3811_v45  ;;  %v3807_v58 = vsel %vm3804_vm3, %v3802_v57, %v3783_v28 }
0x33bd   :  { %v3812_v10 = vsel %vm3809_vm4, %v3807_v58, 0.0  ;;  %v3785_v56 = vpop.permute.xlu1 %3784 }
0x33be   :  { %3816 = vst [vmem:[%s4989_s21 + $0x10] sm:$0xff] %v3812_v10  ;;  %v3808_v29 = vsel %vm3804_vm3, %v3803_v53, %v3785_v56 }
0x33bf   :  { %v3813_v26 = vsel %vm3809_vm4, %v3808_v29, 0.0 }
0x33c0   :  { %3817 = vst [vmem:[%s4989_s21 + $0x18] sm:$0xff] %v3813_v26 }
0x33c1   :  { %4786 = dma.done.wait [#allocation3], 32  }
0x33c2   :  { %4787 = vsyncadd [#allocation3], 4294967264 }
0x33c3   :  { %3835 = vsyncpa [#allocation3], 1 }

</bundles_post_ra>
